<compile_context>
chip_gen: v5e
topology: v5e:2x2
jax: 0.10.0
libtpu: 0.0.40
codegen_flags: <defaults>
</compile_context>

<pallas_src>
import functools
import math

import jax
import jax.numpy as jnp
from jax import lax
from jax.experimental import pallas as pl
from jax.experimental.pallas import tpu as pltpu

EPS = 1e-5
_INV_SQRT2 = 1.0 / math.sqrt(2.0)

# Compute the large softmax exponentials on bf16 inputs (roughly doubles EUP
# throughput on v6e/v7x).  Set False on v5e (no bf16 EUP) or for exact softmax.
EXP_IN_BF16 = True


# ------------------------------ small helpers -------------------------------

def _vmem_limit_bytes():
    """3/4 of physical per-core VMEM; conservative fallback if unqueryable."""
    try:
        info = pltpu.get_tpu_info()
        cap = getattr(info, "vmem_capacity_bytes", None)
        if cap:
            return int(cap) * 3 // 4
    except Exception:
        pass
    return 48 * 1024 * 1024  # safe on v5e/v6e (128 MiB) and v7x (64 MiB)


def _gelu(x):
    # exact (erf) GELU, matching torch.nn.functional.gelu default
    return 0.5 * x * (1.0 + lax.erf(x * _INV_SQRT2))


def _layer_norm(x, w, b):
    # two-pass variance (avoids E[x^2]-E[x]^2 cancellation)
    mu = jnp.mean(x, axis=-1, keepdims=True)
    xc = x - mu
    var = jnp.mean(xc * xc, axis=-1, keepdims=True)
    return xc * lax.rsqrt(var + EPS) * w + b


def _const_spec(shape, grid_rank):
    """BlockSpec for a grid-invariant (resident) operand."""
    zeros = (0,) * len(shape)
    index_map = {
        1: (lambda b: zeros),
        2: (lambda b, i: zeros),
        3: (lambda b, i, j: zeros),
    }[grid_rank]
    return pl.BlockSpec(shape, index_map)


def _compiler_params(dims):
    return pltpu.CompilerParams(dimension_semantics=dims,
                                vmem_limit_bytes=_vmem_limit_bytes())


def _pick_tile(n, preferred, granule):
    """Largest multiple of `granule` <= preferred dividing n, else full n.

    Note: at real shapes use preferred tiles that are multiples of 16 so bf16
    blocks pack two rows per sublane (matters most on v5e).
    """
    if n <= preferred:
        return n
    start = preferred - preferred % granule
    for t in range(start, granule - 1, -granule):
        if n % t == 0:
            return t
    return n


# ------------------------------- Pallas kernels ------------------------------

def _conv1_kernel(xop_ref, xe_ref, xo_ref, xep_ref, w_ref, b_ref,
                  he_ref, ho_ref):
    # De-interleaved conv1 (kernel 3, stride 1, pad 1) followed by GELU.
    #   E[t] = gelu(w0.x[2t-1] + w1.x[2t]   + w2.x[2t+1] + b)   (even rows)
    #   O[t] = gelu(w0.x[2t]   + w1.x[2t+1] + w2.x[2t+2] + b)   (odd rows)
    # All shifted views (xop=x[2t-1], xe=x[2t], xo=x[2t+1], xep=x[2t+2]) are
    # pre-materialized by the wrapper -> every read here is contiguous.
    w0 = w_ref[0]
    w1 = w_ref[1]
    w2 = w_ref[2]
    b = b_ref[...]
    e = (jnp.dot(xop_ref[0], w0, preferred_element_type=jnp.float32)
         + jnp.dot(xe_ref[0], w1, preferred_element_type=jnp.float32)
         + jnp.dot(xo_ref[0], w2, preferred_element_type=jnp.float32) + b)
    o = (jnp.dot(xe_ref[0], w0, preferred_element_type=jnp.float32)
         + jnp.dot(xo_ref[0], w1, preferred_element_type=jnp.float32)
         + jnp.dot(xep_ref[0], w2, preferred_element_type=jnp.float32) + b)
    he_ref[0] = _gelu(e).astype(he_ref.dtype)   # bf16 activations in HBM
    ho_ref[0] = _gelu(o).astype(ho_ref.dtype)


def _conv2_kernel(hop_ref, he_ref, ho_ref, w_ref, b_ref, pos_ref, o_ref):
    # conv2 (kernel 3, stride 2, pad 1) + GELU + positional embedding:
    #   y[t] = gelu(w0.O[t-1] + w1.E[t] + w2.O[t] + b) + pos[t]
    # hop is O shifted right by one with a zero row (built in the wrapper).
    y = (jnp.dot(hop_ref[0], w_ref[0], preferred_element_type=jnp.float32)
         + jnp.dot(he_ref[0], w_ref[1], preferred_element_type=jnp.float32)
         + jnp.dot(ho_ref[0], w_ref[2], preferred_element_type=jnp.float32)
         + b_ref[...])
    o_ref[0] = (_gelu(y) + pos_ref[...]).astype(o_ref.dtype)


def _qkv_kernel(x_ref, ln1w_ref, ln1b_ref, wqkv_ref, bqkv_ref,
                q_ref, k_ref, v_ref, *, d_model, scale):
    # LN1 + fused QKV projection; outputs are lane-dense (TS, D) bf16 tiles.
    xn = _layer_norm(x_ref[0], ln1w_ref[...], ln1b_ref[...]).astype(jnp.bfloat16)
    qkv = (jnp.dot(xn, wqkv_ref[...], preferred_element_type=jnp.float32)
           + bqkv_ref[...])
    d = d_model
    q_ref[0] = (qkv[:, :d] * scale).astype(jnp.bfloat16)   # q pre-scaled
    k_ref[0] = qkv[:, d:2 * d].astype(jnp.bfloat16)
    v_ref[0] = qkv[:, 2 * d:].astype(jnp.bfloat16)


def _attn_kernel(x_ref, q_ref, k_ref, v_ref, wo_ref, bo_ref, o_ref,
                 *, n_heads, head_dim, kv_tile):
    # Flash attention (online softmax over K/V tiles held in VMEM for the
    # whole sequence) + ONE full-K output projection + residual add.
    ts = q_ref.shape[1]
    s_len = k_ref.shape[1]
    d_model = n_heads * head_dim
    n_kv = s_len // kv_tile

    # one head-split relayout per q tile: (TS, D) -> (H, TS, hd)
    q = q_ref[0].reshape(ts, n_heads, head_dim).transpose(1, 0, 2)

    m = jnp.full((n_heads, ts, 1), -jnp.inf, jnp.float32)
    l = jnp.zeros((n_heads, ts, 1), jnp.float32)
    acc = jnp.zeros((n_heads, ts, head_dim), jnp.float32)

    # Static unrolled K/V-tile loop: slice starts are compile-time constants
    # (interpreter-safe, no dynamic ds).
    # TODO(synk): for very long sequences switch to lax.fori_loop + dynamic
    #             pl.ds over a padded/masked sequence.
    for j in range(n_kv):
        lo = j * kv_tile
        k = k_ref[0, lo:lo + kv_tile, :].reshape(kv_tile, n_heads, head_dim)
        v = v_ref[0, lo:lo + kv_tile, :].reshape(kv_tile, n_heads, head_dim)
        s = jnp.einsum("hqd,khd->hqk", q, k,
                       preferred_element_type=jnp.float32)
        m_new = jnp.maximum(m, jnp.max(s, axis=-1, keepdims=True))
        alpha = jnp.exp(m - m_new)                 # tiny (H,TS,1): keep f32 exp
        su = s - m_new
        if EXP_IN_BF16:
            p = jnp.exp(su.astype(jnp.bfloat16))   # big exp on bf16 (EUP)
            l = alpha * l + jnp.sum(p.astype(jnp.float32), axis=-1,
                                    keepdims=True)
            pv = jnp.einsum("hqk,khd->hqd", p, v,
                            preferred_element_type=jnp.float32)
        else:
            p = jnp.exp(su)
            l = alpha * l + jnp.sum(p, axis=-1, keepdims=True)
            pv = jnp.einsum("hqk,khd->hqd", p.astype(jnp.bfloat16), v,
                            preferred_element_type=jnp.float32)
        acc = alpha * acc + pv
        m = m_new

    attn = acc * (1.0 / l)                                      # (H, TS, hd)
    # single relayout to lane-dense (TS, D), then ONE full-K out-proj matmul.
    attn = attn.transpose(1, 0, 2).reshape(ts, d_model).astype(jnp.bfloat16)
    o_ref[0] = (x_ref[0]
                + jnp.dot(attn, wo_ref[...],
                          preferred_element_type=jnp.float32)
                + bo_ref[...])


def _ffn_kernel(x_ref, ln2w_ref, ln2b_ref, w1_ref, b1_ref, w2_ref, b2_ref,
                lnfw_ref, lnfb_ref, o_ref, xn_ref, acc_ref, *, apply_final_ln):
    # LN2 + fc1/GELU/fc2 (tiled over ffn_dim) + residual (+ fused final LN).
    fi = pl.program_id(2)

    @pl.when(fi == 0)
    def _():
        xn_ref[...] = _layer_norm(x_ref[0], ln2w_ref[...],
                                  ln2b_ref[...]).astype(jnp.bfloat16)
        acc_ref[...] = jnp.zeros(acc_ref.shape, acc_ref.dtype)

    h = _gelu(jnp.dot(xn_ref[...], w1_ref[...],
                      preferred_element_type=jnp.float32) + b1_ref[...])
    acc_ref[...] += jnp.dot(h.astype(jnp.bfloat16), w2_ref[...],
                            preferred_element_type=jnp.float32)

    @pl.when(fi == pl.num_programs(2) - 1)
    def _():
        y = x_ref[0] + acc_ref[...] + b2_ref[...]
        if apply_final_ln:
            y = _layer_norm(y, lnfw_ref[...], lnfb_ref[...])
        o_ref[0] = y


# ------------------------------ pallas_call wrappers -------------------------

def _conv_stage(mel_nchw, p, t, conv_tile):
    bsz, m, _, _t2 = mel_nchw.shape
    d = p["conv1_w"].shape[-1]
    tt = _pick_tile(t, conv_tile, 8)

    # NCHW -> (B, 2T, M); de-interleave + shift in the wrapper (cheap XLA ops
    # on the small mel input), so the kernels only do contiguous reads.
    x = jnp.transpose(mel_nchw[:, :, 0, :], (0, 2, 1))
    xe = x[:, 0::2, :]                                      # x[2t]
    xo = x[:, 1::2, :]                                      # x[2t+1]
    z = jnp.zeros((bsz, 1, m), x.dtype)
    xop = jnp.concatenate([z, xo[:, :-1, :]], axis=1)       # x[2t-1]
    xep = jnp.concatenate([xe[:, 1:, :], z], axis=1)        # x[2t+2]
    xe, xo, xop, xep = (a.astype(jnp.bfloat16) for a in (xe, xo, xop, xep))

    seq_spec_m = pl.BlockSpec((1, tt, m), lambda b, si: (b, si, 0))
    seq_spec_d = pl.BlockSpec((1, tt, d), lambda b, si: (b, si, 0))

    he, ho = pl.pallas_call(
        _conv1_kernel,
        out_shape=(jax.ShapeDtypeStruct((bsz, t, d), jnp.bfloat16),
                   jax.ShapeDtypeStruct((bsz, t, d), jnp.bfloat16)),
        grid=(bsz, t // tt),
        in_specs=[seq_spec_m, seq_spec_m, seq_spec_m, seq_spec_m,
                  _const_spec(p["conv1_w"].shape, 2),
                  _const_spec(p["conv1_b"].shape, 2)],
        out_specs=(seq_spec_d, seq_spec_d),
        compiler_params=_compiler_params(("parallel", "parallel")),
    )(xop, xe, xo, xep, p["conv1_w"], p["conv1_b"])

    zd = jnp.zeros((bsz, 1, d), ho.dtype)
    hop = jnp.concatenate([zd, ho[:, :-1, :]], axis=1)       # O[t-1]
    pos = p["pos_emb"][:t]

    return pl.pallas_call(
        _conv2_kernel,
        out_shape=jax.ShapeDtypeStruct((bsz, t, d), jnp.float32),
        grid=(bsz, t // tt),
        in_specs=[seq_spec_d, seq_spec_d, seq_spec_d,
                  _const_spec(p["conv2_w"].shape, 2),
                  _const_spec(p["conv2_b"].shape, 2),
                  pl.BlockSpec((tt, d), lambda b, si: (si, 0))],
        out_specs=seq_spec_d,
        compiler_params=_compiler_params(("parallel", "parallel")),
    )(hop, he, ho, p["conv2_w"], p["conv2_b"], pos)


def _qkv_proj(x, lp, n_heads, seq_tile):
    bsz, s, d = x.shape
    hd = d // n_heads
    ts = _pick_tile(s, seq_tile, 8)
    kernel = functools.partial(_qkv_kernel, d_model=d,
                               scale=1.0 / math.sqrt(hd))
    qkv_shape = jax.ShapeDtypeStruct((bsz, s, d), jnp.bfloat16)
    seq_spec = pl.BlockSpec((1, ts, d), lambda b, si: (b, si, 0))
    return pl.pallas_call(
        kernel,
        out_shape=(qkv_shape, qkv_shape, qkv_shape),
        grid=(bsz, s // ts),
        in_specs=[seq_spec,
                  _const_spec(lp["ln1_w"].shape, 2),
                  _const_spec(lp["ln1_b"].shape, 2),
                  _const_spec(lp["wqkv"].shape, 2),
                  _const_spec(lp["bqkv"].shape, 2)],
        out_specs=(seq_spec, seq_spec, seq_spec),
        compiler_params=_compiler_params(("parallel", "parallel")),
    )(x, lp["ln1_w"], lp["ln1_b"], lp["wqkv"], lp["bqkv"])


def _attention(x, q, k, v, lp, n_heads, seq_tile, kv_tile):
    bsz, s, d = x.shape
    hd = d // n_heads
    ts = _pick_tile(s, seq_tile, 8)
    tk = _pick_tile(s, kv_tile, 8)
    kernel = functools.partial(_attn_kernel, n_heads=n_heads, head_dim=hd,
                               kv_tile=tk)
    seq_spec = pl.BlockSpec((1, ts, d), lambda b, si: (b, si, 0))
    # K/V are full-sequence and indexed by batch only -> fetched once per
    # batch element, reused across all q tiles (no HBM re-streaming).
    full_spec = pl.BlockSpec((1, s, d), lambda b, si: (b, 0, 0))
    return pl.pallas_call(
        kernel,
        out_shape=jax.ShapeDtypeStruct((bsz, s, d), jnp.float32),
        grid=(bsz, s // ts),
        in_specs=[seq_spec, seq_spec, full_spec, full_spec,
                  _const_spec(lp["wo"].shape, 2),
                  _const_spec(lp["bo"].shape, 2)],
        out_specs=seq_spec,
        compiler_params=_compiler_params(("parallel", "parallel")),
    )(x, q, k, v, lp["wo"], lp["bo"])


def _ffn(x, lp, lnf_w, lnf_b, apply_final_ln, seq_tile, ffn_tile):
    bsz, s, d = x.shape
    f = lp["w1"].shape[-1]
    ts = _pick_tile(s, seq_tile, 8)
    tf = _pick_tile(f, ffn_tile, 128)   # tf == f -> fi axis collapses, weights resident
    kernel = functools.partial(_ffn_kernel, apply_final_ln=apply_final_ln)
    return pl.pallas_call(
        kernel,
        out_shape=jax.ShapeDtypeStruct((bsz, s, d), jnp.float32),
        grid=(bsz, s // ts, f // tf),
        in_specs=[pl.BlockSpec((1, ts, d), lambda b, si, fi: (b, si, 0)),
                  _const_spec(lp["ln2_w"].shape, 3),
                  _const_spec(lp["ln2_b"].shape, 3),
                  pl.BlockSpec((d, tf), lambda b, si, fi: (0, fi)),
                  pl.BlockSpec((1, tf), lambda b, si, fi: (0, fi)),
                  pl.BlockSpec((tf, d), lambda b, si, fi: (fi, 0)),
                  _const_spec(lp["b2"].shape, 3),
                  _const_spec(lnf_w.shape, 3),
                  _const_spec(lnf_b.shape, 3)],
        out_specs=pl.BlockSpec((1, ts, d), lambda b, si, fi: (b, si, 0)),
        scratch_shapes=[pltpu.VMEM((ts, d), jnp.bfloat16),
                        pltpu.VMEM((ts, d), jnp.float32)],
        compiler_params=_compiler_params(("parallel", "parallel", "arbitrary")),
    )(x, lp["ln2_w"], lp["ln2_b"], lp["w1"], lp["b1"], lp["w2"], lp["b2"],
      lnf_w, lnf_b)


# --------------------------------- forward pass ------------------------------

def _prepare_params(params):
    """Cast matmul weights to bf16 and fuse the Q/K/V projection weights."""
    bf = lambda a: a.astype(jnp.bfloat16)
    prepared = dict(
        conv1_w=bf(params["conv1_w"]), conv1_b=params["conv1_b"],
        conv2_w=bf(params["conv2_w"]), conv2_b=params["conv2_b"],
        pos_emb=params["pos_emb"],
        ln_f_w=params["ln_f_w"], ln_f_b=params["ln_f_b"],
        layers=[])
    for lp in params["layers"]:
        prepared["layers"].append(dict(
            ln1_w=lp["ln1_w"], ln1_b=lp["ln1_b"],
            wqkv=bf(jnp.concatenate([lp["wq"], lp["wk"], lp["wv"]], axis=1)),
            bqkv=jnp.concatenate([lp["bq"], lp["bk"], lp["bv"]], axis=1),
            wo=bf(lp["wo"]), bo=lp["bo"],
            ln2_w=lp["ln2_w"], ln2_b=lp["ln2_b"],
            w1=bf(lp["w1"]), b1=lp["b1"],
            w2=bf(lp["w2"]), b2=lp["b2"]))
    return prepared


def whisper_audio_encoder(mel_nchw, params, n_heads, *,
                          conv_tile=256, seq_tile=256, kv_tile=128,
                          ffn_tile=512):
    """mel_nchw: (B, num_mel_bins, 1, 2T) -> (B, d_model, 1, T)."""
    _bsz, _m, _, t2 = mel_nchw.shape
    t = t2 // 2
    prepared = _prepare_params(params)

    h = _conv_stage(mel_nchw, prepared, t, conv_tile)          # (B, T, D) f32

    n_layers = len(prepared["layers"])
    for idx, lp in enumerate(prepared["layers"]):
        q, k, v = _qkv_proj(h, lp, n_heads, seq_tile)
        h = _attention(h, q, k, v, lp, n_heads, seq_tile, kv_tile)
        h = _ffn(h, lp, prepared["ln_f_w"], prepared["ln_f_b"],
                 apply_final_ln=(idx == n_layers - 1),
                 seq_tile=seq_tile, ffn_tile=ffn_tile)

    # (B, T, D) -> (B, D, 1, T)  (matches PyTorch output layout)
    return jnp.transpose(h, (0, 2, 1))[:, :, None, :]


# ------------------------------ reference (pure JAX) -------------------------

def _ref_forward(mel, params, n_heads):
    B, M, _, T2 = mel.shape
    T = T2 // 2
    x = jnp.transpose(mel[:, :, 0, :], (0, 2, 1))
    xp = jnp.pad(x, ((0, 0), (1, 1), (0, 0)))
    w1, b1 = params["conv1_w"], params["conv1_b"]
    h = _gelu(xp[:, 0:T2] @ w1[0] + xp[:, 1:T2 + 1] @ w1[1]
              + xp[:, 2:T2 + 2] @ w1[2] + b1)
    hp = jnp.pad(h, ((0, 0), (1, 1), (0, 0)))
    w2, b2 = params["conv2_w"], params["conv2_b"]
    h = _gelu(hp[:, 0:2 * T:2] @ w2[0] + hp[:, 1:2 * T + 1:2] @ w2[1]
              + hp[:, 2:2 * T + 2:2] @ w2[2] + b2)
    h = h + params["pos_emb"][None, :T, :]
    D = h.shape[-1]
    hd = D // n_heads
    for lp in params["layers"]:
        xn = _layer_norm(h, lp["ln1_w"], lp["ln1_b"])
        q = xn @ lp["wq"] + lp["bq"]
        k = xn @ lp["wk"] + lp["bk"]
        v = xn @ lp["wv"] + lp["bv"]
        qh = q.reshape(h.shape[0], -1, n_heads, hd).transpose(0, 2, 1, 3)
        kh = k.reshape(h.shape[0], -1, n_heads, hd).transpose(0, 2, 1, 3)
        vh = v.reshape(h.shape[0], -1, n_heads, hd).transpose(0, 2, 1, 3)
        logits = jnp.einsum("bhqd,bhkd->bhqk", qh, kh) / math.sqrt(hd)
        p = jax.nn.softmax(logits, axis=-1)
        o = jnp.einsum("bhqk,bhkd->bhqd", p, vh).transpose(0, 2, 1, 3)
        o = o.reshape(h.shape[0], -1, D) @ lp["wo"] + lp["bo"]
        h = h + o
        xn = _layer_norm(h, lp["ln2_w"], lp["ln2_b"])
        h = h + _gelu(xn @ lp["w1"] + lp["b1"]) @ lp["w2"] + lp["b2"]
    h = _layer_norm(h, params["ln_f_w"], params["ln_f_b"])
    return jnp.transpose(h, (0, 2, 1))[:, :, None, :]


# -------------------------------- param init ---------------------------------

def init_params(key, *, num_mel_bins, d_model, ffn_dim, n_layers, max_pos):
    n_rand = 5 + n_layers * 12
    keys = iter(jax.random.split(key, n_rand))

    def nrm(shape, scale=0.05):
        return (scale * jax.random.normal(next(keys), shape)).astype(jnp.float32)

    params = dict(
        conv1_w=nrm((3, num_mel_bins, d_model)),
        conv1_b=nrm((1, d_model)),
        conv2_w=nrm((3, d_model, d_model)),
        conv2_b=nrm((1, d_model)),
        pos_emb=nrm((max_pos, d_model)),
        ln_f_w=jnp.ones((1, d_model), jnp.float32),
        ln_f_b=jnp.zeros((1, d_model), jnp.float32),
        layers=[],
    )
    for _ in range(n_layers):
        lp = dict(
            ln1_w=jnp.ones((1, d_model), jnp.float32),
            ln1_b=jnp.zeros((1, d_model), jnp.float32),
            wq=nrm((d_model, d_model)), bq=nrm((1, d_model)),
            wk=nrm((d_model, d_model)), bk=nrm((1, d_model)),
            wv=nrm((d_model, d_model)), bv=nrm((1, d_model)),
            wo=nrm((d_model, d_model)), bo=nrm((1, d_model)),
            ln2_w=jnp.ones((1, d_model), jnp.float32),
            ln2_b=jnp.zeros((1, d_model), jnp.float32),
            w1=nrm((d_model, ffn_dim)), b1=nrm((1, ffn_dim)),
            w2=nrm((ffn_dim, d_model)), b2=nrm((1, d_model)),
        )
        params["layers"].append(lp)
    return params


# ------------------------------------ main ------------------------------------

if __name__ == "__main__":
    # small synthetic Whisper config (lane-sized d_model so tiled paths run)
    batch = 2
    num_mel_bins = 16
    d_model = 128
    n_heads = 4
    ffn_dim = 256
    n_layers = 2
    max_source_positions = 32
    encoder_seq_len = 16                      # output seq length T

    key = jax.random.PRNGKey(0)
    pkey, xkey = jax.random.split(key)
    params = init_params(pkey, num_mel_bins=num_mel_bins, d_model=d_model,
                         ffn_dim=ffn_dim, n_layers=n_layers,
                         max_pos=max_source_positions)

    # melspectrogram_features: (batch, num_mel_bins, 1, encoder_seq_len * 2)
    mel = jax.random.normal(
        xkey, (batch, num_mel_bins, 1, encoder_seq_len * 2), jnp.float32)

    # small tiles so the seq-tiled conv, in-kernel K/V loop and FFN
    # accumulation paths are all exercised at these toy shapes.
    fwd = jax.jit(functools.partial(
        whisper_audio_encoder, n_heads=n_heads,
        conv_tile=8, seq_tile=8, kv_tile=8, ffn_tile=128))

    out = jax.block_until_ready(fwd(mel, params))
    assert out.shape == (batch, d_model, 1, encoder_seq_len), out.shape
    assert bool(jnp.all(jnp.isfinite(out)))

    ref = jax.block_until_ready(
        jax.jit(functools.partial(_ref_forward, n_heads=n_heads))(mel, params))
    max_err = float(jnp.max(jnp.abs(out - ref)))
    assert jnp.allclose(out, ref, atol=2e-2, rtol=2e-2), max_err
    print("KERNEL_OK")
</pallas_src>

<mosaic_0001>
module attributes {stable_mosaic.version = 11 : i64} {
  func.func @_conv1_kernel(%arg0: i32, %arg1: i32, %arg2: memref<1x8x16xbf16, #tpu.memory_space<vmem>>, %arg3: memref<1x8x16xbf16, #tpu.memory_space<vmem>>, %arg4: memref<1x8x16xbf16, #tpu.memory_space<vmem>>, %arg5: memref<1x8x16xbf16, #tpu.memory_space<vmem>>, %arg6: memref<3x16x128xbf16, #tpu.memory_space<vmem>>, %arg7: memref<1x128xf32, #tpu.memory_space<vmem>>, %arg8: memref<1x8x128xbf16, #tpu.memory_space<vmem>>, %arg9: memref<1x8x128xbf16, #tpu.memory_space<vmem>>) attributes {dimension_semantics = [#tpu.dimension_semantics<parallel>, #tpu.dimension_semantics<parallel>], iteration_bounds = array<i64: 2, 2>, scalar_prefetch = 0 : i64, scratch_operands = 0 : i64, tpu.core_type = #tpu.core_type<tc>, window_params = [{transform_indices = @transform_0, window_bounds = array<i64: 1, 8, 16>}, {transform_indices = @transform_1, window_bounds = array<i64: 1, 8, 16>}, {transform_indices = @transform_2, window_bounds = array<i64: 1, 8, 16>}, {transform_indices = @transform_3, window_bounds = array<i64: 1, 8, 16>}, {pipeline_mode = #tpu.pipeline_mode<synchronous>, transform_indices = @transform_4, window_bounds = array<i64: 3, 16, 128>}, {pipeline_mode = #tpu.pipeline_mode<synchronous>, transform_indices = @transform_5, window_bounds = array<i64: 1, 128>}, {transform_indices = @transform_6, window_bounds = array<i64: 1, 8, 128>}, {transform_indices = @transform_7, window_bounds = array<i64: 1, 8, 128>}]} {
    %c0 = arith.constant 0 : index
    %c0_0 = arith.constant 0 : index
    %c0_1 = arith.constant 0 : index
    %0 = vector.load %arg6[%c0, %c0_0, %c0_1] : memref<3x16x128xbf16, #tpu.memory_space<vmem>>, vector<1x16x128xbf16>
    %1 = vector.shape_cast %0 : vector<1x16x128xbf16> to vector<16x128xbf16>
    %c1 = arith.constant 1 : index
    %c0_2 = arith.constant 0 : index
    %c0_3 = arith.constant 0 : index
    %2 = vector.load %arg6[%c1, %c0_2, %c0_3] : memref<3x16x128xbf16, #tpu.memory_space<vmem>>, vector<1x16x128xbf16>
    %3 = vector.shape_cast %2 : vector<1x16x128xbf16> to vector<16x128xbf16>
    %c2 = arith.constant 2 : index
    %c0_4 = arith.constant 0 : index
    %c0_5 = arith.constant 0 : index
    %4 = vector.load %arg6[%c2, %c0_4, %c0_5] : memref<3x16x128xbf16, #tpu.memory_space<vmem>>, vector<1x16x128xbf16>
    %5 = vector.shape_cast %4 : vector<1x16x128xbf16> to vector<16x128xbf16>
    %c0_6 = arith.constant 0 : index
    %c0_7 = arith.constant 0 : index
    %6 = vector.load %arg7[%c0_6, %c0_7] : memref<1x128xf32, #tpu.memory_space<vmem>>, vector<1x128xf32>
    %c0_8 = arith.constant 0 : index
    %c0_9 = arith.constant 0 : index
    %c0_10 = arith.constant 0 : index
    %7 = vector.load %arg2[%c0_8, %c0_9, %c0_10] : memref<1x8x16xbf16, #tpu.memory_space<vmem>>, vector<1x8x16xbf16>
    %8 = vector.shape_cast %7 : vector<1x8x16xbf16> to vector<8x16xbf16>
    %cst = arith.constant dense<0.000000e+00> : vector<8x128xf32>
    %9 = tpu.matmul %8, %1, %cst {dimension_numbers = #tpu.dot_dimension_numbers<[1], [0], [0], [1], [0, 0, 1, 1], [], []>} : vector<8x16xbf16>, vector<16x128xbf16>, vector<8x128xf32> -> vector<8x128xf32>
    %c0_11 = arith.constant 0 : index
    %c0_12 = arith.constant 0 : index
    %c0_13 = arith.constant 0 : index
    %10 = vector.load %arg3[%c0_11, %c0_12, %c0_13] : memref<1x8x16xbf16, #tpu.memory_space<vmem>>, vector<1x8x16xbf16>
    %11 = vector.shape_cast %10 : vector<1x8x16xbf16> to vector<8x16xbf16>
    %cst_14 = arith.constant dense<0.000000e+00> : vector<8x128xf32>
    %12 = tpu.matmul %11, %3, %cst_14 {dimension_numbers = #tpu.dot_dimension_numbers<[1], [0], [0], [1], [0, 0, 1, 1], [], []>} : vector<8x16xbf16>, vector<16x128xbf16>, vector<8x128xf32> -> vector<8x128xf32>
    %13 = arith.addf %9, %12 : vector<8x128xf32>
    %c0_15 = arith.constant 0 : index
    %c0_16 = arith.constant 0 : index
    %c0_17 = arith.constant 0 : index
    %14 = vector.load %arg4[%c0_15, %c0_16, %c0_17] : memref<1x8x16xbf16, #tpu.memory_space<vmem>>, vector<1x8x16xbf16>
    %15 = vector.shape_cast %14 : vector<1x8x16xbf16> to vector<8x16xbf16>
    %cst_18 = arith.constant dense<0.000000e+00> : vector<8x128xf32>
    %16 = tpu.matmul %15, %5, %cst_18 {dimension_numbers = #tpu.dot_dimension_numbers<[1], [0], [0], [1], [0, 0, 1, 1], [], []>} : vector<8x16xbf16>, vector<16x128xbf16>, vector<8x128xf32> -> vector<8x128xf32>
    %17 = arith.addf %13, %16 : vector<8x128xf32>
    %18 = vector.broadcast %6 : vector<1x128xf32> to vector<8x128xf32>
    %19 = arith.addf %17, %18 : vector<8x128xf32>
    %c0_19 = arith.constant 0 : index
    %c0_20 = arith.constant 0 : index
    %c0_21 = arith.constant 0 : index
    %20 = vector.load %arg3[%c0_19, %c0_20, %c0_21] : memref<1x8x16xbf16, #tpu.memory_space<vmem>>, vector<1x8x16xbf16>
    %21 = vector.shape_cast %20 : vector<1x8x16xbf16> to vector<8x16xbf16>
    %cst_22 = arith.constant dense<0.000000e+00> : vector<8x128xf32>
    %22 = tpu.matmul %21, %1, %cst_22 {dimension_numbers = #tpu.dot_dimension_numbers<[1], [0], [0], [1], [0, 0, 1, 1], [], []>} : vector<8x16xbf16>, vector<16x128xbf16>, vector<8x128xf32> -> vector<8x128xf32>
    %c0_23 = arith.constant 0 : index
    %c0_24 = arith.constant 0 : index
    %c0_25 = arith.constant 0 : index
    %23 = vector.load %arg4[%c0_23, %c0_24, %c0_25] : memref<1x8x16xbf16, #tpu.memory_space<vmem>>, vector<1x8x16xbf16>
    %24 = vector.shape_cast %23 : vector<1x8x16xbf16> to vector<8x16xbf16>
    %cst_26 = arith.constant dense<0.000000e+00> : vector<8x128xf32>
    %25 = tpu.matmul %24, %3, %cst_26 {dimension_numbers = #tpu.dot_dimension_numbers<[1], [0], [0], [1], [0, 0, 1, 1], [], []>} : vector<8x16xbf16>, vector<16x128xbf16>, vector<8x128xf32> -> vector<8x128xf32>
    %26 = arith.addf %22, %25 : vector<8x128xf32>
    %c0_27 = arith.constant 0 : index
    %c0_28 = arith.constant 0 : index
    %c0_29 = arith.constant 0 : index
    %27 = vector.load %arg5[%c0_27, %c0_28, %c0_29] : memref<1x8x16xbf16, #tpu.memory_space<vmem>>, vector<1x8x16xbf16>
    %28 = vector.shape_cast %27 : vector<1x8x16xbf16> to vector<8x16xbf16>
    %cst_30 = arith.constant dense<0.000000e+00> : vector<8x128xf32>
    %29 = tpu.matmul %28, %5, %cst_30 {dimension_numbers = #tpu.dot_dimension_numbers<[1], [0], [0], [1], [0, 0, 1, 1], [], []>} : vector<8x16xbf16>, vector<16x128xbf16>, vector<8x128xf32> -> vector<8x128xf32>
    %30 = arith.addf %26, %29 : vector<8x128xf32>
    %31 = vector.broadcast %6 : vector<1x128xf32> to vector<8x128xf32>
    %32 = arith.addf %30, %31 : vector<8x128xf32>
    %cst_31 = arith.constant 5.000000e-01 : f32
    %33 = vector.broadcast %cst_31 : f32 to vector<8x128xf32>
    %34 = arith.mulf %33, %19 : vector<8x128xf32>
    %cst_32 = arith.constant 0.707106769 : f32
    %35 = vector.broadcast %cst_32 : f32 to vector<8x128xf32>
    %36 = arith.mulf %19, %35 : vector<8x128xf32>
    %37 = math.erf %36 : vector<8x128xf32>
    %cst_33 = arith.constant 1.000000e+00 : f32
    %38 = vector.broadcast %cst_33 : f32 to vector<8x128xf32>
    %39 = arith.addf %38, %37 : vector<8x128xf32>
    %40 = arith.mulf %34, %39 : vector<8x128xf32>
    %41 = arith.truncf %40 : vector<8x128xf32> to vector<8x128xbf16>
    %c0_34 = arith.constant 0 : index
    %c0_35 = arith.constant 0 : index
    %c0_36 = arith.constant 0 : index
    %42 = vector.load %arg8[%c0_34, %c0_35, %c0_36] : memref<1x8x128xbf16, #tpu.memory_space<vmem>>, vector<1x8x128xbf16>
    %43 = vector.shape_cast %42 : vector<1x8x128xbf16> to vector<8x128xbf16>
    %44 = vector.shape_cast %41 : vector<8x128xbf16> to vector<1x8x128xbf16>
    tpu.vector_store %arg8[%c0_34, %c0_35, %c0_36], %44 {strides = array<i32>} : memref<1x8x128xbf16, #tpu.memory_space<vmem>>, vector<1x8x128xbf16>,
    %cst_37 = arith.constant 5.000000e-01 : f32
    %45 = vector.broadcast %cst_37 : f32 to vector<8x128xf32>
    %46 = arith.mulf %45, %32 : vector<8x128xf32>
    %cst_38 = arith.constant 0.707106769 : f32
    %47 = vector.broadcast %cst_38 : f32 to vector<8x128xf32>
    %48 = arith.mulf %32, %47 : vector<8x128xf32>
    %49 = math.erf %48 : vector<8x128xf32>
    %cst_39 = arith.constant 1.000000e+00 : f32
    %50 = vector.broadcast %cst_39 : f32 to vector<8x128xf32>
    %51 = arith.addf %50, %49 : vector<8x128xf32>
    %52 = arith.mulf %46, %51 : vector<8x128xf32>
    %53 = arith.truncf %52 : vector<8x128xf32> to vector<8x128xbf16>
    %c0_40 = arith.constant 0 : index
    %c0_41 = arith.constant 0 : index
    %c0_42 = arith.constant 0 : index
    %54 = vector.load %arg9[%c0_40, %c0_41, %c0_42] : memref<1x8x128xbf16, #tpu.memory_space<vmem>>, vector<1x8x128xbf16>
    %55 = vector.shape_cast %54 : vector<1x8x128xbf16> to vector<8x128xbf16>
    %56 = vector.shape_cast %53 : vector<8x128xbf16> to vector<1x8x128xbf16>
    tpu.vector_store %arg9[%c0_40, %c0_41, %c0_42], %56 {strides = array<i32>} : memref<1x8x128xbf16, #tpu.memory_space<vmem>>, vector<1x8x128xbf16>,
    return
  }
  func.func @transform_0(%arg0: i32, %arg1: i32) -> (i32, i32, i32) {
    %c0_i32 = arith.constant 0 : i32
    %c0_i32_0 = arith.constant 0 : i32
    return %arg0, %arg1, %c0_i32 : i32, i32, i32
  }
  func.func @transform_1(%arg0: i32, %arg1: i32) -> (i32, i32, i32) {
    %c0_i32 = arith.constant 0 : i32
    %c0_i32_0 = arith.constant 0 : i32
    return %arg0, %arg1, %c0_i32 : i32, i32, i32
  }
  func.func @transform_2(%arg0: i32, %arg1: i32) -> (i32, i32, i32) {
    %c0_i32 = arith.constant 0 : i32
    %c0_i32_0 = arith.constant 0 : i32
    return %arg0, %arg1, %c0_i32 : i32, i32, i32
  }
  func.func @transform_3(%arg0: i32, %arg1: i32) -> (i32, i32, i32) {
    %c0_i32 = arith.constant 0 : i32
    %c0_i32_0 = arith.constant 0 : i32
    return %arg0, %arg1, %c0_i32 : i32, i32, i32
  }
  func.func @transform_4(%arg0: i32, %arg1: i32) -> (i32, i32, i32) {
    %c0_i32 = arith.constant 0 : i32
    %c0_i32_0 = arith.constant 0 : i32
    %c0_i32_1 = arith.constant 0 : i32
    %c0_i32_2 = arith.constant 0 : i32
    return %c0_i32, %c0_i32_0, %c0_i32_1 : i32, i32, i32
  }
  func.func @transform_5(%arg0: i32, %arg1: i32) -> (i32, i32) {
    %c0_i32 = arith.constant 0 : i32
    %c0_i32_0 = arith.constant 0 : i32
    %c0_i32_1 = arith.constant 0 : i32
    return %c0_i32, %c0_i32_0 : i32, i32
  }
  func.func @transform_6(%arg0: i32, %arg1: i32) -> (i32, i32, i32) {
    %c0_i32 = arith.constant 0 : i32
    %c0_i32_0 = arith.constant 0 : i32
    return %arg0, %arg1, %c0_i32 : i32, i32, i32
  }
  func.func @transform_7(%arg0: i32, %arg1: i32) -> (i32, i32, i32) {
    %c0_i32 = arith.constant 0 : i32
    %c0_i32_0 = arith.constant 0 : i32
    return %arg0, %arg1, %c0_i32 : i32, i32, i32
  }
}

module attributes {stable_mosaic.version = 11 : i64} {
  func.func @_conv2_kernel(%arg0: i32, %arg1: i32, %arg2: memref<1x8x128xbf16, #tpu.memory_space<vmem>>, %arg3: memref<1x8x128xbf16, #tpu.memory_space<vmem>>, %arg4: memref<1x8x128xbf16, #tpu.memory_space<vmem>>, %arg5: memref<3x128x128xbf16, #tpu.memory_space<vmem>>, %arg6: memref<1x128xf32, #tpu.memory_space<vmem>>, %arg7: memref<8x128xf32, #tpu.memory_space<vmem>>, %arg8: memref<1x8x128xf32, #tpu.memory_space<vmem>>) attributes {dimension_semantics = [#tpu.dimension_semantics<parallel>, #tpu.dimension_semantics<parallel>], iteration_bounds = array<i64: 2, 2>, scalar_prefetch = 0 : i64, scratch_operands = 0 : i64, tpu.core_type = #tpu.core_type<tc>, window_params = [{transform_indices = @transform_0, window_bounds = array<i64: 1, 8, 128>}, {transform_indices = @transform_1, window_bounds = array<i64: 1, 8, 128>}, {transform_indices = @transform_2, window_bounds = array<i64: 1, 8, 128>}, {pipeline_mode = #tpu.pipeline_mode<synchronous>, transform_indices = @transform_3, window_bounds = array<i64: 3, 128, 128>}, {pipeline_mode = #tpu.pipeline_mode<synchronous>, transform_indices = @transform_4, window_bounds = array<i64: 1, 128>}, {transform_indices = @transform_5, window_bounds = array<i64: 8, 128>}, {transform_indices = @transform_6, window_bounds = array<i64: 1, 8, 128>}]} {
    %c0 = arith.constant 0 : index
    %c0_0 = arith.constant 0 : index
    %c0_1 = arith.constant 0 : index
    %0 = vector.load %arg2[%c0, %c0_0, %c0_1] : memref<1x8x128xbf16, #tpu.memory_space<vmem>>, vector<1x8x128xbf16>
    %1 = vector.shape_cast %0 : vector<1x8x128xbf16> to vector<8x128xbf16>
    %c0_2 = arith.constant 0 : index
    %c0_3 = arith.constant 0 : index
    %c0_4 = arith.constant 0 : index
    %2 = vector.load %arg5[%c0_2, %c0_3, %c0_4] : memref<3x128x128xbf16, #tpu.memory_space<vmem>>, vector<1x128x128xbf16>
    %3 = vector.shape_cast %2 : vector<1x128x128xbf16> to vector<128x128xbf16>
    %cst = arith.constant dense<0.000000e+00> : vector<8x128xf32>
    %4 = tpu.matmul %1, %3, %cst {dimension_numbers = #tpu.dot_dimension_numbers<[1], [0], [0], [1], [0, 0, 1, 1], [], []>} : vector<8x128xbf16>, vector<128x128xbf16>, vector<8x128xf32> -> vector<8x128xf32>
    %c0_5 = arith.constant 0 : index
    %c0_6 = arith.constant 0 : index
    %c0_7 = arith.constant 0 : index
    %5 = vector.load %arg3[%c0_5, %c0_6, %c0_7] : memref<1x8x128xbf16, #tpu.memory_space<vmem>>, vector<1x8x128xbf16>
    %6 = vector.shape_cast %5 : vector<1x8x128xbf16> to vector<8x128xbf16>
    %c1 = arith.constant 1 : index
    %c0_8 = arith.constant 0 : index
    %c0_9 = arith.constant 0 : index
    %7 = vector.load %arg5[%c1, %c0_8, %c0_9] : memref<3x128x128xbf16, #tpu.memory_space<vmem>>, vector<1x128x128xbf16>
    %8 = vector.shape_cast %7 : vector<1x128x128xbf16> to vector<128x128xbf16>
    %cst_10 = arith.constant dense<0.000000e+00> : vector<8x128xf32>
    %9 = tpu.matmul %6, %8, %cst_10 {dimension_numbers = #tpu.dot_dimension_numbers<[1], [0], [0], [1], [0, 0, 1, 1], [], []>} : vector<8x128xbf16>, vector<128x128xbf16>, vector<8x128xf32> -> vector<8x128xf32>
    %10 = arith.addf %4, %9 : vector<8x128xf32>
    %c0_11 = arith.constant 0 : index
    %c0_12 = arith.constant 0 : index
    %c0_13 = arith.constant 0 : index
    %11 = vector.load %arg4[%c0_11, %c0_12, %c0_13] : memref<1x8x128xbf16, #tpu.memory_space<vmem>>, vector<1x8x128xbf16>
    %12 = vector.shape_cast %11 : vector<1x8x128xbf16> to vector<8x128xbf16>
    %c2 = arith.constant 2 : index
    %c0_14 = arith.constant 0 : index
    %c0_15 = arith.constant 0 : index
    %13 = vector.load %arg5[%c2, %c0_14, %c0_15] : memref<3x128x128xbf16, #tpu.memory_space<vmem>>, vector<1x128x128xbf16>
    %14 = vector.shape_cast %13 : vector<1x128x128xbf16> to vector<128x128xbf16>
    %cst_16 = arith.constant dense<0.000000e+00> : vector<8x128xf32>
    %15 = tpu.matmul %12, %14, %cst_16 {dimension_numbers = #tpu.dot_dimension_numbers<[1], [0], [0], [1], [0, 0, 1, 1], [], []>} : vector<8x128xbf16>, vector<128x128xbf16>, vector<8x128xf32> -> vector<8x128xf32>
    %16 = arith.addf %10, %15 : vector<8x128xf32>
    %c0_17 = arith.constant 0 : index
    %c0_18 = arith.constant 0 : index
    %17 = vector.load %arg6[%c0_17, %c0_18] : memref<1x128xf32, #tpu.memory_space<vmem>>, vector<1x128xf32>
    %18 = vector.broadcast %17 : vector<1x128xf32> to vector<8x128xf32>
    %19 = arith.addf %16, %18 : vector<8x128xf32>
    %cst_19 = arith.constant 5.000000e-01 : f32
    %20 = vector.broadcast %cst_19 : f32 to vector<8x128xf32>
    %21 = arith.mulf %20, %19 : vector<8x128xf32>
    %cst_20 = arith.constant 0.707106769 : f32
    %22 = vector.broadcast %cst_20 : f32 to vector<8x128xf32>
    %23 = arith.mulf %19, %22 : vector<8x128xf32>
    %24 = math.erf %23 : vector<8x128xf32>
    %cst_21 = arith.constant 1.000000e+00 : f32
    %25 = vector.broadcast %cst_21 : f32 to vector<8x128xf32>
    %26 = arith.addf %25, %24 : vector<8x128xf32>
    %27 = arith.mulf %21, %26 : vector<8x128xf32>
    %c0_22 = arith.constant 0 : index
    %c0_23 = arith.constant 0 : index
    %28 = vector.load %arg7[%c0_22, %c0_23] : memref<8x128xf32, #tpu.memory_space<vmem>>, vector<8x128xf32>
    %29 = arith.addf %27, %28 : vector<8x128xf32>
    %c0_24 = arith.constant 0 : index
    %c0_25 = arith.constant 0 : index
    %c0_26 = arith.constant 0 : index
    %30 = vector.load %arg8[%c0_24, %c0_25, %c0_26] : memref<1x8x128xf32, #tpu.memory_space<vmem>>, vector<1x8x128xf32>
    %31 = vector.shape_cast %30 : vector<1x8x128xf32> to vector<8x128xf32>
    %32 = vector.shape_cast %29 : vector<8x128xf32> to vector<1x8x128xf32>
    tpu.vector_store %arg8[%c0_24, %c0_25, %c0_26], %32 {strides = array<i32>} : memref<1x8x128xf32, #tpu.memory_space<vmem>>, vector<1x8x128xf32>,
    return
  }
  func.func @transform_0(%arg0: i32, %arg1: i32) -> (i32, i32, i32) {
    %c0_i32 = arith.constant 0 : i32
    %c0_i32_0 = arith.constant 0 : i32
    return %arg0, %arg1, %c0_i32 : i32, i32, i32
  }
  func.func @transform_1(%arg0: i32, %arg1: i32) -> (i32, i32, i32) {
    %c0_i32 = arith.constant 0 : i32
    %c0_i32_0 = arith.constant 0 : i32
    return %arg0, %arg1, %c0_i32 : i32, i32, i32
  }
  func.func @transform_2(%arg0: i32, %arg1: i32) -> (i32, i32, i32) {
    %c0_i32 = arith.constant 0 : i32
    %c0_i32_0 = arith.constant 0 : i32
    return %arg0, %arg1, %c0_i32 : i32, i32, i32
  }
  func.func @transform_3(%arg0: i32, %arg1: i32) -> (i32, i32, i32) {
    %c0_i32 = arith.constant 0 : i32
    %c0_i32_0 = arith.constant 0 : i32
    %c0_i32_1 = arith.constant 0 : i32
    %c0_i32_2 = arith.constant 0 : i32
    return %c0_i32, %c0_i32_0, %c0_i32_1 : i32, i32, i32
  }
  func.func @transform_4(%arg0: i32, %arg1: i32) -> (i32, i32) {
    %c0_i32 = arith.constant 0 : i32
    %c0_i32_0 = arith.constant 0 : i32
    %c0_i32_1 = arith.constant 0 : i32
    return %c0_i32, %c0_i32_0 : i32, i32
  }
  func.func @transform_5(%arg0: i32, %arg1: i32) -> (i32, i32) {
    %c0_i32 = arith.constant 0 : i32
    %c0_i32_0 = arith.constant 0 : i32
    return %arg1, %c0_i32 : i32, i32
  }
  func.func @transform_6(%arg0: i32, %arg1: i32) -> (i32, i32, i32) {
    %c0_i32 = arith.constant 0 : i32
    %c0_i32_0 = arith.constant 0 : i32
    return %arg0, %arg1, %c0_i32 : i32, i32, i32
  }
}

module attributes {stable_mosaic.version = 11 : i64} {
  func.func @_attn_kernel(%arg0: i32, %arg1: i32, %arg2: memref<1x8x128xf32, #tpu.memory_space<vmem>>, %arg3: memref<1x8x128xbf16, #tpu.memory_space<vmem>>, %arg4: memref<1x16x128xbf16, #tpu.memory_space<vmem>>, %arg5: memref<1x16x128xbf16, #tpu.memory_space<vmem>>, %arg6: memref<128x128xbf16, #tpu.memory_space<vmem>>, %arg7: memref<1x128xf32, #tpu.memory_space<vmem>>, %arg8: memref<1x8x128xf32, #tpu.memory_space<vmem>>) attributes {dimension_semantics = [#tpu.dimension_semantics<parallel>, #tpu.dimension_semantics<parallel>], iteration_bounds = array<i64: 2, 2>, scalar_prefetch = 0 : i64, scratch_operands = 0 : i64, tpu.core_type = #tpu.core_type<tc>, window_params = [{transform_indices = @transform_0, window_bounds = array<i64: 1, 8, 128>}, {transform_indices = @transform_1, window_bounds = array<i64: 1, 8, 128>}, {transform_indices = @transform_2, window_bounds = array<i64: 1, 16, 128>}, {transform_indices = @transform_3, window_bounds = array<i64: 1, 16, 128>}, {pipeline_mode = #tpu.pipeline_mode<synchronous>, transform_indices = @transform_4, window_bounds = array<i64: 128, 128>}, {pipeline_mode = #tpu.pipeline_mode<synchronous>, transform_indices = @transform_5, window_bounds = array<i64: 1, 128>}, {transform_indices = @transform_6, window_bounds = array<i64: 1, 8, 128>}]} {
    %c0 = arith.constant 0 : index
    %c0_0 = arith.constant 0 : index
    %c0_1 = arith.constant 0 : index
    %0 = vector.load %arg3[%c0, %c0_0, %c0_1] : memref<1x8x128xbf16, #tpu.memory_space<vmem>>, vector<1x8x128xbf16>
    %1 = vector.shape_cast %0 : vector<1x8x128xbf16> to vector<8x128xbf16>
    %2 = vector.shape_cast %1 : vector<8x128xbf16> to vector<8x4x32xbf16>
    %3 = tpu.transpose %2, [1, 0, 2] : vector<8x4x32xbf16> -> vector<4x8x32xbf16>
    %cst = arith.constant 0xFF800000 : f32
    %4 = vector.broadcast %cst : f32 to vector<4x8x1xf32>
    %cst_2 = arith.constant 0.000000e+00 : f32
    %5 = vector.broadcast %cst_2 : f32 to vector<4x8x1xf32>
    %cst_3 = arith.constant 0.000000e+00 : f32
    %6 = vector.broadcast %cst_3 : f32 to vector<4x8x32xf32>
    %c0_4 = arith.constant 0 : index
    %c0_5 = arith.constant 0 : index
    %c0_6 = arith.constant 0 : index
    %7 = vector.load %arg4[%c0_4, %c0_5, %c0_6] : memref<1x16x128xbf16, #tpu.memory_space<vmem>>, vector<1x8x128xbf16>
    %8 = vector.shape_cast %7 : vector<1x8x128xbf16> to vector<8x128xbf16>
    %9 = vector.shape_cast %8 : vector<8x128xbf16> to vector<8x4x32xbf16>
    %c0_7 = arith.constant 0 : index
    %c0_8 = arith.constant 0 : index
    %c0_9 = arith.constant 0 : index
    %10 = vector.load %arg5[%c0_7, %c0_8, %c0_9] : memref<1x16x128xbf16, #tpu.memory_space<vmem>>, vector<1x8x128xbf16>
    %11 = vector.shape_cast %10 : vector<1x8x128xbf16> to vector<8x128xbf16>
    %12 = vector.shape_cast %11 : vector<8x128xbf16> to vector<8x4x32xbf16>
    "tpu.trace_start"() <{level = 10 : i32, message = "hqd,khd->hqk"}> : () -> ()
    %cst_10 = arith.constant dense<0.000000e+00> : vector<4x8x8xf32>
    %13 = tpu.matmul %3, %9, %cst_10 {dimension_numbers = #tpu.dot_dimension_numbers<[2], [2], [1], [0], [0, 0, 0, 1, 1, 0], [0], [1]>} : vector<4x8x32xbf16>, vector<8x4x32xbf16>, vector<4x8x8xf32> -> vector<4x8x8xf32>
    "tpu.trace_stop"() : () -> ()
    %cst_11 = arith.constant dense<0xFF800000> : vector<4x8xf32>
    %14 = vector.multi_reduction <maximumf>, %13, %cst_11 [2] : vector<4x8x8xf32> to vector<4x8xf32>
    %15 = vector.shape_cast %14 : vector<4x8xf32> to vector<4x8x1xf32>
    %16 = arith.maximumf %4, %15 : vector<4x8x1xf32>
    %17 = arith.subf %4, %16 : vector<4x8x1xf32>
    %18 = math.exp %17 : vector<4x8x1xf32>
    %19 = vector.broadcast %16 : vector<4x8x1xf32> to vector<4x8x8xf32>
    %20 = arith.subf %13, %19 : vector<4x8x8xf32>
    %21 = arith.truncf %20 : vector<4x8x8xf32> to vector<4x8x8xbf16>
    %22 = math.exp %21 : vector<4x8x8xbf16>
    %23 = arith.mulf %18, %5 : vector<4x8x1xf32>
    %24 = arith.extf %22 : vector<4x8x8xbf16> to vector<4x8x8xf32>
    %cst_12 = arith.constant dense<0.000000e+00> : vector<4x8xf32>
    %25 = vector.multi_reduction <add>, %24, %cst_12 [2] : vector<4x8x8xf32> to vector<4x8xf32>
    %26 = vector.shape_cast %25 : vector<4x8xf32> to vector<4x8x1xf32>
    %27 = arith.addf %23, %26 : vector<4x8x1xf32>
    "tpu.trace_start"() <{level = 10 : i32, message = "hqk,khd->hqd"}> : () -> ()
    %cst_13 = arith.constant dense<0.000000e+00> : vector<4x8x32xf32>
    %28 = tpu.matmul %22, %12, %cst_13 {dimension_numbers = #tpu.dot_dimension_numbers<[2], [0], [1], [2], [0, 0, 0, 1, 1, 2], [0], [1]>} : vector<4x8x8xbf16>, vector<8x4x32xbf16>, vector<4x8x32xf32> -> vector<4x8x32xf32>
    "tpu.trace_stop"() : () -> ()
    %29 = vector.broadcast %18 : vector<4x8x1xf32> to vector<4x8x32xf32>
    %30 = arith.mulf %29, %6 : vector<4x8x32xf32>
    %31 = arith.addf %30, %28 : vector<4x8x32xf32>
    %c0_14 = arith.constant 0 : index
    %c8 = arith.constant 8 : index
    %c0_15 = arith.constant 0 : index
    %32 = vector.load %arg4[%c0_14, %c8, %c0_15] : memref<1x16x128xbf16, #tpu.memory_space<vmem>>, vector<1x8x128xbf16>
    %33 = vector.shape_cast %32 : vector<1x8x128xbf16> to vector<8x128xbf16>
    %34 = vector.shape_cast %33 : vector<8x128xbf16> to vector<8x4x32xbf16>
    %c0_16 = arith.constant 0 : index
    %c8_17 = arith.constant 8 : index
    %c0_18 = arith.constant 0 : index
    %35 = vector.load %arg5[%c0_16, %c8_17, %c0_18] : memref<1x16x128xbf16, #tpu.memory_space<vmem>>, vector<1x8x128xbf16>
    %36 = vector.shape_cast %35 : vector<1x8x128xbf16> to vector<8x128xbf16>
    %37 = vector.shape_cast %36 : vector<8x128xbf16> to vector<8x4x32xbf16>
    "tpu.trace_start"() <{level = 10 : i32, message = "hqd,khd->hqk"}> : () -> ()
    %cst_19 = arith.constant dense<0.000000e+00> : vector<4x8x8xf32>
    %38 = tpu.matmul %3, %34, %cst_19 {dimension_numbers = #tpu.dot_dimension_numbers<[2], [2], [1], [0], [0, 0, 0, 1, 1, 0], [0], [1]>} : vector<4x8x32xbf16>, vector<8x4x32xbf16>, vector<4x8x8xf32> -> vector<4x8x8xf32>
    "tpu.trace_stop"() : () -> ()
    %cst_20 = arith.constant dense<0xFF800000> : vector<4x8xf32>
    %39 = vector.multi_reduction <maximumf>, %38, %cst_20 [2] : vector<4x8x8xf32> to vector<4x8xf32>
    %40 = vector.shape_cast %39 : vector<4x8xf32> to vector<4x8x1xf32>
    %41 = arith.maximumf %16, %40 : vector<4x8x1xf32>
    %42 = arith.subf %16, %41 : vector<4x8x1xf32>
    %43 = math.exp %42 : vector<4x8x1xf32>
    %44 = vector.broadcast %41 : vector<4x8x1xf32> to vector<4x8x8xf32>
    %45 = arith.subf %38, %44 : vector<4x8x8xf32>
    %46 = arith.truncf %45 : vector<4x8x8xf32> to vector<4x8x8xbf16>
    %47 = math.exp %46 : vector<4x8x8xbf16>
    %48 = arith.mulf %43, %27 : vector<4x8x1xf32>
    %49 = arith.extf %47 : vector<4x8x8xbf16> to vector<4x8x8xf32>
    %cst_21 = arith.constant dense<0.000000e+00> : vector<4x8xf32>
    %50 = vector.multi_reduction <add>, %49, %cst_21 [2] : vector<4x8x8xf32> to vector<4x8xf32>
    %51 = vector.shape_cast %50 : vector<4x8xf32> to vector<4x8x1xf32>
    %52 = arith.addf %48, %51 : vector<4x8x1xf32>
    "tpu.trace_start"() <{level = 10 : i32, message = "hqk,khd->hqd"}> : () -> ()
    %cst_22 = arith.constant dense<0.000000e+00> : vector<4x8x32xf32>
    %53 = tpu.matmul %47, %37, %cst_22 {dimension_numbers = #tpu.dot_dimension_numbers<[2], [0], [1], [2], [0, 0, 0, 1, 1, 2], [0], [1]>} : vector<4x8x8xbf16>, vector<8x4x32xbf16>, vector<4x8x32xf32> -> vector<4x8x32xf32>
    "tpu.trace_stop"() : () -> ()
    %54 = vector.broadcast %43 : vector<4x8x1xf32> to vector<4x8x32xf32>
    %55 = arith.mulf %54, %31 : vector<4x8x32xf32>
    %56 = arith.addf %55, %53 : vector<4x8x32xf32>
    %cst_23 = arith.constant 1.000000e+00 : f32
    %57 = vector.broadcast %cst_23 : f32 to vector<4x8x1xf32>
    %58 = arith.divf %57, %52 : vector<4x8x1xf32>
    %59 = vector.broadcast %58 : vector<4x8x1xf32> to vector<4x8x32xf32>
    %60 = arith.mulf %56, %59 : vector<4x8x32xf32>
    %61 = tpu.transpose %60, [1, 0, 2] : vector<4x8x32xf32> -> vector<8x4x32xf32>
    %62 = vector.shape_cast %61 : vector<8x4x32xf32> to vector<8x128xf32>
    %63 = arith.truncf %62 : vector<8x128xf32> to vector<8x128xbf16>
    %c0_24 = arith.constant 0 : index
    %c0_25 = arith.constant 0 : index
    %c0_26 = arith.constant 0 : index
    %64 = vector.load %arg2[%c0_24, %c0_25, %c0_26] : memref<1x8x128xf32, #tpu.memory_space<vmem>>, vector<1x8x128xf32>
    %65 = vector.shape_cast %64 : vector<1x8x128xf32> to vector<8x128xf32>
    %c0_27 = arith.constant 0 : index
    %c0_28 = arith.constant 0 : index
    %66 = vector.load %arg6[%c0_27, %c0_28] : memref<128x128xbf16, #tpu.memory_space<vmem>>, vector<128x128xbf16>
    %cst_29 = arith.constant dense<0.000000e+00> : vector<8x128xf32>
    %67 = tpu.matmul %63, %66, %cst_29 {dimension_numbers = #tpu.dot_dimension_numbers<[1], [0], [0], [1], [0, 0, 1, 1], [], []>} : vector<8x128xbf16>, vector<128x128xbf16>, vector<8x128xf32> -> vector<8x128xf32>
    %68 = arith.addf %65, %67 : vector<8x128xf32>
    %c0_30 = arith.constant 0 : index
    %c0_31 = arith.constant 0 : index
    %69 = vector.load %arg7[%c0_30, %c0_31] : memref<1x128xf32, #tpu.memory_space<vmem>>, vector<1x128xf32>
    %70 = vector.broadcast %69 : vector<1x128xf32> to vector<8x128xf32>
    %71 = arith.addf %68, %70 : vector<8x128xf32>
    %c0_32 = arith.constant 0 : index
    %c0_33 = arith.constant 0 : index
    %c0_34 = arith.constant 0 : index
    %72 = vector.load %arg8[%c0_32, %c0_33, %c0_34] : memref<1x8x128xf32, #tpu.memory_space<vmem>>, vector<1x8x128xf32>
    %73 = vector.shape_cast %72 : vector<1x8x128xf32> to vector<8x128xf32>
    %74 = vector.shape_cast %71 : vector<8x128xf32> to vector<1x8x128xf32>
    tpu.vector_store %arg8[%c0_32, %c0_33, %c0_34], %74 {strides = array<i32>} : memref<1x8x128xf32, #tpu.memory_space<vmem>>, vector<1x8x128xf32>,
    return
  }
  func.func @transform_0(%arg0: i32, %arg1: i32) -> (i32, i32, i32) {
    %c0_i32 = arith.constant 0 : i32
    %c0_i32_0 = arith.constant 0 : i32
    return %arg0, %arg1, %c0_i32 : i32, i32, i32
  }
  func.func @transform_1(%arg0: i32, %arg1: i32) -> (i32, i32, i32) {
    %c0_i32 = arith.constant 0 : i32
    %c0_i32_0 = arith.constant 0 : i32
    return %arg0, %arg1, %c0_i32 : i32, i32, i32
  }
  func.func @transform_2(%arg0: i32, %arg1: i32) -> (i32, i32, i32) {
    %c0_i32 = arith.constant 0 : i32
    %c0_i32_0 = arith.constant 0 : i32
    %c0_i32_1 = arith.constant 0 : i32
    return %arg0, %c0_i32, %c0_i32_0 : i32, i32, i32
  }
  func.func @transform_3(%arg0: i32, %arg1: i32) -> (i32, i32, i32) {
    %c0_i32 = arith.constant 0 : i32
    %c0_i32_0 = arith.constant 0 : i32
    %c0_i32_1 = arith.constant 0 : i32
    return %arg0, %c0_i32, %c0_i32_0 : i32, i32, i32
  }
  func.func @transform_4(%arg0: i32, %arg1: i32) -> (i32, i32) {
    %c0_i32 = arith.constant 0 : i32
    %c0_i32_0 = arith.constant 0 : i32
    %c0_i32_1 = arith.constant 0 : i32
    return %c0_i32, %c0_i32_0 : i32, i32
  }
  func.func @transform_5(%arg0: i32, %arg1: i32) -> (i32, i32) {
    %c0_i32 = arith.constant 0 : i32
    %c0_i32_0 = arith.constant 0 : i32
    %c0_i32_1 = arith.constant 0 : i32
    return %c0_i32, %c0_i32_0 : i32, i32
  }
  func.func @transform_6(%arg0: i32, %arg1: i32) -> (i32, i32, i32) {
    %c0_i32 = arith.constant 0 : i32
    %c0_i32_0 = arith.constant 0 : i32
    return %arg0, %arg1, %c0_i32 : i32, i32, i32
  }
}

module attributes {stable_mosaic.version = 11 : i64} {
  func.func @_qkv_kernel(%arg0: i32, %arg1: i32, %arg2: memref<1x8x128xf32, #tpu.memory_space<vmem>>, %arg3: memref<1x128xf32, #tpu.memory_space<vmem>>, %arg4: memref<1x128xf32, #tpu.memory_space<vmem>>, %arg5: memref<128x384xbf16, #tpu.memory_space<vmem>>, %arg6: memref<1x384xf32, #tpu.memory_space<vmem>>, %arg7: memref<1x8x128xbf16, #tpu.memory_space<vmem>>, %arg8: memref<1x8x128xbf16, #tpu.memory_space<vmem>>, %arg9: memref<1x8x128xbf16, #tpu.memory_space<vmem>>) attributes {dimension_semantics = [#tpu.dimension_semantics<parallel>, #tpu.dimension_semantics<parallel>], iteration_bounds = array<i64: 2, 2>, scalar_prefetch = 0 : i64, scratch_operands = 0 : i64, tpu.core_type = #tpu.core_type<tc>, window_params = [{transform_indices = @transform_0, window_bounds = array<i64: 1, 8, 128>}, {pipeline_mode = #tpu.pipeline_mode<synchronous>, transform_indices = @transform_1, window_bounds = array<i64: 1, 128>}, {pipeline_mode = #tpu.pipeline_mode<synchronous>, transform_indices = @transform_2, window_bounds = array<i64: 1, 128>}, {pipeline_mode = #tpu.pipeline_mode<synchronous>, transform_indices = @transform_3, window_bounds = array<i64: 128, 384>}, {pipeline_mode = #tpu.pipeline_mode<synchronous>, transform_indices = @transform_4, window_bounds = array<i64: 1, 384>}, {transform_indices = @transform_5, window_bounds = array<i64: 1, 8, 128>}, {transform_indices = @transform_6, window_bounds = array<i64: 1, 8, 128>}, {transform_indices = @transform_7, window_bounds = array<i64: 1, 8, 128>}]} {
    %c0 = arith.constant 0 : index
    %c0_0 = arith.constant 0 : index
    %c0_1 = arith.constant 0 : index
    %0 = vector.load %arg2[%c0, %c0_0, %c0_1] : memref<1x8x128xf32, #tpu.memory_space<vmem>>, vector<1x8x128xf32>
    %1 = vector.shape_cast %0 : vector<1x8x128xf32> to vector<8x128xf32>
    %c0_2 = arith.constant 0 : index
    %c0_3 = arith.constant 0 : index
    %2 = vector.load %arg3[%c0_2, %c0_3] : memref<1x128xf32, #tpu.memory_space<vmem>>, vector<1x128xf32>
    %c0_4 = arith.constant 0 : index
    %c0_5 = arith.constant 0 : index
    %3 = vector.load %arg4[%c0_4, %c0_5] : memref<1x128xf32, #tpu.memory_space<vmem>>, vector<1x128xf32>
    %cst = arith.constant dense<0.000000e+00> : vector<8xf32>
    %4 = vector.multi_reduction <add>, %1, %cst [1] : vector<8x128xf32> to vector<8xf32>
    %5 = vector.shape_cast %4 : vector<8xf32> to vector<8x1xf32>
    %cst_6 = arith.constant 1.280000e+02 : f32
    %6 = vector.broadcast %cst_6 : f32 to vector<8x1xf32>
    %7 = arith.divf %5, %6 : vector<8x1xf32>
    %8 = vector.broadcast %7 : vector<8x1xf32> to vector<8x128xf32>
    %9 = arith.subf %1, %8 : vector<8x128xf32>
    %10 = arith.mulf %9, %9 : vector<8x128xf32>
    %cst_7 = arith.constant dense<0.000000e+00> : vector<8xf32>
    %11 = vector.multi_reduction <add>, %10, %cst_7 [1] : vector<8x128xf32> to vector<8xf32>
    %12 = vector.shape_cast %11 : vector<8xf32> to vector<8x1xf32>
    %cst_8 = arith.constant 1.280000e+02 : f32
    %13 = vector.broadcast %cst_8 : f32 to vector<8x1xf32>
    %14 = arith.divf %12, %13 : vector<8x1xf32>
    %cst_9 = arith.constant 9.99999974E-6 : f32
    %15 = vector.broadcast %cst_9 : f32 to vector<8x1xf32>
    %16 = arith.addf %14, %15 : vector<8x1xf32>
    %17 = math.rsqrt %16 : vector<8x1xf32>
    %18 = vector.broadcast %17 : vector<8x1xf32> to vector<8x128xf32>
    %19 = arith.mulf %9, %18 : vector<8x128xf32>
    %20 = vector.broadcast %2 : vector<1x128xf32> to vector<8x128xf32>
    %21 = arith.mulf %19, %20 : vector<8x128xf32>
    %22 = vector.broadcast %3 : vector<1x128xf32> to vector<8x128xf32>
    %23 = arith.addf %21, %22 : vector<8x128xf32>
    %24 = arith.truncf %23 : vector<8x128xf32> to vector<8x128xbf16>
    %c0_10 = arith.constant 0 : index
    %c0_11 = arith.constant 0 : index
    %25 = vector.load %arg5[%c0_10, %c0_11] : memref<128x384xbf16, #tpu.memory_space<vmem>>, vector<128x384xbf16>
    %cst_12 = arith.constant dense<0.000000e+00> : vector<8x384xf32>
    %26 = tpu.matmul %24, %25, %cst_12 {dimension_numbers = #tpu.dot_dimension_numbers<[1], [0], [0], [1], [0, 0, 1, 1], [], []>} : vector<8x128xbf16>, vector<128x384xbf16>, vector<8x384xf32> -> vector<8x384xf32>
    %c0_13 = arith.constant 0 : index
    %c0_14 = arith.constant 0 : index
    %27 = vector.load %arg6[%c0_13, %c0_14] : memref<1x384xf32, #tpu.memory_space<vmem>>, vector<1x384xf32>
    %28 = vector.broadcast %27 : vector<1x384xf32> to vector<8x384xf32>
    %29 = arith.addf %26, %28 : vector<8x384xf32>
    %30 = vector.extract_strided_slice %29 {offsets = [0, 0], sizes = [8, 128], strides = [1, 1]} : vector<8x384xf32> to vector<8x128xf32>
    %cst_15 = arith.constant 0.176776692 : f32
    %31 = vector.broadcast %cst_15 : f32 to vector<8x128xf32>
    %32 = arith.mulf %30, %31 : vector<8x128xf32>
    %33 = arith.truncf %32 : vector<8x128xf32> to vector<8x128xbf16>
    %c0_16 = arith.constant 0 : index
    %c0_17 = arith.constant 0 : index
    %c0_18 = arith.constant 0 : index
    %34 = vector.load %arg7[%c0_16, %c0_17, %c0_18] : memref<1x8x128xbf16, #tpu.memory_space<vmem>>, vector<1x8x128xbf16>
    %35 = vector.shape_cast %34 : vector<1x8x128xbf16> to vector<8x128xbf16>
    %36 = vector.shape_cast %33 : vector<8x128xbf16> to vector<1x8x128xbf16>
    tpu.vector_store %arg7[%c0_16, %c0_17, %c0_18], %36 {strides = array<i32>} : memref<1x8x128xbf16, #tpu.memory_space<vmem>>, vector<1x8x128xbf16>,
    %37 = vector.extract_strided_slice %29 {offsets = [0, 128], sizes = [8, 128], strides = [1, 1]} : vector<8x384xf32> to vector<8x128xf32>
    %38 = arith.truncf %37 : vector<8x128xf32> to vector<8x128xbf16>
    %c0_19 = arith.constant 0 : index
    %c0_20 = arith.constant 0 : index
    %c0_21 = arith.constant 0 : index
    %39 = vector.load %arg8[%c0_19, %c0_20, %c0_21] : memref<1x8x128xbf16, #tpu.memory_space<vmem>>, vector<1x8x128xbf16>
    %40 = vector.shape_cast %39 : vector<1x8x128xbf16> to vector<8x128xbf16>
    %41 = vector.shape_cast %38 : vector<8x128xbf16> to vector<1x8x128xbf16>
    tpu.vector_store %arg8[%c0_19, %c0_20, %c0_21], %41 {strides = array<i32>} : memref<1x8x128xbf16, #tpu.memory_space<vmem>>, vector<1x8x128xbf16>,
    %42 = vector.extract_strided_slice %29 {offsets = [0, 256], sizes = [8, 128], strides = [1, 1]} : vector<8x384xf32> to vector<8x128xf32>
    %43 = arith.truncf %42 : vector<8x128xf32> to vector<8x128xbf16>
    %c0_22 = arith.constant 0 : index
    %c0_23 = arith.constant 0 : index
    %c0_24 = arith.constant 0 : index
    %44 = vector.load %arg9[%c0_22, %c0_23, %c0_24] : memref<1x8x128xbf16, #tpu.memory_space<vmem>>, vector<1x8x128xbf16>
    %45 = vector.shape_cast %44 : vector<1x8x128xbf16> to vector<8x128xbf16>
    %46 = vector.shape_cast %43 : vector<8x128xbf16> to vector<1x8x128xbf16>
    tpu.vector_store %arg9[%c0_22, %c0_23, %c0_24], %46 {strides = array<i32>} : memref<1x8x128xbf16, #tpu.memory_space<vmem>>, vector<1x8x128xbf16>,
    return
  }
  func.func @transform_0(%arg0: i32, %arg1: i32) -> (i32, i32, i32) {
    %c0_i32 = arith.constant 0 : i32
    %c0_i32_0 = arith.constant 0 : i32
    return %arg0, %arg1, %c0_i32 : i32, i32, i32
  }
  func.func @transform_1(%arg0: i32, %arg1: i32) -> (i32, i32) {
    %c0_i32 = arith.constant 0 : i32
    %c0_i32_0 = arith.constant 0 : i32
    %c0_i32_1 = arith.constant 0 : i32
    return %c0_i32, %c0_i32_0 : i32, i32
  }
  func.func @transform_2(%arg0: i32, %arg1: i32) -> (i32, i32) {
    %c0_i32 = arith.constant 0 : i32
    %c0_i32_0 = arith.constant 0 : i32
    %c0_i32_1 = arith.constant 0 : i32
    return %c0_i32, %c0_i32_0 : i32, i32
  }
  func.func @transform_3(%arg0: i32, %arg1: i32) -> (i32, i32) {
    %c0_i32 = arith.constant 0 : i32
    %c0_i32_0 = arith.constant 0 : i32
    %c0_i32_1 = arith.constant 0 : i32
    return %c0_i32, %c0_i32_0 : i32, i32
  }
  func.func @transform_4(%arg0: i32, %arg1: i32) -> (i32, i32) {
    %c0_i32 = arith.constant 0 : i32
    %c0_i32_0 = arith.constant 0 : i32
    %c0_i32_1 = arith.constant 0 : i32
    return %c0_i32, %c0_i32_0 : i32, i32
  }
  func.func @transform_5(%arg0: i32, %arg1: i32) -> (i32, i32, i32) {
    %c0_i32 = arith.constant 0 : i32
    %c0_i32_0 = arith.constant 0 : i32
    return %arg0, %arg1, %c0_i32 : i32, i32, i32
  }
  func.func @transform_6(%arg0: i32, %arg1: i32) -> (i32, i32, i32) {
    %c0_i32 = arith.constant 0 : i32
    %c0_i32_0 = arith.constant 0 : i32
    return %arg0, %arg1, %c0_i32 : i32, i32, i32
  }
  func.func @transform_7(%arg0: i32, %arg1: i32) -> (i32, i32, i32) {
    %c0_i32 = arith.constant 0 : i32
    %c0_i32_0 = arith.constant 0 : i32
    return %arg0, %arg1, %c0_i32 : i32, i32, i32
  }
}

module attributes {stable_mosaic.version = 11 : i64} {
  func.func @_ffn_kernel(%arg0: i32, %arg1: i32, %arg2: i32, %arg3: memref<1x8x128xf32, #tpu.memory_space<vmem>>, %arg4: memref<1x128xf32, #tpu.memory_space<vmem>>, %arg5: memref<1x128xf32, #tpu.memory_space<vmem>>, %arg6: memref<128x128xbf16, #tpu.memory_space<vmem>>, %arg7: memref<1x128xf32, #tpu.memory_space<vmem>>, %arg8: memref<128x128xbf16, #tpu.memory_space<vmem>>, %arg9: memref<1x128xf32, #tpu.memory_space<vmem>>, %arg10: memref<1x128xf32, #tpu.memory_space<vmem>>, %arg11: memref<1x128xf32, #tpu.memory_space<vmem>>, %arg12: memref<1x8x128xf32, #tpu.memory_space<vmem>>, %arg13: memref<8x128xbf16, #tpu.memory_space<vmem>>, %arg14: memref<8x128xf32, #tpu.memory_space<vmem>>) attributes {dimension_semantics = [#tpu.dimension_semantics<parallel>, #tpu.dimension_semantics<parallel>, #tpu.dimension_semantics<arbitrary>], iteration_bounds = array<i64: 2, 2, 2>, scalar_prefetch = 0 : i64, scratch_operands = 2 : i64, tpu.core_type = #tpu.core_type<tc>, window_params = [{transform_indices = @transform_0, window_bounds = array<i64: 1, 8, 128>}, {pipeline_mode = #tpu.pipeline_mode<synchronous>, transform_indices = @transform_1, window_bounds = array<i64: 1, 128>}, {pipeline_mode = #tpu.pipeline_mode<synchronous>, transform_indices = @transform_2, window_bounds = array<i64: 1, 128>}, {transform_indices = @transform_3, window_bounds = array<i64: 128, 128>}, {transform_indices = @transform_4, window_bounds = array<i64: 1, 128>}, {transform_indices = @transform_5, window_bounds = array<i64: 128, 128>}, {pipeline_mode = #tpu.pipeline_mode<synchronous>, transform_indices = @transform_6, window_bounds = array<i64: 1, 128>}, {pipeline_mode = #tpu.pipeline_mode<synchronous>, transform_indices = @transform_7, window_bounds = array<i64: 1, 128>}, {pipeline_mode = #tpu.pipeline_mode<synchronous>, transform_indices = @transform_8, window_bounds = array<i64: 1, 128>}, {transform_indices = @transform_9, window_bounds = array<i64: 1, 8, 128>}]} {
    %c0_i32 = arith.constant 0 : i32
    %0 = arith.cmpi eq, %arg2, %c0_i32 : i32
    %1 = arith.extui %0 : i1 to i32
    %c0_i32_0 = arith.constant 0 : i32
    %2 = arith.cmpi ne, %1, %c0_i32_0 : i32
    scf.if %2 {
      %c0_17 = arith.constant 0 : index
      %c0_18 = arith.constant 0 : index
      %c0_19 = arith.constant 0 : index
      %26 = vector.load %arg3[%c0_17, %c0_18, %c0_19] : memref<1x8x128xf32, #tpu.memory_space<vmem>>, vector<1x8x128xf32>
      %27 = vector.shape_cast %26 : vector<1x8x128xf32> to vector<8x128xf32>
      %c0_20 = arith.constant 0 : index
      %c0_21 = arith.constant 0 : index
      %28 = vector.load %arg4[%c0_20, %c0_21] : memref<1x128xf32, #tpu.memory_space<vmem>>, vector<1x128xf32>
      %c0_22 = arith.constant 0 : index
      %c0_23 = arith.constant 0 : index
      %29 = vector.load %arg5[%c0_22, %c0_23] : memref<1x128xf32, #tpu.memory_space<vmem>>, vector<1x128xf32>
      %cst_24 = arith.constant dense<0.000000e+00> : vector<8xf32>
      %30 = vector.multi_reduction <add>, %27, %cst_24 [1] : vector<8x128xf32> to vector<8xf32>
      %31 = vector.shape_cast %30 : vector<8xf32> to vector<8x1xf32>
      %cst_25 = arith.constant 1.280000e+02 : f32
      %32 = vector.broadcast %cst_25 : f32 to vector<8x1xf32>
      %33 = arith.divf %31, %32 : vector<8x1xf32>
      %34 = vector.broadcast %33 : vector<8x1xf32> to vector<8x128xf32>
      %35 = arith.subf %27, %34 : vector<8x128xf32>
      %36 = arith.mulf %35, %35 : vector<8x128xf32>
      %cst_26 = arith.constant dense<0.000000e+00> : vector<8xf32>
      %37 = vector.multi_reduction <add>, %36, %cst_26 [1] : vector<8x128xf32> to vector<8xf32>
      %38 = vector.shape_cast %37 : vector<8xf32> to vector<8x1xf32>
      %cst_27 = arith.constant 1.280000e+02 : f32
      %39 = vector.broadcast %cst_27 : f32 to vector<8x1xf32>
      %40 = arith.divf %38, %39 : vector<8x1xf32>
      %cst_28 = arith.constant 9.99999974E-6 : f32
      %41 = vector.broadcast %cst_28 : f32 to vector<8x1xf32>
      %42 = arith.addf %40, %41 : vector<8x1xf32>
      %43 = math.rsqrt %42 : vector<8x1xf32>
      %44 = vector.broadcast %43 : vector<8x1xf32> to vector<8x128xf32>
      %45 = arith.mulf %35, %44 : vector<8x128xf32>
      %46 = vector.broadcast %28 : vector<1x128xf32> to vector<8x128xf32>
      %47 = arith.mulf %45, %46 : vector<8x128xf32>
      %48 = vector.broadcast %29 : vector<1x128xf32> to vector<8x128xf32>
      %49 = arith.addf %47, %48 : vector<8x128xf32>
      %50 = arith.truncf %49 : vector<8x128xf32> to vector<8x128xbf16>
      %c0_29 = arith.constant 0 : index
      %c0_30 = arith.constant 0 : index
      %51 = vector.load %arg13[%c0_29, %c0_30] : memref<8x128xbf16, #tpu.memory_space<vmem>>, vector<8x128xbf16>
      tpu.vector_store %arg13[%c0_29, %c0_30], %50 {strides = array<i32>} : memref<8x128xbf16, #tpu.memory_space<vmem>>, vector<8x128xbf16>,
      %cst_31 = arith.constant 0.000000e+00 : f32
      %52 = vector.broadcast %cst_31 : f32 to vector<8x128xf32>
      %c0_32 = arith.constant 0 : index
      %c0_33 = arith.constant 0 : index
      %53 = vector.load %arg14[%c0_32, %c0_33] : memref<8x128xf32, #tpu.memory_space<vmem>>, vector<8x128xf32>
      tpu.vector_store %arg14[%c0_32, %c0_33], %52 {strides = array<i32>} : memref<8x128xf32, #tpu.memory_space<vmem>>, vector<8x128xf32>,
    } else {
    }
    %c0 = arith.constant 0 : index
    %c0_1 = arith.constant 0 : index
    %3 = vector.load %arg13[%c0, %c0_1] : memref<8x128xbf16, #tpu.memory_space<vmem>>, vector<8x128xbf16>
    %c0_2 = arith.constant 0 : index
    %c0_3 = arith.constant 0 : index
    %4 = vector.load %arg6[%c0_2, %c0_3] : memref<128x128xbf16, #tpu.memory_space<vmem>>, vector<128x128xbf16>
    %cst = arith.constant dense<0.000000e+00> : vector<8x128xf32>
    %5 = tpu.matmul %3, %4, %cst {dimension_numbers = #tpu.dot_dimension_numbers<[1], [0], [0], [1], [0, 0, 1, 1], [], []>} : vector<8x128xbf16>, vector<128x128xbf16>, vector<8x128xf32> -> vector<8x128xf32>
    %c0_4 = arith.constant 0 : index
    %c0_5 = arith.constant 0 : index
    %6 = vector.load %arg7[%c0_4, %c0_5] : memref<1x128xf32, #tpu.memory_space<vmem>>, vector<1x128xf32>
    %7 = vector.broadcast %6 : vector<1x128xf32> to vector<8x128xf32>
    %8 = arith.addf %5, %7 : vector<8x128xf32>
    %cst_6 = arith.constant 5.000000e-01 : f32
    %9 = vector.broadcast %cst_6 : f32 to vector<8x128xf32>
    %10 = arith.mulf %9, %8 : vector<8x128xf32>
    %cst_7 = arith.constant 0.707106769 : f32
    %11 = vector.broadcast %cst_7 : f32 to vector<8x128xf32>
    %12 = arith.mulf %8, %11 : vector<8x128xf32>
    %13 = math.erf %12 : vector<8x128xf32>
    %cst_8 = arith.constant 1.000000e+00 : f32
    %14 = vector.broadcast %cst_8 : f32 to vector<8x128xf32>
    %15 = arith.addf %14, %13 : vector<8x128xf32>
    %16 = arith.mulf %10, %15 : vector<8x128xf32>
    %c0_9 = arith.constant 0 : index
    %c0_10 = arith.constant 0 : index
    %17 = vector.load %arg14[%c0_9, %c0_10] : memref<8x128xf32, #tpu.memory_space<vmem>>, vector<8x128xf32>
    %18 = arith.truncf %16 : vector<8x128xf32> to vector<8x128xbf16>
    %c0_11 = arith.constant 0 : index
    %c0_12 = arith.constant 0 : index
    %19 = vector.load %arg8[%c0_11, %c0_12] : memref<128x128xbf16, #tpu.memory_space<vmem>>, vector<128x128xbf16>
    %cst_13 = arith.constant dense<0.000000e+00> : vector<8x128xf32>
    %20 = tpu.matmul %18, %19, %cst_13 {dimension_numbers = #tpu.dot_dimension_numbers<[1], [0], [0], [1], [0, 0, 1, 1], [], []>} : vector<8x128xbf16>, vector<128x128xbf16>, vector<8x128xf32> -> vector<8x128xf32>
    %21 = arith.addf %17, %20 : vector<8x128xf32>
    %c0_14 = arith.constant 0 : index
    %c0_15 = arith.constant 0 : index
    %22 = vector.load %arg14[%c0_14, %c0_15] : memref<8x128xf32, #tpu.memory_space<vmem>>, vector<8x128xf32>
    tpu.vector_store %arg14[%c0_14, %c0_15], %21 {strides = array<i32>} : memref<8x128xf32, #tpu.memory_space<vmem>>, vector<8x128xf32>,
    %c1_i32 = arith.constant 1 : i32
    %23 = arith.cmpi eq, %arg2, %c1_i32 : i32
    %24 = arith.extui %23 : i1 to i32
    %c0_i32_16 = arith.constant 0 : i32
    %25 = arith.cmpi ne, %24, %c0_i32_16 : i32
    scf.if %25 {
      %c0_17 = arith.constant 0 : index
      %c0_18 = arith.constant 0 : index
      %c0_19 = arith.constant 0 : index
      %26 = vector.load %arg3[%c0_17, %c0_18, %c0_19] : memref<1x8x128xf32, #tpu.memory_space<vmem>>, vector<1x8x128xf32>
      %27 = vector.shape_cast %26 : vector<1x8x128xf32> to vector<8x128xf32>
      %c0_20 = arith.constant 0 : index
      %c0_21 = arith.constant 0 : index
      %28 = vector.load %arg14[%c0_20, %c0_21] : memref<8x128xf32, #tpu.memory_space<vmem>>, vector<8x128xf32>
      %29 = arith.addf %27, %28 : vector<8x128xf32>
      %c0_22 = arith.constant 0 : index
      %c0_23 = arith.constant 0 : index
      %30 = vector.load %arg9[%c0_22, %c0_23] : memref<1x128xf32, #tpu.memory_space<vmem>>, vector<1x128xf32>
      %31 = vector.broadcast %30 : vector<1x128xf32> to vector<8x128xf32>
      %32 = arith.addf %29, %31 : vector<8x128xf32>
      %c0_24 = arith.constant 0 : index
      %c0_25 = arith.constant 0 : index
      %33 = vector.load %arg10[%c0_24, %c0_25] : memref<1x128xf32, #tpu.memory_space<vmem>>, vector<1x128xf32>
      %c0_26 = arith.constant 0 : index
      %c0_27 = arith.constant 0 : index
      %34 = vector.load %arg11[%c0_26, %c0_27] : memref<1x128xf32, #tpu.memory_space<vmem>>, vector<1x128xf32>
      %cst_28 = arith.constant dense<0.000000e+00> : vector<8xf32>
      %35 = vector.multi_reduction <add>, %32, %cst_28 [1] : vector<8x128xf32> to vector<8xf32>
      %36 = vector.shape_cast %35 : vector<8xf32> to vector<8x1xf32>
      %cst_29 = arith.constant 1.280000e+02 : f32
      %37 = vector.broadcast %cst_29 : f32 to vector<8x1xf32>
      %38 = arith.divf %36, %37 : vector<8x1xf32>
      %39 = vector.broadcast %38 : vector<8x1xf32> to vector<8x128xf32>
      %40 = arith.subf %32, %39 : vector<8x128xf32>
      %41 = arith.mulf %40, %40 : vector<8x128xf32>
      %cst_30 = arith.constant dense<0.000000e+00> : vector<8xf32>
      %42 = vector.multi_reduction <add>, %41, %cst_30 [1] : vector<8x128xf32> to vector<8xf32>
      %43 = vector.shape_cast %42 : vector<8xf32> to vector<8x1xf32>
      %cst_31 = arith.constant 1.280000e+02 : f32
      %44 = vector.broadcast %cst_31 : f32 to vector<8x1xf32>
      %45 = arith.divf %43, %44 : vector<8x1xf32>
      %cst_32 = arith.constant 9.99999974E-6 : f32
      %46 = vector.broadcast %cst_32 : f32 to vector<8x1xf32>
      %47 = arith.addf %45, %46 : vector<8x1xf32>
      %48 = math.rsqrt %47 : vector<8x1xf32>
      %49 = vector.broadcast %48 : vector<8x1xf32> to vector<8x128xf32>
      %50 = arith.mulf %40, %49 : vector<8x128xf32>
      %51 = vector.broadcast %33 : vector<1x128xf32> to vector<8x128xf32>
      %52 = arith.mulf %50, %51 : vector<8x128xf32>
      %53 = vector.broadcast %34 : vector<1x128xf32> to vector<8x128xf32>
      %54 = arith.addf %52, %53 : vector<8x128xf32>
      %c0_33 = arith.constant 0 : index
      %c0_34 = arith.constant 0 : index
      %c0_35 = arith.constant 0 : index
      %55 = vector.load %arg12[%c0_33, %c0_34, %c0_35] : memref<1x8x128xf32, #tpu.memory_space<vmem>>, vector<1x8x128xf32>
      %56 = vector.shape_cast %55 : vector<1x8x128xf32> to vector<8x128xf32>
      %57 = vector.shape_cast %54 : vector<8x128xf32> to vector<1x8x128xf32>
      tpu.vector_store %arg12[%c0_33, %c0_34, %c0_35], %57 {strides = array<i32>} : memref<1x8x128xf32, #tpu.memory_space<vmem>>, vector<1x8x128xf32>,
    } else {
    }
    return
  }
  func.func @transform_0(%arg0: i32, %arg1: i32, %arg2: i32) -> (i32, i32, i32) {
    %c0_i32 = arith.constant 0 : i32
    %c0_i32_0 = arith.constant 0 : i32
    return %arg0, %arg1, %c0_i32 : i32, i32, i32
  }
  func.func @transform_1(%arg0: i32, %arg1: i32, %arg2: i32) -> (i32, i32) {
    %c0_i32 = arith.constant 0 : i32
    %c0_i32_0 = arith.constant 0 : i32
    %c0_i32_1 = arith.constant 0 : i32
    return %c0_i32, %c0_i32_0 : i32, i32
  }
  func.func @transform_2(%arg0: i32, %arg1: i32, %arg2: i32) -> (i32, i32) {
    %c0_i32 = arith.constant 0 : i32
    %c0_i32_0 = arith.constant 0 : i32
    %c0_i32_1 = arith.constant 0 : i32
    return %c0_i32, %c0_i32_0 : i32, i32
  }
  func.func @transform_3(%arg0: i32, %arg1: i32, %arg2: i32) -> (i32, i32) {
    %c0_i32 = arith.constant 0 : i32
    %c0_i32_0 = arith.constant 0 : i32
    return %c0_i32, %arg2 : i32, i32
  }
  func.func @transform_4(%arg0: i32, %arg1: i32, %arg2: i32) -> (i32, i32) {
    %c0_i32 = arith.constant 0 : i32
    %c0_i32_0 = arith.constant 0 : i32
    return %c0_i32, %arg2 : i32, i32
  }
  func.func @transform_5(%arg0: i32, %arg1: i32, %arg2: i32) -> (i32, i32) {
    %c0_i32 = arith.constant 0 : i32
    %c0_i32_0 = arith.constant 0 : i32
    return %arg2, %c0_i32 : i32, i32
  }
  func.func @transform_6(%arg0: i32, %arg1: i32, %arg2: i32) -> (i32, i32) {
    %c0_i32 = arith.constant 0 : i32
    %c0_i32_0 = arith.constant 0 : i32
    %c0_i32_1 = arith.constant 0 : i32
    return %c0_i32, %c0_i32_0 : i32, i32
  }
  func.func @transform_7(%arg0: i32, %arg1: i32, %arg2: i32) -> (i32, i32) {
    %c0_i32 = arith.constant 0 : i32
    %c0_i32_0 = arith.constant 0 : i32
    %c0_i32_1 = arith.constant 0 : i32
    return %c0_i32, %c0_i32_0 : i32, i32
  }
  func.func @transform_8(%arg0: i32, %arg1: i32, %arg2: i32) -> (i32, i32) {
    %c0_i32 = arith.constant 0 : i32
    %c0_i32_0 = arith.constant 0 : i32
    %c0_i32_1 = arith.constant 0 : i32
    return %c0_i32, %c0_i32_0 : i32, i32
  }
  func.func @transform_9(%arg0: i32, %arg1: i32, %arg2: i32) -> (i32, i32, i32) {
    %c0_i32 = arith.constant 0 : i32
    %c0_i32_0 = arith.constant 0 : i32
    return %arg0, %arg1, %c0_i32 : i32, i32, i32
  }
}

module attributes {stable_mosaic.version = 11 : i64} {
  func.func @_ffn_kernel(%arg0: i32, %arg1: i32, %arg2: i32, %arg3: memref<1x8x128xf32, #tpu.memory_space<vmem>>, %arg4: memref<1x128xf32, #tpu.memory_space<vmem>>, %arg5: memref<1x128xf32, #tpu.memory_space<vmem>>, %arg6: memref<128x128xbf16, #tpu.memory_space<vmem>>, %arg7: memref<1x128xf32, #tpu.memory_space<vmem>>, %arg8: memref<128x128xbf16, #tpu.memory_space<vmem>>, %arg9: memref<1x128xf32, #tpu.memory_space<vmem>>, %arg10: memref<1x128xf32, #tpu.memory_space<vmem>>, %arg11: memref<1x128xf32, #tpu.memory_space<vmem>>, %arg12: memref<1x8x128xf32, #tpu.memory_space<vmem>>, %arg13: memref<8x128xbf16, #tpu.memory_space<vmem>>, %arg14: memref<8x128xf32, #tpu.memory_space<vmem>>) attributes {dimension_semantics = [#tpu.dimension_semantics<parallel>, #tpu.dimension_semantics<parallel>, #tpu.dimension_semantics<arbitrary>], iteration_bounds = array<i64: 2, 2, 2>, scalar_prefetch = 0 : i64, scratch_operands = 2 : i64, tpu.core_type = #tpu.core_type<tc>, window_params = [{transform_indices = @transform_0, window_bounds = array<i64: 1, 8, 128>}, {pipeline_mode = #tpu.pipeline_mode<synchronous>, transform_indices = @transform_1, window_bounds = array<i64: 1, 128>}, {pipeline_mode = #tpu.pipeline_mode<synchronous>, transform_indices = @transform_2, window_bounds = array<i64: 1, 128>}, {transform_indices = @transform_3, window_bounds = array<i64: 128, 128>}, {transform_indices = @transform_4, window_bounds = array<i64: 1, 128>}, {transform_indices = @transform_5, window_bounds = array<i64: 128, 128>}, {pipeline_mode = #tpu.pipeline_mode<synchronous>, transform_indices = @transform_6, window_bounds = array<i64: 1, 128>}, {pipeline_mode = #tpu.pipeline_mode<synchronous>, transform_indices = @transform_7, window_bounds = array<i64: 1, 128>}, {pipeline_mode = #tpu.pipeline_mode<synchronous>, transform_indices = @transform_8, window_bounds = array<i64: 1, 128>}, {transform_indices = @transform_9, window_bounds = array<i64: 1, 8, 128>}]} {
    %c0_i32 = arith.constant 0 : i32
    %0 = arith.cmpi eq, %arg2, %c0_i32 : i32
    %1 = arith.extui %0 : i1 to i32
    %c0_i32_0 = arith.constant 0 : i32
    %2 = arith.cmpi ne, %1, %c0_i32_0 : i32
    scf.if %2 {
      %c0_17 = arith.constant 0 : index
      %c0_18 = arith.constant 0 : index
      %c0_19 = arith.constant 0 : index
      %26 = vector.load %arg3[%c0_17, %c0_18, %c0_19] : memref<1x8x128xf32, #tpu.memory_space<vmem>>, vector<1x8x128xf32>
      %27 = vector.shape_cast %26 : vector<1x8x128xf32> to vector<8x128xf32>
      %c0_20 = arith.constant 0 : index
      %c0_21 = arith.constant 0 : index
      %28 = vector.load %arg4[%c0_20, %c0_21] : memref<1x128xf32, #tpu.memory_space<vmem>>, vector<1x128xf32>
      %c0_22 = arith.constant 0 : index
      %c0_23 = arith.constant 0 : index
      %29 = vector.load %arg5[%c0_22, %c0_23] : memref<1x128xf32, #tpu.memory_space<vmem>>, vector<1x128xf32>
      %cst_24 = arith.constant dense<0.000000e+00> : vector<8xf32>
      %30 = vector.multi_reduction <add>, %27, %cst_24 [1] : vector<8x128xf32> to vector<8xf32>
      %31 = vector.shape_cast %30 : vector<8xf32> to vector<8x1xf32>
      %cst_25 = arith.constant 1.280000e+02 : f32
      %32 = vector.broadcast %cst_25 : f32 to vector<8x1xf32>
      %33 = arith.divf %31, %32 : vector<8x1xf32>
      %34 = vector.broadcast %33 : vector<8x1xf32> to vector<8x128xf32>
      %35 = arith.subf %27, %34 : vector<8x128xf32>
      %36 = arith.mulf %35, %35 : vector<8x128xf32>
      %cst_26 = arith.constant dense<0.000000e+00> : vector<8xf32>
      %37 = vector.multi_reduction <add>, %36, %cst_26 [1] : vector<8x128xf32> to vector<8xf32>
      %38 = vector.shape_cast %37 : vector<8xf32> to vector<8x1xf32>
      %cst_27 = arith.constant 1.280000e+02 : f32
      %39 = vector.broadcast %cst_27 : f32 to vector<8x1xf32>
      %40 = arith.divf %38, %39 : vector<8x1xf32>
      %cst_28 = arith.constant 9.99999974E-6 : f32
      %41 = vector.broadcast %cst_28 : f32 to vector<8x1xf32>
      %42 = arith.addf %40, %41 : vector<8x1xf32>
      %43 = math.rsqrt %42 : vector<8x1xf32>
      %44 = vector.broadcast %43 : vector<8x1xf32> to vector<8x128xf32>
      %45 = arith.mulf %35, %44 : vector<8x128xf32>
      %46 = vector.broadcast %28 : vector<1x128xf32> to vector<8x128xf32>
      %47 = arith.mulf %45, %46 : vector<8x128xf32>
      %48 = vector.broadcast %29 : vector<1x128xf32> to vector<8x128xf32>
      %49 = arith.addf %47, %48 : vector<8x128xf32>
      %50 = arith.truncf %49 : vector<8x128xf32> to vector<8x128xbf16>
      %c0_29 = arith.constant 0 : index
      %c0_30 = arith.constant 0 : index
      %51 = vector.load %arg13[%c0_29, %c0_30] : memref<8x128xbf16, #tpu.memory_space<vmem>>, vector<8x128xbf16>
      tpu.vector_store %arg13[%c0_29, %c0_30], %50 {strides = array<i32>} : memref<8x128xbf16, #tpu.memory_space<vmem>>, vector<8x128xbf16>,
      %cst_31 = arith.constant 0.000000e+00 : f32
      %52 = vector.broadcast %cst_31 : f32 to vector<8x128xf32>
      %c0_32 = arith.constant 0 : index
      %c0_33 = arith.constant 0 : index
      %53 = vector.load %arg14[%c0_32, %c0_33] : memref<8x128xf32, #tpu.memory_space<vmem>>, vector<8x128xf32>
      tpu.vector_store %arg14[%c0_32, %c0_33], %52 {strides = array<i32>} : memref<8x128xf32, #tpu.memory_space<vmem>>, vector<8x128xf32>,
    } else {
    }
    %c0 = arith.constant 0 : index
    %c0_1 = arith.constant 0 : index
    %3 = vector.load %arg13[%c0, %c0_1] : memref<8x128xbf16, #tpu.memory_space<vmem>>, vector<8x128xbf16>
    %c0_2 = arith.constant 0 : index
    %c0_3 = arith.constant 0 : index
    %4 = vector.load %arg6[%c0_2, %c0_3] : memref<128x128xbf16, #tpu.memory_space<vmem>>, vector<128x128xbf16>
    %cst = arith.constant dense<0.000000e+00> : vector<8x128xf32>
    %5 = tpu.matmul %3, %4, %cst {dimension_numbers = #tpu.dot_dimension_numbers<[1], [0], [0], [1], [0, 0, 1, 1], [], []>} : vector<8x128xbf16>, vector<128x128xbf16>, vector<8x128xf32> -> vector<8x128xf32>
    %c0_4 = arith.constant 0 : index
    %c0_5 = arith.constant 0 : index
    %6 = vector.load %arg7[%c0_4, %c0_5] : memref<1x128xf32, #tpu.memory_space<vmem>>, vector<1x128xf32>
    %7 = vector.broadcast %6 : vector<1x128xf32> to vector<8x128xf32>
    %8 = arith.addf %5, %7 : vector<8x128xf32>
    %cst_6 = arith.constant 5.000000e-01 : f32
    %9 = vector.broadcast %cst_6 : f32 to vector<8x128xf32>
    %10 = arith.mulf %9, %8 : vector<8x128xf32>
    %cst_7 = arith.constant 0.707106769 : f32
    %11 = vector.broadcast %cst_7 : f32 to vector<8x128xf32>
    %12 = arith.mulf %8, %11 : vector<8x128xf32>
    %13 = math.erf %12 : vector<8x128xf32>
    %cst_8 = arith.constant 1.000000e+00 : f32
    %14 = vector.broadcast %cst_8 : f32 to vector<8x128xf32>
    %15 = arith.addf %14, %13 : vector<8x128xf32>
    %16 = arith.mulf %10, %15 : vector<8x128xf32>
    %c0_9 = arith.constant 0 : index
    %c0_10 = arith.constant 0 : index
    %17 = vector.load %arg14[%c0_9, %c0_10] : memref<8x128xf32, #tpu.memory_space<vmem>>, vector<8x128xf32>
    %18 = arith.truncf %16 : vector<8x128xf32> to vector<8x128xbf16>
    %c0_11 = arith.constant 0 : index
    %c0_12 = arith.constant 0 : index
    %19 = vector.load %arg8[%c0_11, %c0_12] : memref<128x128xbf16, #tpu.memory_space<vmem>>, vector<128x128xbf16>
    %cst_13 = arith.constant dense<0.000000e+00> : vector<8x128xf32>
    %20 = tpu.matmul %18, %19, %cst_13 {dimension_numbers = #tpu.dot_dimension_numbers<[1], [0], [0], [1], [0, 0, 1, 1], [], []>} : vector<8x128xbf16>, vector<128x128xbf16>, vector<8x128xf32> -> vector<8x128xf32>
    %21 = arith.addf %17, %20 : vector<8x128xf32>
    %c0_14 = arith.constant 0 : index
    %c0_15 = arith.constant 0 : index
    %22 = vector.load %arg14[%c0_14, %c0_15] : memref<8x128xf32, #tpu.memory_space<vmem>>, vector<8x128xf32>
    tpu.vector_store %arg14[%c0_14, %c0_15], %21 {strides = array<i32>} : memref<8x128xf32, #tpu.memory_space<vmem>>, vector<8x128xf32>,
    %c1_i32 = arith.constant 1 : i32
    %23 = arith.cmpi eq, %arg2, %c1_i32 : i32
    %24 = arith.extui %23 : i1 to i32
    %c0_i32_16 = arith.constant 0 : i32
    %25 = arith.cmpi ne, %24, %c0_i32_16 : i32
    scf.if %25 {
      %c0_17 = arith.constant 0 : index
      %c0_18 = arith.constant 0 : index
      %c0_19 = arith.constant 0 : index
      %26 = vector.load %arg3[%c0_17, %c0_18, %c0_19] : memref<1x8x128xf32, #tpu.memory_space<vmem>>, vector<1x8x128xf32>
      %27 = vector.shape_cast %26 : vector<1x8x128xf32> to vector<8x128xf32>
      %c0_20 = arith.constant 0 : index
      %c0_21 = arith.constant 0 : index
      %28 = vector.load %arg14[%c0_20, %c0_21] : memref<8x128xf32, #tpu.memory_space<vmem>>, vector<8x128xf32>
      %29 = arith.addf %27, %28 : vector<8x128xf32>
      %c0_22 = arith.constant 0 : index
      %c0_23 = arith.constant 0 : index
      %30 = vector.load %arg9[%c0_22, %c0_23] : memref<1x128xf32, #tpu.memory_space<vmem>>, vector<1x128xf32>
      %31 = vector.broadcast %30 : vector<1x128xf32> to vector<8x128xf32>
      %32 = arith.addf %29, %31 : vector<8x128xf32>
      %c0_24 = arith.constant 0 : index
      %c0_25 = arith.constant 0 : index
      %c0_26 = arith.constant 0 : index
      %33 = vector.load %arg12[%c0_24, %c0_25, %c0_26] : memref<1x8x128xf32, #tpu.memory_space<vmem>>, vector<1x8x128xf32>
      %34 = vector.shape_cast %33 : vector<1x8x128xf32> to vector<8x128xf32>
      %35 = vector.shape_cast %32 : vector<8x128xf32> to vector<1x8x128xf32>
      tpu.vector_store %arg12[%c0_24, %c0_25, %c0_26], %35 {strides = array<i32>} : memref<1x8x128xf32, #tpu.memory_space<vmem>>, vector<1x8x128xf32>,
    } else {
    }
    return
  }
  func.func @transform_0(%arg0: i32, %arg1: i32, %arg2: i32) -> (i32, i32, i32) {
    %c0_i32 = arith.constant 0 : i32
    %c0_i32_0 = arith.constant 0 : i32
    return %arg0, %arg1, %c0_i32 : i32, i32, i32
  }
  func.func @transform_1(%arg0: i32, %arg1: i32, %arg2: i32) -> (i32, i32) {
    %c0_i32 = arith.constant 0 : i32
    %c0_i32_0 = arith.constant 0 : i32
    %c0_i32_1 = arith.constant 0 : i32
    return %c0_i32, %c0_i32_0 : i32, i32
  }
  func.func @transform_2(%arg0: i32, %arg1: i32, %arg2: i32) -> (i32, i32) {
    %c0_i32 = arith.constant 0 : i32
    %c0_i32_0 = arith.constant 0 : i32
    %c0_i32_1 = arith.constant 0 : i32
    return %c0_i32, %c0_i32_0 : i32, i32
  }
  func.func @transform_3(%arg0: i32, %arg1: i32, %arg2: i32) -> (i32, i32) {
    %c0_i32 = arith.constant 0 : i32
    %c0_i32_0 = arith.constant 0 : i32
    return %c0_i32, %arg2 : i32, i32
  }
  func.func @transform_4(%arg0: i32, %arg1: i32, %arg2: i32) -> (i32, i32) {
    %c0_i32 = arith.constant 0 : i32
    %c0_i32_0 = arith.constant 0 : i32
    return %c0_i32, %arg2 : i32, i32
  }
  func.func @transform_5(%arg0: i32, %arg1: i32, %arg2: i32) -> (i32, i32) {
    %c0_i32 = arith.constant 0 : i32
    %c0_i32_0 = arith.constant 0 : i32
    return %arg2, %c0_i32 : i32, i32
  }
  func.func @transform_6(%arg0: i32, %arg1: i32, %arg2: i32) -> (i32, i32) {
    %c0_i32 = arith.constant 0 : i32
    %c0_i32_0 = arith.constant 0 : i32
    %c0_i32_1 = arith.constant 0 : i32
    return %c0_i32, %c0_i32_0 : i32, i32
  }
  func.func @transform_7(%arg0: i32, %arg1: i32, %arg2: i32) -> (i32, i32) {
    %c0_i32 = arith.constant 0 : i32
    %c0_i32_0 = arith.constant 0 : i32
    %c0_i32_1 = arith.constant 0 : i32
    return %c0_i32, %c0_i32_0 : i32, i32
  }
  func.func @transform_8(%arg0: i32, %arg1: i32, %arg2: i32) -> (i32, i32) {
    %c0_i32 = arith.constant 0 : i32
    %c0_i32_0 = arith.constant 0 : i32
    %c0_i32_1 = arith.constant 0 : i32
    return %c0_i32, %c0_i32_0 : i32, i32
  }
  func.func @transform_9(%arg0: i32, %arg1: i32, %arg2: i32) -> (i32, i32, i32) {
    %c0_i32 = arith.constant 0 : i32
    %c0_i32_0 = arith.constant 0 : i32
    return %arg0, %arg1, %c0_i32 : i32, i32, i32
  }
}

</mosaic_0001>

<bundles_post_ra>
// kernel: whisper_audio_encoder.9
= control target key start
LH: loop header
LB: loop body
LE: loop exit
PB: predicated region body
PF: predicated region fallthrough
CT: control target
= control target key end

     0   :  { %s1072_s21 = smov 0   ;;  %s1074_s22 = smov 0   ;;  %s1223_s0 = inlined_call_operand.vmem [shape: bf16[2,16,128], index: 0, kind: input, shape index: {}]   ;;  %s1224_s1 = inlined_call_operand.vmem [shape: bf16[2,16,128], index: 1, kind: input, shape index: {}]   ;;  %s1225_s2 = inlined_call_operand.vmem [shape: bf16[2,16,128], index: 2, kind: input, shape index: {}]   ;;  %s1226_s3 = inlined_call_operand.vmem [shape: bf16[3,128,128], index: 3, kind: input, shape index: {}]   ;;  %s1227_s4 = inlined_call_operand.vmem [shape: f32[1,128], index: 4, kind: input, shape index: {}]   ;;  %s1228_s5 = inlined_call_operand.vmem [shape: f32[16,128], index: 5, kind: input, shape index: {}]   ;;  %s1229_s6 = inlined_call_operand.vmem [shape: f32[2,16,128], index: 6, kind: output, shape index: {}]  }
   0x1   :  { %s1076_s23 = smov 0   ;;  %s1078_s24 = smov 0  }
   0x2   :  { %s1080_s25 = smov 0  }
   0x3 LB: > { %s25_s26 = sadd.s32 1, %s1027_s23  ;;  %s28_s27 = sadd.s32 1, %s1031_s24  ;;  %s1035_s25 = sphi %s1080_s25, %s16_s25   ;;  %s1031_s24 = sphi %s1078_s24, %s1233_s24   ;;  %s1027_s23 = sphi %s1076_s23, %s1232_s23   ;;  %s1023_s22 = sphi %s1074_s22, %s1231_s22   ;;  %s1019_s21 = sphi %s1072_s21, %s1230_s21  }
   0x4   : > { %p26_p0 = scmp.ge.s32.totalorder %s25_s26, 2  ;;  %p789_p1 = scmp.ge.s32.totalorder %s1035_s25, 1 }
   0x5   : > { %p270_p2 = scmp.lt.s32.totalorder %s1035_s25, 5 }
   0x6   : > { %s1235_s26 = smov (%p26_p0, %s25_s26), 0  ;;  %s1237_s27 = smov (!%p26_p0, %s28_s27), %s1031_s24 }
   0x7   : > { %p271_p3 = pnand %p789_p1, %p270_p2  ;;  %p30_p4 = scmp.ge.s32.totalorder %s1237_s27, 2 }
   0x8   : > { %p326_p5 = scmp.lt.s32.totalorder (!%p271_p3), %s1023_s22, 1  ;;  %p328_p6 = scmp.lt.s32.totalorder (!%p271_p3), %s1019_s21, 1 }
   0x9   : > { %s1239_s27 = smov (%p30_p4, %s1237_s27), 0  ;;  %274 = sbr.rel (%p271_p3) target bundleno = 238 (0xee), region = 44 }
   0xe   : > { %v945_v0 = vld [vmem:[%s1226_s3 + $0x78] sm:$0xff]  ;;  %v944_v3 = vld [vmem:[%s1226_s3 + $0x70] sm:$0xff]  ;;  %v943_v6 = vld [vmem:[%s1226_s3 + $0x68] sm:$0xff]  ;;  %s1241_s22 = smov (!%p326_p5, %s1023_s22), 1  ;;  %s1243_s21 = smov (!%p328_p6, %s1019_s21), 1 }
   0xf   : > { %v937_v1 = vld [vmem:[%s1226_s3 + $0x38] sm:$0xff]  ;;  %445 = vmatpush.bf16.msra.mxu0 %v945_v0  ;;  %v936_v4 = vld [vmem:[%s1226_s3 + $0x30] sm:$0xff]  ;;  %v935_v7 = vld [vmem:[%s1226_s3 + $0x28] sm:$0xff]  ;;  %s790_s28 = sshll.u32 %s1241_s22, 1 }
  0x10   : > { %v953_v2 = vld [vmem:[%s1226_s3 + $0xb8] sm:$0xff]  ;;  %506 = vmatpush.bf16.msra.mxu1 %v937_v1  ;;  %v952_v5 = vld [vmem:[%s1226_s3 + $0xb0] sm:$0xff]  ;;  %v951_v8 = vld [vmem:[%s1226_s3 + $0xa8] sm:$0xff]  ;;  %s1167_s7 = sadd.s32 %s790_s28, %s1243_s21 }
  0x11   : > { %585 = vmatpush.bf16.msra.mxu2 %v953_v2  ;;  %v942_v9 = vld [vmem:[%s1226_s3 + $0x60] sm:$0xff]  ;;  %v941_v12 = vld [vmem:[%s1226_s3 + $0x58] sm:$0xff]  ;;  %v940_v15 = vld [vmem:[%s1226_s3 + $0x50] sm:$0xff]  ;;  %s791_s13 = sshll.u32 %s1167_s7, 2  ;;  %s798_s18 = sshll.u32 %s1167_s7, 3 }
  0x12   : > { %v934_v10 = vld [vmem:[%s1226_s3 + $0x20] sm:$0xff]  ;;  %v933_v13 = vld [vmem:[%s1226_s3 + $0x18] sm:$0xff]  ;;  %v932_v16 = vld [vmem:[%s1226_s3 + $0x10] sm:$0xff]  ;;  %s341_s29 = scalar_lea.vmem %s1224_s1, %s791_s13  ;;  %s333_s9 = scalar_lea.vmem %s1223_s0, %s791_s13 }
  0x13   : > { %446 = vmatpush.bf16.msra.mxu0 %v944_v3  ;;  %v950_v11 = vld [vmem:[%s1226_s3 + $0xa0] sm:$0xff]  ;;  %v949_v14 = vld [vmem:[%s1226_s3 + $0x98] sm:$0xff]  ;;  %v948_v17 = vld [vmem:[%s1226_s3 + $0x90] sm:$0xff]  ;;  %s349_s22 = scalar_lea.vmem %s1225_s2, %s791_s13  ;;  %s796_s13 = sshll.u32 %s1243_s21, 3 }
  0x14   : > { %507 = vmatpush.bf16.msra.mxu1 %v936_v4  ;;  %v939_v18 = vld [vmem:[%s1226_s3 + $0x48] sm:$0xff]  ;;  %v938_v21 = vld [vmem:[%s1226_s3 + $0x40] sm:$0xff]  ;;  %s353_s17 = scalar_lea.vmem %s1228_s5, %s796_s13  ;;  %s361_s28 = scalar_lea.vmem %s1229_s6, %s798_s18 }
  0x15   : > { %586 = vmatpush.bf16.msra.mxu2 %v952_v5  ;;  %v931_v19 = vld [vmem:[%s1226_s3 + $0x8] sm:$0xff]  ;;  %v930_v22 = vld [vmem:[%s1226_s3] sm:$0xff] }
  0x16   : > { %v947_v20 = vld [vmem:[%s1226_s3 + $0x88] sm:$0xff]  ;;  %v946_v23 = vld [vmem:[%s1226_s3 + $0x80] sm:$0xff] }
  0x17   : > { %447 = vmatpush.bf16.msra.mxu0 %v943_v6  ;;  %v379_v24 = vld [vmem:[%s341_s29] sm:$0xf] }
  0x18   : > { %508 = vmatpush.bf16.msra.mxu1 %v935_v7  ;;  %v362_v25 = vld [vmem:[%s333_s9] sm:$0xf] }
  0x19   : > { %587 = vmatpush.bf16.msra.mxu2 %v951_v8  ;;  %v519_v26 = vld [vmem:[%s349_s22] sm:$0xf] }
  0x1a   : > { %v994_v30 = vld [vmem:[%s1227_s4] ss:$0 sm:$0xff] }
  0x1b   : > { %448 = vmatpush.bf16.msra.mxu0 %v942_v9 }
  0x1c   : > { %509 = vmatpush.bf16.msra.mxu1 %v934_v10 }
  0x1d   : > { %588 = vmatpush.bf16.msra.mxu2 %v950_v11  ;;  %v648_v11 = vld [vmem:[%s353_s17] sm:$0xff] }
  0x1f   : > { %449 = vmatpush.bf16.msra.mxu0 %v941_v12 }
  0x20   : > { %510 = vmatpush.bf16.msra.mxu1 %v933_v13 }
  0x21   : > { %589 = vmatpush.bf16.msra.mxu2 %v949_v14 }
  0x23   : > { %450 = vmatpush.bf16.msra.mxu0 %v940_v15 }
  0x24   : > { %511 = vmatpush.bf16.msra.mxu1 %v932_v16 }
  0x25   : > { %590 = vmatpush.bf16.msra.mxu2 %v948_v17 }
  0x27   : > { %451 = vmatpush.bf16.msra.mxu0 %v939_v18 }
  0x28   : > { %512 = vmatpush.bf16.msra.mxu1 %v931_v19 }
  0x29   : > { %591 = vmatpush.bf16.msra.mxu2 %v947_v20 }
  0x2b   : > { %452 = vmatpush.bf16.msra.mxu0 %v938_v21 }
  0x2c   : > { %513 = vmatpush.bf16.msra.mxu1 %v930_v22 }
  0x2d   : > { %592 = vmatpush.bf16.msra.mxu2 %v946_v23 }
  0x2e   : > { %453 = vmatmul.bf16.vlgmr.msra.gmra.mxu0 %v379_v24 }
  0x2f   : > { %514 = vmatmul.bf16.vlgmr.msra.gmra.mxu1 %v362_v25 }
  0x30   : > { %593 = vmatmul.bf16.vlgmr.msra.gmra.mxu2 %v519_v26 }
  0xab   : > { %v454_v27 = vpop.f32.mrf.mxu0 }
  0xac   : > { %v515_v28 = vpop.f32.mrf.mxu1 }
  0xad   : > { %v516_v29 = vadd.f32 %v515_v28, %v454_v27 }
  0xb3   : > { %v594_v31 = vpop.f32.mrf.mxu2  ;;  %v456_v33 = vpop.f32.mrf.mxu0 }
  0xb4   : > { %v598_v32 = vadd.f32 %v594_v31, %v516_v29  ;;  %v517_v34 = vpop.f32.mrf.mxu1 }
  0xb6   : > { %v603_v35 = vadd.f32 %v994_v30, %v598_v32 }
  0xb8   : > { %v605_v36 = vmul.f32 0.70710677, %v603_v35  ;;  %v604_v9 = vmul.f32 0.5, %v603_v35 }
  0xba   : > { %v606_v37 = vmul.f32 %v605_v36, %v605_v36 }
  0xbb   : > { %v596_v38 = vpop.f32.mrf.mxu2 }
  0xbc   : > { %v607_v39 = vmin.f32 %v606_v37, 16.0 }
  0xbe   : > { %v608_v40 = vmul.f32 2.1237322e-06, %v607_v39  ;;  %v619_v41 = vmul.f32 3.8918573e-05, %v607_v39 }
  0xc0   : > { %v609_v42 = vadd.f32 0.00028619796, %v608_v40  ;;  %v620_v43 = vadd.f32 0.001143296, %v619_v41 }
  0xc2   : > { %v610_v44 = vmul.f32 %v609_v42, %v607_v39  ;;  %v621_v45 = vmul.f32 %v620_v43, %v607_v39 }
  0xc4   : > { %v622_v46 = vadd.f32 0.014752088, %v621_v45  ;;  %v611_v47 = vadd.f32 0.0036580483, %v610_v44 }
  0xc6   : > { %v623_v48 = vmul.f32 %v622_v46, %v607_v39  ;;  %v612_v50 = vmul.f32 %v611_v47, %v607_v39 }
  0xc8   : > { %v624_v49 = vadd.f32 0.112945676, %v623_v48  ;;  %v613_v53 = vadd.f32 0.05243302, %v612_v50 }
  0xca   : > { %v625_v51 = vmul.f32 %v624_v49, %v607_v39  ;;  %v614_v56 = vmul.f32 %v613_v53, %v607_v39 }
  0xcc   : > { %v626_v52 = vadd.f32 0.4994258, %v625_v51  ;;  %v615_v57 = vadd.f32 0.18741608, %v614_v56 }
  0xce   : > { %v627_v54 = vmul.f32 %v626_v52, %v607_v39  ;;  %v616_v59 = vmul.f32 %v615_v57, %v607_v39 }
  0xd0   : > { %v628_v55 = vadd.f32 1.0, %v627_v54  ;;  %v617_v63 = vadd.f32 1.1283791, %v616_v59 }
  0xd2   : > { %995 = vrcp.f32 %v628_v55  ;;  %v640_v62 = vand.u32 2147483648, %v628_v55  ;;  %v638_v1 = vand.u32 2147483647, %v628_v55  ;;  %vm634_vm1 = vweird.f32 %v628_v55 }
  0xd3   : > { %v618_v4 = vmul.f32 %v617_v63, %v605_v36 }
  0xd4   : > { %v641_v3 = vor.u32 1.1754944e-38, %v640_v62  ;;  %vm639_vm3 = vcmp.eq.f32.partialorder %v638_v1, 8.507059e+37 }
  0xd8   : > { %v996_v58 = vpop.eup %995 }
  0xd9   : > { %v630_v60 = vmul.f32 %v996_v58, %v628_v55  ;;  %vm635_vm0 = vweird.f32 %v996_v58 }
  0xda   : > { %vm636_vm2 = vmor %vm634_vm1, %vm635_vm0 }
  0xdb   : > { %v631_v61 = vsub.f32 1.0, %v630_v60 }
  0xdd   : > { %v632_v0 = vmul.f32 %v996_v58, %v631_v61 }
  0xdf   : > { %v633_v2 = vadd.f32 %v996_v58, %v632_v0 }
  0xe1   : > { %v637_v5 = vsel %vm636_vm2, %v996_v58, %v633_v2 }
  0xe2   : > { %v642_v6 = vsel %vm639_vm3, %v641_v3, %v637_v5 }
  0xe3   : > { %v643_v7 = vmul.f32 %v642_v6, %v618_v4 }
  0xe5   : > { %v927_v8 = vclamps-f32 %v643_v7, 1.0 }
  0xe7   : > { %v646_v10 = vadd.f32 1.0, %v927_v8 }
  0xe9   : > { %v647_v12 = vmul.f32 %v646_v10, %v604_v9 }
  0xeb   : > { %v649_v13 = vadd.f32 %v648_v11, %v647_v12 }
  0xed   : > { %650 = vst [vmem:[%s361_s28] sm:$0xff] %v649_v13 }
  0xee PF: > { %s16_s25 = sadd.s32 1, %s1035_s25   ;;  %s1230_s21 = smov %s1027_s23 }
  0xef   : > { %p13_p7 = scmp.ge.s32.totalorder %s16_s25, 6   ;;  %s1231_s22 = smov %s1031_s24 }
  0xf0   : > { %s1232_s23 = smov %s1235_s26  ;;  %s1233_s24 = smov %s1239_s27 }
  0xf1   :  { %15 = sbr.rel (!%p13_p7) target bundleno = 3 (0x3), region = 85 }

// kernel: whisper_audio_encoder.8
= control target key start
LH: loop header
LB: loop body
LE: loop exit
PB: predicated region body
PF: predicated region fallthrough
CT: control target
= control target key end

     0   :  { %s1004_s24 = smov 0   ;;  %s1006_s25 = smov 0   ;;  %s1105_s0 = inlined_call_operand.vmem [shape: bf16[2,16,16], index: 0, kind: input, shape index: {}]   ;;  %s1106_s1 = inlined_call_operand.vmem [shape: bf16[2,16,16], index: 1, kind: input, shape index: {}]   ;;  %s1107_s2 = inlined_call_operand.vmem [shape: bf16[2,16,16], index: 2, kind: input, shape index: {}]   ;;  %s1108_s3 = inlined_call_operand.vmem [shape: bf16[2,16,16], index: 3, kind: input, shape index: {}]   ;;  %s1109_s4 = inlined_call_operand.vmem [shape: bf16[3,16,128], index: 4, kind: input, shape index: {}]   ;;  %s1110_s5 = inlined_call_operand.vmem [shape: f32[1,128], index: 5, kind: input, shape index: {}]   ;;  %s1111_s6 = inlined_call_operand.vmem [shape: bf16[2,16,128], index: 6, kind: output, shape index: {0}]   ;;  %s1112_s7 = inlined_call_operand.vmem [shape: bf16[2,16,128], index: 7, kind: output, shape index: {1}]  }
   0x1   :  { %s1008_s26 = smov 0   ;;  %s1010_s27 = smov 0  }
   0x2   :  { %s1012_s28 = smov 0  }
   0x3 LB: > { %s27_s29 = sadd.s32 1, %s954_s26  ;;  %s30_s30 = sadd.s32 1, %s958_s27  ;;  %s962_s28 = sphi %s1012_s28, %s18_s28   ;;  %s958_s27 = sphi %s1010_s27, %s1116_s27   ;;  %s954_s26 = sphi %s1008_s26, %s1115_s26   ;;  %s950_s25 = sphi %s1006_s25, %s1114_s25   ;;  %s946_s24 = sphi %s1004_s24, %s1113_s24  }
   0x4   : > { %p28_p0 = scmp.ge.s32.totalorder %s27_s29, 2  ;;  %p837_p1 = scmp.ge.s32.totalorder %s962_s28, 1 }
   0x5   : > { %p306_p2 = scmp.lt.s32.totalorder %s962_s28, 5 }
   0x6   : > { %s1118_s29 = smov (%p28_p0, %s27_s29), 0  ;;  %s1120_s30 = smov (!%p28_p0, %s30_s30), %s958_s27 }
   0x7   : > { %p307_p3 = pnand %p837_p1, %p306_p2  ;;  %p32_p4 = scmp.ge.s32.totalorder %s1120_s30, 2 }
   0x8   : > { %p376_p5 = scmp.lt.s32.totalorder (!%p307_p3), %s950_s25, 1  ;;  %p378_p6 = scmp.lt.s32.totalorder (!%p307_p3), %s946_s24, 1 }
   0x9   : > { %s1122_s30 = smov (%p32_p4, %s1120_s30), 0  ;;  %310 = sbr.rel (%p307_p3) target bundleno = 223 (0xdf), region = 44 }
   0xe   : > { %v877_v0 = vld [vmem:[%s1109_s4 + $0x8] sm:$0xff]  ;;  %v876_v1 = vld [vmem:[%s1109_s4] sm:$0xff]  ;;  %v878_v2 = vld [vmem:[%s1109_s4 + $0x10] sm:$0xff]  ;;  %s1124_s25 = smov (!%p376_p5, %s950_s25), 1  ;;  %s1126_s24 = smov (!%p378_p6, %s946_s24), 1  ;;  %vm442_vm0 = vcmask 130048  }
   0xf   : > { %453 = vmatpush.bf16.msra.mxu0 %v877_v0  ;;  %475 = vmatpush.bf16.msra.mxu1 %v876_v1  ;;  %s838_s14 = sshll.u32 %s1124_s25, 1  ;;  %v919_v10 = vld [vmem:[%s1110_s5] ss:$0 sm:$0xff] }
  0x10   : > { %498 = vmatpush.bf16.msra.mxu2 %v878_v2  ;;  %516 = vmatpush.bf16.msra.mxu3 %v877_v0  ;;  %s381_s15 = sadd.s32 %s838_s14, %s1126_s24 }
  0x11   : > { %s1043_s16 = sshll.u32 %s381_s15, 2 }
  0x12   : > { %s391_s19 = scalar_lea.vmem %s1106_s1, %s1043_s16  ;;  %s383_s22 = scalar_lea.vmem %s1105_s0, %s1043_s16 }
  0x13   : > { %529 = vmatpush.bf16.msrb.mxu0 %v876_v1  ;;  %546 = vmatpush.bf16.msrb.mxu1 %v878_v2  ;;  %v435_v3 = vld [vmem:[%s391_s19] sm:$0xf]  ;;  %s399_s24 = scalar_lea.vmem %s1107_s2, %s1043_s16  ;;  %s407_s10 = scalar_lea.vmem %s1108_s3, %s1043_s16 }
  0x14   : > { %v434_v4 = vld [vmem:[%s383_s22] sm:$0xf]  ;;  %858 = vmatmul.msk.bf16.vlgmr.msra.gmra.mxu0 %vm442_vm0, %v435_v3  ;;  %s415_s15 = scalar_lea.vmem %s1111_s6, %s1043_s16  ;;  %s423_s19 = scalar_lea.vmem %s1112_s7, %s1043_s16 }
  0x15   : > { %863 = vmatmul.msk.bf16.vlgmr.msra.gmra.mxu1 %vm442_vm0, %v434_v4  ;;  %v481_v5 = vld [vmem:[%s399_s24] sm:$0xf] }
  0x16   : > { %868 = vmatmul.msk.bf16.vlgmr.msra.gmra.mxu2 %vm442_vm0, %v481_v5  ;;  %869 = vmatmul.msk.bf16.vlgmr.msra.gmra.mxu3 %vm442_vm0, %v481_v5  ;;  %v535_v6 = vld [vmem:[%s407_s10] sm:$0xf] }
  0x24   : > { %870 = vmatmul.msk.bf16.vlgmr.msrb.gmra.mxu0 %vm442_vm0, %v435_v3 }
  0x25   : > { %871 = vmatmul.msk.bf16.vlgmr.msrb.gmra.mxu1 %vm442_vm0, %v535_v6 }
  0x91   : > { %v455_v7 = vpop.f32.mrf.mxu0 }
  0x92   : > { %v477_v8 = vpop.f32.mrf.mxu1 }
  0x93   : > { %v478_v9 = vadd.f32 %v477_v8, %v455_v7 }
  0x99   : > { %v500_v11 = vpop.f32.mrf.mxu2  ;;  %v518_v12 = vpop.f32.mrf.mxu3 }
  0x9a   : > { %v504_v13 = vadd.f32 %v500_v11, %v478_v9  ;;  %v457_v14 = vpop.f32.mrf.mxu0  ;;  %v479_v15 = vpop.f32.mrf.mxu1 }
  0x9c   : > { %v1064_v16 = vadd.f32 %v919_v10, %v504_v13 }
  0x9e   : > { %v1067_v17 = vmul.f32 0.70710677, %v1064_v16 }
  0xa0   : > { %v556_v18 = vmul.f32 %v1067_v17, %v1067_v17 }
  0xa1   : > { %v520_v19 = vpop.f32.mrf.mxu3  ;;  %v502_v20 = vpop.f32.mrf.mxu2 }
  0xa2   : > { %v557_v21 = vmin.f32 %v556_v18, 16.0  ;;  %v531_v22 = vpop.f32.mrf.mxu0  ;;  %v548_v23 = vpop.f32.mrf.mxu1 }
  0xa3   : > { %v532_v24 = vadd.f32 %v531_v22, %v518_v12 }
  0xa4   : > { %v558_v25 = vmul.f32 2.1237322e-06, %v557_v21  ;;  %v569_v26 = vmul.f32 3.8918573e-05, %v557_v21 }
  0xa5   : > { %v552_v27 = vadd.f32 %v548_v23, %v532_v24 }
  0xa6   : > { %v559_v28 = vadd.f32 0.00028619796, %v558_v25  ;;  %v570_v29 = vadd.f32 0.001143296, %v569_v26  ;;  %v554_v25 = vmul.f32 0.5, %v1064_v16 }
  0xa7   : > { %v1071_v30 = vadd.f32 %v919_v10, %v552_v27 }
  0xa8   : > { %v560_v31 = vmul.f32 %v559_v28, %v557_v21  ;;  %v571_v32 = vmul.f32 %v570_v29, %v557_v21 }
  0xa9   : > { %v1074_v33 = vmul.f32 0.70710677, %v1071_v30 }
  0xaa   : > { %v561_v34 = vadd.f32 0.0036580483, %v560_v31  ;;  %v572_v35 = vadd.f32 0.014752088, %v571_v32  ;;  %v533_v36 = vpop.f32.mrf.mxu0  ;;  %v550_v37 = vpop.f32.mrf.mxu1 }
  0xab   : > { %v602_v38 = vmul.f32 %v1074_v33, %v1074_v33 }
  0xac   : > { %v573_v39 = vmul.f32 %v572_v35, %v557_v21  ;;  %v562_v41 = vmul.f32 %v561_v34, %v557_v21 }
  0xad   : > { %v603_v40 = vmin.f32 %v602_v38, 16.0 }
  0xae   : > { %v574_v42 = vadd.f32 0.112945676, %v573_v39  ;;  %v563_v48 = vadd.f32 0.05243302, %v562_v41 }
  0xaf   : > { %v604_v43 = vmul.f32 2.1237322e-06, %v603_v40  ;;  %v615_v44 = vmul.f32 3.8918573e-05, %v603_v40 }
  0xb0   : > { %v575_v45 = vmul.f32 %v574_v42, %v557_v21  ;;  %v564_v54 = vmul.f32 %v563_v48, %v557_v21 }
  0xb1   : > { %v605_v46 = vadd.f32 0.00028619796, %v604_v43  ;;  %v616_v47 = vadd.f32 0.001143296, %v615_v44 }
  0xb2   : > { %v576_v49 = vadd.f32 0.4994258, %v575_v45  ;;  %v565_v59 = vadd.f32 0.18741608, %v564_v54 }
  0xb3   : > { %v606_v50 = vmul.f32 %v605_v46, %v603_v40  ;;  %v617_v51 = vmul.f32 %v616_v47, %v603_v40 }
  0xb4   : > { %v577_v52 = vmul.f32 %v576_v49, %v557_v21  ;;  %v566_v0 = vmul.f32 %v565_v59, %v557_v21 }
  0xb5   : > { %v618_v53 = vadd.f32 0.014752088, %v617_v51  ;;  %v607_v56 = vadd.f32 0.0036580483, %v606_v50 }
  0xb6   : > { %v578_v55 = vadd.f32 1.0, %v577_v52  ;;  %v567_v6 = vadd.f32 1.1283791, %v566_v0 }
  0xb7   : > { %v619_v57 = vmul.f32 %v618_v53, %v603_v40  ;;  %v608_v60 = vmul.f32 %v607_v56, %v603_v40 }
  0xb8   : > { %920 = vrcp.f32 %v578_v55  ;;  %v590_v7 = vand.u32 2147483648, %v578_v55  ;;  %v588_v10 = vand.u32 2147483647, %v578_v55  ;;  %vm584_vm2 = vweird.f32 %v578_v55 }
  0xb9   : > { %v620_v58 = vadd.f32 0.112945676, %v619_v57  ;;  %v609_v1 = vadd.f32 0.05243302, %v608_v60  ;;  %v568_v14 = vmul.f32 %v567_v6, %v1067_v17 }
  0xba   : > { %v591_v12 = vor.u32 1.1754944e-38, %v590_v7  ;;  %vm589_vm4 = vcmp.eq.f32.partialorder %v588_v10, 8.507059e+37 }
  0xbb   : > { %v621_v61 = vmul.f32 %v620_v58, %v603_v40  ;;  %v610_v8 = vmul.f32 %v609_v1, %v603_v40 }
  0xbd   : > { %v622_v62 = vadd.f32 0.4994258, %v621_v61  ;;  %v611_v13 = vadd.f32 0.18741608, %v610_v8 }
  0xbe   : > { %v921_v63 = vpop.eup %920 }
  0xbf   : > { %v580_v2 = vmul.f32 %v921_v63, %v578_v55  ;;  %v623_v3 = vmul.f32 %v622_v62, %v603_v40  ;;  %vm585_vm1 = vweird.f32 %v921_v63  ;;  %v612_v21 = vmul.f32 %v611_v13, %v603_v40 }
  0xc0   : > { %vm586_vm3 = vmor %vm584_vm2, %vm585_vm1  ;;  %v600_v40 = vmul.f32 0.5, %v1071_v30 }
  0xc1   : > { %v581_v4 = vsub.f32 1.0, %v580_v2  ;;  %v624_v5 = vadd.f32 1.0, %v623_v3  ;;  %v613_v28 = vadd.f32 1.1283791, %v612_v21 }
  0xc3   : > { %v582_v9 = vmul.f32 %v921_v63, %v581_v4  ;;  %922 = vrcp.f32 %v624_v5  ;;  %v636_v27 = vand.u32 2147483648, %v624_v5  ;;  %v634_v31 = vand.u32 2147483647, %v624_v5 }
  0xc4   : > { %vm630_vm6 = vweird.f32 %v624_v5  ;;  %v614_v36 = vmul.f32 %v613_v28, %v1074_v33 }
  0xc5   : > { %v583_v11 = vadd.f32 %v921_v63, %v582_v9  ;;  %v637_v35 = vor.u32 1.1754944e-38, %v636_v27  ;;  %vm635_vm8 = vcmp.eq.f32.partialorder %v634_v31, 8.507059e+37 }
  0xc7   : > { %v587_v15 = vsel %vm586_vm3, %v921_v63, %v583_v11 }
  0xc8   : > { %v592_v18 = vsel %vm589_vm4, %v591_v12, %v587_v15 }
  0xc9   : > { %v923_v19 = vpop.eup %922  ;;  %v593_v20 = vmul.f32 %v592_v18, %v568_v14 }
  0xca   : > { %v626_v22 = vmul.f32 %v923_v19, %v624_v5  ;;  %vm631_vm5 = vweird.f32 %v923_v19 }
  0xcb   : > { %v872_v23 = vclamps-f32 %v593_v20, 1.0  ;;  %vm632_vm7 = vmor %vm630_vm6, %vm631_vm5 }
  0xcc   : > { %v627_v24 = vsub.f32 1.0, %v626_v22 }
  0xcd   : > { %v596_v26 = vadd.f32 1.0, %v872_v23 }
  0xce   : > { %v628_v29 = vmul.f32 %v923_v19, %v627_v24 }
  0xcf   : > { %v597_v32 = vmul.f32 %v596_v26, %v554_v25 }
  0xd0   : > { %v629_v17 = vadd.f32 %v923_v19, %v628_v29 }
  0xd1   : > { %v598_v34 = vpack.c.bf16 %v597_v32, %v597_v32 }
  0xd2   : > { %v633_v16 = vsel %vm632_vm7, %v923_v19, %v629_v17 }
  0xd3   : > { %599 = vst [vmem:[%s415_s15] sm:$0xf] %v598_v34  ;;  %v638_v37 = vsel %vm635_vm8, %v637_v35, %v633_v16 }
  0xd4   : > { %v639_v38 = vmul.f32 %v638_v37, %v614_v36 }
  0xd6   : > { %v873_v39 = vclamps-f32 %v639_v38, 1.0 }
  0xd8   : > { %v642_v41 = vadd.f32 1.0, %v873_v39 }
  0xda   : > { %v643_v42 = vmul.f32 %v642_v41, %v600_v40 }
  0xdc   : > { %v644_v43 = vpack.c.bf16 %v643_v42, %v643_v42 }
  0xde   : > { %645 = vst [vmem:[%s423_s19] sm:$0xf] %v644_v43 }
  0xdf PF: > { %s18_s28 = sadd.s32 1, %s962_s28   ;;  %s1113_s24 = smov %s954_s26 }
  0xe0   : > { %p15_p7 = scmp.ge.s32.totalorder %s18_s28, 6   ;;  %s1114_s25 = smov %s958_s27 }
  0xe1   : > { %s1115_s26 = smov %s1118_s29  ;;  %s1116_s27 = smov %s1122_s30 }
  0xe2   :  { %17 = sbr.rel (!%p15_p7) target bundleno = 3 (0x3), region = 97 }

// kernel: whisper_audio_encoder.10
= control target key start
LH: loop header
LB: loop body
LE: loop exit
PB: predicated region body
PF: predicated region fallthrough
CT: control target
= control target key end

     0   :  { %s1047_s24 = smov 0   ;;  %s1049_s25 = smov 0   ;;  %s1270_s0 = inlined_call_operand.vmem [shape: f32[2,16,128], index: 0, kind: input, shape index: {}]   ;;  %s1271_s1 = inlined_call_operand.vmem [shape: f32[1,128], index: 1, kind: input, shape index: {}]   ;;  %s1272_s2 = inlined_call_operand.vmem [shape: f32[1,128], index: 2, kind: input, shape index: {}]   ;;  %s1273_s3 = inlined_call_operand.vmem [shape: bf16[128,384], index: 3, kind: input, shape index: {}]   ;;  %s1274_s4 = inlined_call_operand.vmem [shape: f32[1,384], index: 4, kind: input, shape index: {}]   ;;  %s1275_s5 = inlined_call_operand.vmem [shape: bf16[2,16,128], index: 5, kind: output, shape index: {0}]   ;;  %s1276_s6 = inlined_call_operand.vmem [shape: bf16[2,16,128], index: 6, kind: output, shape index: {1}]   ;;  %s1277_s7 = inlined_call_operand.vmem [shape: bf16[2,16,128], index: 7, kind: output, shape index: {2}]  }
   0x1   :  { %s1051_s26 = smov 0   ;;  %s1053_s27 = smov 0  }
   0x2   :  { %s1055_s28 = smov 0  }
   0x3 LB: > { %s27_s29 = sadd.s32 1, %s996_s26  ;;  %s30_s30 = sadd.s32 1, %s1000_s27  ;;  %s1004_s28 = sphi %s1055_s28, %s18_s28   ;;  %s1000_s27 = sphi %s1053_s27, %s1281_s27   ;;  %s996_s26 = sphi %s1051_s26, %s1280_s26   ;;  %s992_s25 = sphi %s1049_s25, %s1279_s25   ;;  %s988_s24 = sphi %s1047_s24, %s1278_s24  }
   0x4   : > { %p28_p0 = scmp.ge.s32.totalorder %s27_s29, 2  ;;  %p788_p1 = scmp.ge.s32.totalorder %s1004_s28, 1 }
   0x5   : > { %p265_p2 = scmp.lt.s32.totalorder %s1004_s28, 5 }
   0x6   : > { %s1283_s29 = smov (%p28_p0, %s27_s29), 0  ;;  %s1285_s30 = smov (!%p28_p0, %s30_s30), %s1000_s27 }
   0x7   : > { %p266_p3 = pnand %p788_p1, %p265_p2  ;;  %p32_p4 = scmp.ge.s32.totalorder %s1285_s30, 2 }
   0x8   : > { %p319_p5 = scmp.lt.s32.totalorder (!%p266_p3), %s992_s25, 1  ;;  %p321_p6 = scmp.lt.s32.totalorder (!%p266_p3), %s988_s24, 1 }
   0x9   : > { %s1287_s30 = smov (%p32_p4, %s1285_s30), 0  ;;  %269 = sbr.rel (%p266_p3) target bundleno = 429 (0x1ad), region = 40 }
   0xe   : > { %s1289_s25 = smov (!%p319_p5, %s992_s25), 1  ;;  %s1291_s24 = smov (!%p321_p6, %s988_s24), 1  ;;  %v1006_v1 = vmov 128.0   ;;  %v883_v2 = vld [vmem:[%s1273_s3 + $0xa8] sm:$0xf] }
   0xf   : > { %s789_s8 = sshll.u32 %s1289_s25, 1  ;;  %962 = vrcp.f32 %v1006_v1  ;;  %v917_v3 = vld [vmem:[%s1273_s3 + $0xb0] sm:$0xf0]  ;;  %v916_v4 = vld [vmem:[%s1273_s3 + $0xac] sm:$0xf] }
  0x10   : > { %s1077_s9 = sadd.s32 %s789_s8, %s1291_s24  ;;  %v884_v5 = vor.u32 %v917_v3, %v883_v2  ;;  %v885_v6 = vld [vmem:[%s1273_s3 + $0xb4] sm:$0xf0]  ;;  %v891_v7 = vld [vmem:[%s1273_s3 + $0xb0] sm:$0xf]  ;;  %v918_v8 = vld [vmem:[%s1273_s3 + $0xb8] sm:$0xf0] }
  0x11   : > { %s790_s10 = sshll.u32 %s1077_s9, 3  ;;  %v888_v9 = vor.u32 %v916_v4, %v885_v6  ;;  %v892_v10 = vor.u32 %v918_v8, %v891_v7  ;;  %v871_v21 = vld [vmem:[%s1273_s3 + $0x90] sm:$0xf]  ;;  %v914_v22 = vld [vmem:[%s1273_s3 + $0x98] sm:$0xf0]  ;;  %s792_s14 = sshll.u32 %s1077_s9, 2 }
  0x12   : > { %s326_s13 = scalar_lea.vmem %s1270_s0, %s790_s10  ;;  %558 = vmatpush.bf16.msra.mxu0 %v884_v5  ;;  %v913_v23 = vld [vmem:[%s1273_s3 + $0x94] sm:$0xf]  ;;  %v872_v24 = vor.u32 %v914_v22, %v871_v21  ;;  %v873_v25 = vld [vmem:[%s1273_s3 + $0x9c] sm:$0xf0]  ;;  %v879_v26 = vld [vmem:[%s1273_s3 + $0x98] sm:$0xf]  ;;  %s342_s17 = scalar_lea.vmem %s1276_s6, %s792_s14 }
  0x13   : > { %v351_v0 = vld [vmem:[%s326_s13] sm:$0xff]  ;;  %571 = vmatpush.bf16.msra.mxu1 %v888_v9  ;;  %584 = vmatpush.bf16.msra.mxu2 %v892_v10  ;;  %v876_v28 = vor.u32 %v913_v23, %v873_v25  ;;  %v859_v30 = vld [vmem:[%s1273_s3 + $0x78] sm:$0xf]  ;;  %v910_v32 = vld [vmem:[%s1273_s3 + $0x7c] sm:$0xf]  ;;  %s334_s20 = scalar_lea.vmem %s1275_s5, %s792_s14  ;;  %s350_s22 = scalar_lea.vmem %s1277_s7, %s792_s14 }
  0x14   : > { %354 = vadd.xlane.f32.xlu0 %v351_v0  ;;  %v915_v27 = vld [vmem:[%s1273_s3 + $0xa0] sm:$0xf0]  ;;  %v861_v34 = vld [vmem:[%s1273_s3 + $0x84] sm:$0xf0]  ;;  %v867_v35 = vld [vmem:[%s1273_s3 + $0x80] sm:$0xf] }
  0x15   : > { %v963_v11 = vpop.eup %962  ;;  %v880_v29 = vor.u32 %v915_v27, %v879_v26  ;;  %v911_v31 = vld [vmem:[%s1273_s3 + $0x80] sm:$0xf0]  ;;  %v912_v36 = vld [vmem:[%s1273_s3 + $0x88] sm:$0xf0]  ;;  %v864_v37 = vor.u32 %v910_v32, %v861_v34  ;;  %v847_v39 = vld [vmem:[%s1273_s3 + $0x60] sm:$0xf] }
  0x16   : > { %v357_v12 = vmul.f32 128.0, %v963_v11  ;;  %vm361_vm0 = vweird.f32 %v963_v11  ;;  %559 = vmatpush.bf16.msra.mxu0 %v872_v24  ;;  %v860_v33 = vor.u32 %v911_v31, %v859_v30  ;;  %v868_v38 = vor.u32 %v912_v36, %v867_v35  ;;  %v908_v40 = vld [vmem:[%s1273_s3 + $0x68] sm:$0xf0]  ;;  %v907_v41 = vld [vmem:[%s1273_s3 + $0x64] sm:$0xf] }
  0x17   : > { %572 = vmatpush.bf16.msra.mxu1 %v876_v28  ;;  %585 = vmatpush.bf16.msra.mxu2 %v880_v29  ;;  %v848_v42 = vor.u32 %v908_v40, %v847_v39  ;;  %v849_v43 = vld [vmem:[%s1273_s3 + $0x6c] sm:$0xf0]  ;;  %v855_v44 = vld [vmem:[%s1273_s3 + $0x68] sm:$0xf]  ;;  %v909_v45 = vld [vmem:[%s1273_s3 + $0x70] sm:$0xf0] }
  0x18   : > { %v358_v13 = vsub.f32 1.0, %v357_v12  ;;  %v852_v46 = vor.u32 %v907_v41, %v849_v43  ;;  %v856_v47 = vor.u32 %v909_v45, %v855_v44  ;;  %v835_v48 = vld [vmem:[%s1273_s3 + $0x48] sm:$0xf]  ;;  %v905_v49 = vld [vmem:[%s1273_s3 + $0x50] sm:$0xf0] }
  0x19   : > { %v904_v50 = vld [vmem:[%s1273_s3 + $0x4c] sm:$0xf]  ;;  %v836_v51 = vor.u32 %v905_v49, %v835_v48  ;;  %v837_v52 = vld [vmem:[%s1273_s3 + $0x54] sm:$0xf0]  ;;  %v843_v53 = vld [vmem:[%s1273_s3 + $0x50] sm:$0xf] }
  0x1a   : > { %v359_v14 = vmul.f32 %v963_v11, %v358_v13  ;;  %560 = vmatpush.bf16.msra.mxu0 %v860_v33  ;;  %v906_v54 = vld [vmem:[%s1273_s3 + $0x58] sm:$0xf0]  ;;  %v840_v55 = vor.u32 %v904_v50, %v837_v52  ;;  %v823_v57 = vld [vmem:[%s1273_s3 + $0x30] sm:$0xf]  ;;  %v901_v59 = vld [vmem:[%s1273_s3 + $0x34] sm:$0xf] }
  0x1b   : > { %573 = vmatpush.bf16.msra.mxu1 %v864_v37  ;;  %586 = vmatpush.bf16.msra.mxu2 %v868_v38  ;;  %v844_v56 = vor.u32 %v906_v54, %v843_v53  ;;  %v902_v58 = vld [vmem:[%s1273_s3 + $0x38] sm:$0xf0]  ;;  %v825_v61 = vld [vmem:[%s1273_s3 + $0x3c] sm:$0xf0]  ;;  %v831_v62 = vld [vmem:[%s1273_s3 + $0x38] sm:$0xf] }
  0x1c   : > { %v360_v15 = vadd.f32 %v963_v11, %v359_v14  ;;  %v824_v60 = vor.u32 %v902_v58, %v823_v57  ;;  %v903_v63 = vld [vmem:[%s1273_s3 + $0x40] sm:$0xf0]  ;;  %v811_v2 = vld [vmem:[%s1273_s3 + $0x18] sm:$0xf]  ;;  %v898_v4 = vld [vmem:[%s1273_s3 + $0x1c] sm:$0xf] }
  0x1d   : > { %v832_v1 = vor.u32 %v903_v63, %v831_v62  ;;  %v899_v3 = vld [vmem:[%s1273_s3 + $0x20] sm:$0xf0]  ;;  %v813_v6 = vld [vmem:[%s1273_s3 + $0x24] sm:$0xf0]  ;;  %v819_v7 = vld [vmem:[%s1273_s3 + $0x20] sm:$0xf] }
  0x1e   : > { %v1101_v16 = vsel %vm361_vm0, %v963_v11, %v360_v15  ;;  %561 = vmatpush.bf16.msra.mxu0 %v848_v42  ;;  %v812_v5 = vor.u32 %v899_v3, %v811_v2  ;;  %v900_v8 = vld [vmem:[%s1273_s3 + $0x28] sm:$0xf0]  ;;  %v816_v9 = vor.u32 %v898_v4, %v813_v6  ;;  %v799_v11 = vld [vmem:[%s1273_s3] sm:$0xf]  ;;  %v895_v13 = vld [vmem:[%s1273_s3 + $0x4] sm:$0xf] }
  0x1f   : > { %574 = vmatpush.bf16.msra.mxu1 %v852_v46  ;;  %587 = vmatpush.bf16.msra.mxu2 %v856_v47  ;;  %v820_v10 = vor.u32 %v900_v8, %v819_v7  ;;  %v896_v12 = vld [vmem:[%s1273_s3 + $0x8] sm:$0xf0]  ;;  %v801_v15 = vld [vmem:[%s1273_s3 + $0xc] sm:$0xf0]  ;;  %v960_v31 = vld [vmem:[%s1271_s1] ss:$0 sm:$0xff] }
  0x20   : > { %v800_v14 = vor.u32 %v896_v12, %v799_v11  ;;  %v422_v37 = vld [vmem:[%s1274_s4] sm:$0x7] }
  0x21   : > { %v424_v38 = vperm.slane %v422_v37, 0  ;;  %v425_v39 = vperm.slane %v422_v37, 1  ;;  %v426_v45 = vperm.slane %v422_v37, 2 }
  0x22   : > { %562 = vmatpush.bf16.msra.mxu0 %v836_v51 }
  0x23   : > { %575 = vmatpush.bf16.msra.mxu1 %v840_v55  ;;  %588 = vmatpush.bf16.msra.mxu2 %v844_v56 }
  0x26   : > { %563 = vmatpush.bf16.msra.mxu0 %v824_v60 }
  0x27   : > { %589 = vmatpush.bf16.msra.mxu2 %v832_v1 }
  0x2a   : > { %564 = vmatpush.bf16.msra.mxu0 %v812_v5 }
  0x2b   : > { %590 = vmatpush.bf16.msra.mxu2 %v820_v10 }
  0x2e   : > { %565 = vmatpush.bf16.msra.mxu0 %v800_v14 }
  0x87   : > { %v355_v17 = vpop.xlane.xlu0 %354 }
  0x88   : > { %v363_v18 = vmul.f32 %v1101_v16, %v355_v17  ;;  %v807_v17 = vld [vmem:[%s1273_s3 + $0x8] sm:$0xf] }
  0x8a   : > { %v1104_v19 = vsub.f32 %v351_v0, %v363_v18  ;;  %v828_v0 = vor.u32 %v901_v59, %v825_v61  ;;  %v897_v18 = vld [vmem:[%s1273_s3 + $0x10] sm:$0xf0] }
  0x8b   : > { %v808_v21 = vor.u32 %v897_v18, %v807_v17 }
  0x8c   : > { %v365_v20 = vmul.f32 %v1104_v19, %v1104_v19  ;;  %576 = vmatpush.bf16.msra.mxu1 %v828_v0 }
  0x8d   : > { %591 = vmatpush.bf16.msra.mxu2 %v808_v21 }
  0x8e   : > { %366 = vadd.xlane.f32.xlu0 %v365_v20  ;;  %v804_v20 = vor.u32 %v895_v13, %v801_v15 }
  0x90   : > { %577 = vmatpush.bf16.msra.mxu1 %v816_v9 }
  0x94   : > { %578 = vmatpush.bf16.msra.mxu1 %v804_v20 }
 0x101   : > { %v367_v22 = vpop.xlane.xlu0 %366 }
 0x102   : > { %v368_v23 = vmul.f32 %v367_v22, %v1101_v16  ;;  %v961_v16 = vld [vmem:[%s1272_s2] ss:$0 sm:$0xff] }
 0x104   : > { %v369_v24 = vadd.f32 1e-05, %v368_v23 }
 0x106   : > { %964 = vrsqrt.f32 %v369_v24  ;;  %vm376_vm2 = vweird.f32 %v369_v24 }
 0x10c   : > { %v965_v25 = vpop.eup %964 }
 0x10d   : > { %v371_v26 = vmul.f32 %v965_v25, %v369_v24  ;;  %vm377_vm1 = vweird.f32 %v965_v25 }
 0x10e   : > { %vm378_vm3 = vmor %vm376_vm2, %vm377_vm1 }
 0x10f   : > { %v372_v27 = vmul.f32 %v965_v25, %v371_v26 }
 0x111   : > { %v373_v28 = vmul.f32 0.5, %v372_v27 }
 0x113   : > { %v374_v29 = vsub.f32 1.5, %v373_v28 }
 0x115   : > { %v375_v30 = vmul.f32 %v965_v25, %v374_v29 }
 0x117   : > { %v379_v32 = vsel %vm378_vm3, %v965_v25, %v375_v30 }
 0x118   : > { %v380_v33 = vmul.f32 %v379_v32, %v1104_v19 }
 0x11a   : > { %v384_v34 = vmul.f32 %v960_v31, %v380_v33 }
 0x11c   : > { %v388_v35 = vadd.f32 %v961_v16, %v384_v34 }
 0x11e   : > { %v389_v36 = vpack.c.bf16 %v388_v35, %v388_v35 }
 0x120   : > { %566 = vmatmul.bf16.vlgmr.msra.gmra.mxu0 %v389_v36  ;;  %579 = vmatmul.bf16.vlgmr.msra.gmra.mxu1 %v389_v36 }
 0x121   : > { %592 = vmatmul.bf16.vlgmr.msra.gmra.mxu2 %v389_v36 }
 0x19d   : > { %v567_v40 = vpop.f32.mrf.mxu0  ;;  %v580_v41 = vpop.f32.mrf.mxu1 }
 0x19e   : > { %v568_v19 = vadd.f32 %v567_v40, %v424_v38  ;;  %v581_v42 = vadd.f32 %v580_v41, %v425_v39 }
 0x1a0   : > { %v597_v43 = vmul.f32 0.17677669, %v568_v19  ;;  %v600_v44 = vpack.c.bf16 %v581_v42, %v581_v42 }
 0x1a2   : > { %v598_v46 = vpack.c.bf16 %v597_v43, %v597_v43  ;;  %601 = vst [vmem:[%s342_s17] sm:$0xf] %v600_v44 }
 0x1a4   : > { %599 = vst [vmem:[%s334_s20] sm:$0xf] %v598_v46  ;;  %v593_v47 = vpop.f32.mrf.mxu2 }
 0x1a5   : > { %v594_v48 = vadd.f32 %v593_v47, %v426_v45  ;;  %v569_v49 = vpop.f32.mrf.mxu0  ;;  %v582_v50 = vpop.f32.mrf.mxu1 }
 0x1a7   : > { %v602_v51 = vpack.c.bf16 %v594_v48, %v594_v48 }
 0x1a9   : > { %603 = vst [vmem:[%s350_s22] sm:$0xf] %v602_v51 }
 0x1ac   : > { %v595_v52 = vpop.f32.mrf.mxu2 }
 0x1ad PF: > { %s18_s28 = sadd.s32 1, %s1004_s28   ;;  %s1278_s24 = smov %s996_s26 }
 0x1ae   : > { %p15_p7 = scmp.ge.s32.totalorder %s18_s28, 6   ;;  %s1279_s25 = smov %s1000_s27 }
 0x1af   : > { %s1280_s26 = smov %s1283_s29  ;;  %s1281_s27 = smov %s1287_s30 }
 0x1b0   :  { %17 = sbr.rel (!%p15_p7) target bundleno = 3 (0x3), region = 94 }

// kernel: whisper_audio_encoder.15
= control target key start
LH: loop header
LB: loop body
LE: loop exit
PB: predicated region body
PF: predicated region fallthrough
CT: control target
= control target key end

     0   :  { %s1636_s0 = inlined_call_operand.vmem [shape: f32[2,16,128], index: 0, kind: input, shape index: {}]   ;;  %s1637_s1 = inlined_call_operand.vmem [shape: f32[1,128], index: 1, kind: input, shape index: {}]   ;;  %s1638_s2 = inlined_call_operand.vmem [shape: f32[1,128], index: 2, kind: input, shape index: {}]   ;;  %s1639_s3 = inlined_call_operand.vmem [shape: bf16[128,256], index: 3, kind: input, shape index: {}]   ;;  %s1640_s4 = inlined_call_operand.vmem [shape: f32[1,256], index: 4, kind: input, shape index: {}]   ;;  %s1641_s5 = inlined_call_operand.vmem [shape: bf16[256,128], index: 5, kind: input, shape index: {}]   ;;  %s1642_s6 = inlined_call_operand.vmem [shape: f32[1,128], index: 6, kind: input, shape index: {}]   ;;  %s1643_s7 = inlined_call_operand.vmem [shape: f32[1,128], index: 7, kind: input, shape index: {}]   ;;  %s1644_s8 = inlined_call_operand.vmem [shape: f32[1,128], index: 8, kind: input, shape index: {}]   ;;  %s1645_s9 = inlined_call_operand.hbm [shape: f32[2,16,128], index: 9, kind: output, shape index: {}]  }
   0x1   :  { %1656 = sst [smem:[#allocation18_spill]] %s1639_s3 }
   0x2   :  { %1657 = sst [smem:[#allocation19_spill]] %s1643_s7 }
   0x3   :  { %1658 = sst [smem:[#allocation20_spill]] %s1644_s8 }
   0x4   :  { %1659 = sst [smem:[#allocation21_spill]] %s1645_s9 }
   0x5   :  { %14 = vsyncpa [#allocation6], 0 }
   0x6   :  { %16 = vsyncpa [#allocation6 + $0x1], 0  ;;  %s1369_s30 = smov 0   ;;  %s1371_s10 = smov 0  }
   0x7   :  { %s1373_s11 = smov 0   ;;  %s1375_s12 = smov 0  }
   0x8   :  { %s1377_s13 = smov 0   ;;  %s1379_s14 = smov 0  }
   0x9   :  { %s1381_s15 = smov 0   ;;  %s1383_s16 = smov 0  }
   0xa   :  { %s1385_s17 = smov 0   ;;  %s1387_s18 = smov 0  }
   0xb   :  { %s1389_s19 = smov 0   ;;  %s1391_s20 = smov 0  }
   0xc LB: > { %1660 = sst [smem:[#allocation8_spill]] %s1278_s11  ;;  %s965_s21 = sadd.s32 4294967295, %s1314_s20   ;;  %s1314_s20 = sphi %s1391_s20, %s22_s20   ;;  %s1310_s19 = sphi %s1389_s19, %s1687_s19   ;;  %s1306_s18 = sphi %s1387_s18, %s1686_s18   ;;  %s1302_s17 = sphi %s1385_s17, %s1685_s17   ;;  %s1298_s16 = sphi %s1383_s16, %s1684_s16   ;;  %s1294_s15 = sphi %s1381_s15, %s1683_s15   ;;  %s1290_s14 = sphi %s1379_s14, %s1682_s14   ;;  %s1286_s13 = sphi %s1377_s13, %s1681_s13   ;;  %s1282_s12 = sphi %s1375_s12, %s1680_s12   ;;  %s1278_s11 = sphi %s1373_s11, %s1679_s11   ;;  %s1274_s10 = sphi %s1371_s10, %s1689_s10   ;;  %s1270_s30 = sphi %s1369_s30, %s1688_s30  }
   0xd   : > { %1661 = sst [smem:[#allocation9_spill]] %s1286_s13  ;;  %s966_s22 = sadd.s32 4294967294, %s1314_s20  }
   0xe   : > { %1662 = sst [smem:[#allocation10_spill]] %s1302_s17  ;;  %s34_s23 = sadd.s32 1, %s1302_s17 }
   0xf   : > { %1663 = sst [smem:[#allocation11_spill]] %s1306_s18  ;;  %p35_p0 = scmp.ge.s32.totalorder %s34_s23, 2 }
  0x10   : > { %1664 = sst [smem:[#allocation12_spill]] %s1310_s19  ;;  %s37_s24 = sadd.s32 1, %s1306_s18 }
  0x11   : > { %s41_s25 = sadd.s32 1, %s1310_s19  ;;  %p125_p1 = scmp.ne.s32.totalorder %s1286_s13, %s1282_s12 }
  0x12   : > { %s1691_s23 = smov (%p35_p0, %s34_s23), 0  ;;  %s1693_s24 = smov (!%p35_p0, %s37_s24), %s1306_s18 }
  0x13   : > { %1665 = sst [smem:[#allocation13_spill]] %s1691_s23  ;;  %s115_s26 = ssub.s32 %s1302_s17, %s1691_s23 }
  0x14   : > { %p126_p2 = scmp.eq.s32.totalorder %s1314_s20, 0  ;;  %p39_p3 = scmp.ge.s32.totalorder %s1693_s24, 2 }
  0x15   : > { %p116_p4 = scmp.eq.s32.totalorder %s115_s26, 0  ;;  %s118_s27 = sadd.s32 1, %s1286_s13 }
  0x16   : > { %p1443_p5 = por %p126_p2, %p125_p1  ;;  %s1695_s24 = smov (%p39_p3, %s1693_s24), 0 }
  0x17   : > { %1667 = sst [smem:[#allocation14_spill]] %s1695_s24  ;;  %s1697_s25 = smov (!%p39_p3, %s41_s25), %s1310_s19 }
  0x18   : > { %s1451_s29 = scalar_select %p116_p4, %s1286_s13, %s118_s27  }
  0x19   : > { %p43_p6 = scmp.ge.s32.totalorder %s1697_s25, 2  ;;  %s257_s9 = ssub.s32 %s1306_s18, %s1695_s24 }
  0x1a   : > { %1668 = sst [smem:[#allocation15_spill]] %s1451_s29  ;;  %p271_p7 = scmp.ne.s32.totalorder %s1278_s11, %s1274_s10 }
  0x1b   : > { %p272_p8 = scmp.eq.s32.totalorder %s965_s21, 7  ;;  %s1699_s25 = smov (%p43_p6, %s1697_s25), 0 }
  0x1c   : > { %1669 = sst [smem:[#allocation16_spill]] %s1699_s25  ;;  %p277_p10 = scmp.ne.s32.totalorder %s1274_s10, %s1270_s30 }
  0x1d   : > { %p1459_p9 = por %p272_p8, %p271_p7  ;;  %s256_s23 = ssub.s32 %s1310_s19, %s1699_s25 }
  0x1e   : > { %p278_p11 = scmp.eq.s32.totalorder %s966_s22, 7  ;;  %s258_s8 = sor.u32 %s257_s9, %s256_s23 }
  0x1f   : > { %s261_s7 = sadd.s32 1, %s1278_s11  ;;  %p259_p12 = scmp.eq.s32.totalorder %s258_s8, 0 }
  0x20   : > { %p1468_p13 = por %p278_p11, %p277_p10  ;;  %p968_p0 = scmp.ge.s32.totalorder %s1314_s20, 8 }
  0x21   : > { %s1473_s24 = scalar_select %p259_p12, %s1278_s11, %s261_s7  }
  0x22   : > { %309 = sbr.rel (%p968_p0) target bundleno = 65 (0x41), region = 36 }
  0x23   : > { %1672 = sst [smem:[#allocation17_spill]] %s1473_s24 }
  0x27   : > { %323 = sbr.rel (!%p1443_p5) target bundleno = 65 (0x41), region = 44  ;;  %s325_s21 = sand.u32 (%p1443_p5), 1, %s1286_s13  }
  0x28   : > { %s970_s25 = sshll.u32 (%p1443_p5), %s1302_s17, 2  ;;  %s969_s22 = sshll.u32 (%p1443_p5), %s325_s21, 6 }
  0x29   : > { %s1673_s3 = sld [smem:[#allocation18_spill]] (%p1443_p5)  ;;  %s327_s7 = scalar_lea.vmem (%p1443_p5), [#allocation4], %s969_s22 }
  0x2f   : > { %s1483_s8 = scalar_lea.vmem %s1673_s3, %s970_s25 }
  0x30   : > { %v346_v0 = vld [vmem:[%s1483_s8] sm:$0xf]  ;;  %v348_v1 = vld [vmem:[%s1483_s8 + $0x8] sm:$0xf]  ;;  %v350_v2 = vld [vmem:[%s1483_s8 + $0x10] sm:$0xf] }
  0x31   : > { %347 = vst [vmem:[%s327_s7] sm:$0xf] %v346_v0  ;;  %v352_v3 = vld [vmem:[%s1483_s8 + $0x18] sm:$0xf]  ;;  %v354_v4 = vld [vmem:[%s1483_s8 + $0x20] sm:$0xf] }
  0x32   : > { %349 = vst [vmem:[%s327_s7 + $0x4] sm:$0xf] %v348_v1  ;;  %v356_v5 = vld [vmem:[%s1483_s8 + $0x28] sm:$0xf]  ;;  %v358_v6 = vld [vmem:[%s1483_s8 + $0x30] sm:$0xf] }
  0x33   : > { %351 = vst [vmem:[%s327_s7 + $0x8] sm:$0xf] %v350_v2  ;;  %v360_v7 = vld [vmem:[%s1483_s8 + $0x38] sm:$0xf]  ;;  %v362_v8 = vld [vmem:[%s1483_s8 + $0x40] sm:$0xf] }
  0x34   : > { %353 = vst [vmem:[%s327_s7 + $0xc] sm:$0xf] %v352_v3  ;;  %v364_v9 = vld [vmem:[%s1483_s8 + $0x48] sm:$0xf]  ;;  %v366_v10 = vld [vmem:[%s1483_s8 + $0x50] sm:$0xf] }
  0x35   : > { %355 = vst [vmem:[%s327_s7 + $0x10] sm:$0xf] %v354_v4  ;;  %v368_v11 = vld [vmem:[%s1483_s8 + $0x58] sm:$0xf]  ;;  %v370_v12 = vld [vmem:[%s1483_s8 + $0x60] sm:$0xf] }
  0x36   : > { %357 = vst [vmem:[%s327_s7 + $0x14] sm:$0xf] %v356_v5  ;;  %v372_v13 = vld [vmem:[%s1483_s8 + $0x68] sm:$0xf]  ;;  %v374_v14 = vld [vmem:[%s1483_s8 + $0x70] sm:$0xf] }
  0x37   : > { %359 = vst [vmem:[%s327_s7 + $0x18] sm:$0xf] %v358_v6  ;;  %v376_v15 = vld [vmem:[%s1483_s8 + $0x78] sm:$0xf] }
  0x38   : > { %361 = vst [vmem:[%s327_s7 + $0x1c] sm:$0xf] %v360_v7 }
  0x39   : > { %363 = vst [vmem:[%s327_s7 + $0x20] sm:$0xf] %v362_v8 }
  0x3a   : > { %365 = vst [vmem:[%s327_s7 + $0x24] sm:$0xf] %v364_v9 }
  0x3b   : > { %367 = vst [vmem:[%s327_s7 + $0x28] sm:$0xf] %v366_v10 }
  0x3c   : > { %369 = vst [vmem:[%s327_s7 + $0x2c] sm:$0xf] %v368_v11 }
  0x3d   : > { %371 = vst [vmem:[%s327_s7 + $0x30] sm:$0xf] %v370_v12 }
  0x3e   : > { %373 = vst [vmem:[%s327_s7 + $0x34] sm:$0xf] %v372_v13 }
  0x3f   : > { %375 = vst [vmem:[%s327_s7 + $0x38] sm:$0xf] %v374_v14 }
  0x40   : > { %377 = vst [vmem:[%s327_s7 + $0x3c] sm:$0xf] %v376_v15 }
  0x41 PF: > { %p971_p1 = scmp.ge.s32.totalorder %s1314_s20, 1  ;;  %p447_p2 = scmp.lt.s32.totalorder %s1314_s20, 9 }
  0x43   : > { %p448_p3 = pnand %p971_p1, %p447_p2 }
  0x44   : > { %s454_s25 = sand.u32 (!%p448_p3), 1, %s1282_s12   ;;  %s1653_s28 = sand.u32 (!%p448_p3), 1, %s1274_s10  }
  0x45   : > { %451 = sbr.rel (%p448_p3) target bundleno = 997 (0x3e5), region = 93  ;;  %s972_s21 = sshll.u32 (!%p448_p3), %s454_s25, 6 }
  0x46   : > { %s1507_s22 = sshll.u32 (!%p448_p3), %s1653_s28, 3  ;;  %p505_p4 = scmp.lt.s32.totalorder (!%p448_p3), %s1298_s16, 1 }
  0x47   : > { %p507_p5 = scmp.lt.s32.totalorder (!%p448_p3), %s1294_s15, 1  ;;  %s976_s9 = sshll.u32 (!%p448_p3), %s1290_s14, 4 }
  0x48   : > { %p513_p6 = scmp.lt.s32.totalorder (!%p448_p3), %s1290_s14, 1  ;;  %p517_p7 = scmp.lt.s32.totalorder (!%p448_p3), %s976_s9, 31 }
  0x49   : > { %p978_p8 = scmp.ne.s32.totalorder (!%p448_p3), %s1290_s14, 0 }
  0x4a   : > { %s506_s23 = scalar_select %p505_p4, %s1298_s16, 1 }
  0x4b   : > { %s508_s8 = scalar_select %p507_p5, %s1294_s15, 1 }
  0x4c   : > { %s974_s7 = sshll.u32 %s506_s23, 1  ;;  %s1701_s9 = smov (!%p517_p7, %s976_s9), 31 }
  0x4d   : > { %s510_s3 = sadd.s32 %s974_s7, %s508_s8  ;;  %s977_s24 = sshll.u32 %s1701_s9, 2 }
  0x4e   : > { %s975_s19 = sshll.u32 %s510_s3, 3  ;;  %s1530_s8 = scalar_lea.vmem %s1641_s5, %s977_s24 }
  0x4f   : > { %s1518_s12 = scalar_lea.vmem %s1636_s0, %s975_s19  ;;  %s1532_s3 = scalar_lea.vmem [#allocation4], %s972_s21 }
  0x50   : > { %s1521_s25 = scalar_select %p513_p6, %s1290_s14, 1 }
  0x51   : > { %s504_s7 = scalar_lea.vmem [#allocation5], %s1507_s22  ;;  %525 = sbr.rel (%p978_p8) target bundleno = 356 (0x164), region = 101 }
  0x52   : > { %s515_s13 = scalar_lea.vmem %s1640_s4, %s1521_s25 }
  0x56   : > { %v526_v16 = vld [vmem:[%s1518_s12] sm:$0xff]  ;;  %v1316_v17 = vmov 128.0   ;;  %v1317_v28 = vmov 0.0  }
  0x57   : > { %529 = vadd.xlane.f32.xlu0 %v526_v16  ;;  %1174 = vrcp.f32 %v1316_v17  ;;  %566 = vst [vmem:[#allocation3] sm:$0xff] %v1317_v28  ;;  %v1172_v38 = vld [vmem:[%s1637_s1] ss:$0 sm:$0xff] }
  0x58   : > { %v1173_v40 = vld [vmem:[%s1638_s2] ss:$0 sm:$0xff] }
  0x5d   : > { %v1175_v18 = vpop.eup %1174 }
  0x5e   : > { %v532_v19 = vmul.f32 128.0, %v1175_v18  ;;  %vm536_vm0 = vweird.f32 %v1175_v18 }
  0x60   : > { %v533_v20 = vsub.f32 1.0, %v532_v19 }
  0x62   : > { %v534_v21 = vmul.f32 %v1175_v18, %v533_v20 }
  0x64   : > { %v535_v22 = vadd.f32 %v1175_v18, %v534_v21 }
  0x66   : > { %v537_v23 = vsel %vm536_vm0, %v1175_v18, %v535_v22 }
  0xca   : > { %v530_v24 = vpop.xlane.xlu0 %529 }
  0xcb   : > { %v538_v25 = vmul.f32 %v537_v23, %v530_v24 }
  0xcd   : > { %v539_v26 = vsub.f32 %v526_v16, %v538_v25 }
  0xcf   : > { %v540_v27 = vmul.f32 %v539_v26, %v539_v26 }
  0xd1   : > { %541 = vadd.xlane.f32.xlu0 %v540_v27 }
 0x144   : > { %v542_v29 = vpop.xlane.xlu0 %541 }
 0x145   : > { %v543_v30 = vmul.f32 %v542_v29, %v537_v23 }
 0x147   : > { %v544_v31 = vadd.f32 1e-05, %v543_v30 }
 0x149   : > { %1176 = vrsqrt.f32 %v544_v31  ;;  %vm551_vm2 = vweird.f32 %v544_v31 }
 0x14f   : > { %v1177_v32 = vpop.eup %1176 }
 0x150   : > { %v546_v33 = vmul.f32 %v1177_v32, %v544_v31  ;;  %vm552_vm1 = vweird.f32 %v1177_v32 }
 0x151   : > { %vm553_vm3 = vmor %vm551_vm2, %vm552_vm1 }
 0x152   : > { %v547_v34 = vmul.f32 %v1177_v32, %v546_v33 }
 0x154   : > { %v548_v35 = vmul.f32 0.5, %v547_v34 }
 0x156   : > { %v549_v36 = vsub.f32 1.5, %v548_v35 }
 0x158   : > { %v550_v37 = vmul.f32 %v1177_v32, %v549_v36 }
 0x15a   : > { %v554_v39 = vsel %vm553_vm3, %v1177_v32, %v550_v37 }
 0x15b   : > { %v555_v41 = vmul.f32 %v554_v39, %v539_v26 }
 0x15d   : > { %v559_v42 = vmul.f32 %v1172_v38, %v555_v41 }
 0x15f   : > { %v563_v43 = vadd.f32 %v1173_v40, %v559_v42 }
 0x161   : > { %v564_v44 = vpack.c.bf16 %v563_v43, %v563_v43 }
 0x163   : > { %565 = vst [vmem:[#allocation2] sm:$0xf] %v564_v44 }
 0x164 PF: > { %v1057_v45 = vld [vmem:[%s1532_s3 + $0x38] sm:$0xff]  ;;  %v1056_v46 = vld [vmem:[%s1532_s3 + $0x30] sm:$0xff]  ;;  %v1055_v47 = vld [vmem:[%s1532_s3 + $0x28] sm:$0xff]  ;;  %p1044_p10 = scmp.ne.s32.totalorder %s1290_s14, 1 }
 0x165   : > { %636 = vmatpush.bf16.msra.mxu0 %v1057_v45  ;;  %v1054_v48 = vld [vmem:[%s1532_s3 + $0x20] sm:$0xff]  ;;  %v1053_v49 = vld [vmem:[%s1532_s3 + $0x18] sm:$0xff]  ;;  %v1052_v50 = vld [vmem:[%s1532_s3 + $0x10] sm:$0xff]  ;;  %s1674_s9 = sld [smem:[#allocation19_spill]] (!%p1044_p10) }
 0x166   : > { %v1051_v51 = vld [vmem:[%s1532_s3 + $0x8] sm:$0xff]  ;;  %v1050_v52 = vld [vmem:[%s1532_s3] sm:$0xff]  ;;  %v1178_v56 = vld [vmem:[%s515_s13] ss:$0 sm:$0xff]  ;;  %s1675_s23 = sld [smem:[#allocation20_spill]] (!%p1044_p10) }
 0x167   : > { %v1065_v54 = vld [vmem:[%s1530_s8 + $0x38] sm:$0xff]  ;;  %v1064_v55 = vld [vmem:[%s1530_s8 + $0x30] sm:$0xff]  ;;  %v1063_v57 = vld [vmem:[%s1530_s8 + $0x28] sm:$0xff] }
 0x168   : > { %759 = vmatpush.bf16.msra.mxu1 %v1065_v54  ;;  %v1062_v60 = vld [vmem:[%s1530_s8 + $0x20] sm:$0xff]  ;;  %v1061_v63 = vld [vmem:[%s1530_s8 + $0x18] sm:$0xff]  ;;  %v1060_v3 = vld [vmem:[%s1530_s8 + $0x10] sm:$0xff] }
 0x169   : > { %637 = vmatpush.bf16.msra.mxu0 %v1056_v46  ;;  %v1059_v8 = vld [vmem:[%s1530_s8 + $0x8] sm:$0xff]  ;;  %v1058_v12 = vld [vmem:[%s1530_s8] sm:$0xff] }
 0x16a   : > { %v567_v53 = vld [vmem:[#allocation2] sm:$0xf]  ;;  %v693_v42 = vld [vmem:[#allocation3] sm:$0xff] }
 0x16c   : > { %760 = vmatpush.bf16.msra.mxu1 %v1064_v55 }
 0x16d   : > { %638 = vmatpush.bf16.msra.mxu0 %v1055_v47 }
 0x170   : > { %761 = vmatpush.bf16.msra.mxu1 %v1063_v57 }
 0x171   : > { %639 = vmatpush.bf16.msra.mxu0 %v1054_v48 }
 0x174   : > { %762 = vmatpush.bf16.msra.mxu1 %v1062_v60 }
 0x175   : > { %640 = vmatpush.bf16.msra.mxu0 %v1053_v49 }
 0x178   : > { %763 = vmatpush.bf16.msra.mxu1 %v1061_v63 }
 0x179   : > { %641 = vmatpush.bf16.msra.mxu0 %v1052_v50 }
 0x17c   : > { %764 = vmatpush.bf16.msra.mxu1 %v1060_v3 }
 0x17d   : > { %642 = vmatpush.bf16.msra.mxu0 %v1051_v51 }
 0x180   : > { %765 = vmatpush.bf16.msra.mxu1 %v1059_v8 }
 0x181   : > { %643 = vmatpush.bf16.msra.mxu0 %v1050_v52 }
 0x184   : > { %644 = vmatmul.bf16.vlgmr.msra.gmra.mxu0 %v567_v53  ;;  %766 = vmatpush.bf16.msra.mxu1 %v1058_v12 }
 0x201   : > { %v645_v58 = vpop.f32.mrf.mxu0 }
 0x202   : > { %v646_v59 = vadd.f32 %v1178_v56, %v645_v58 }
 0x204   : > { %v650_v61 = vmul.f32 0.70710677, %v646_v59  ;;  %v649_v38 = vmul.f32 0.5, %v646_v59 }
 0x206   : > { %v651_v62 = vmul.f32 %v650_v61, %v650_v61 }
 0x208   : > { %v652_v0 = vmin.f32 %v651_v62, 16.0 }
 0x209   : > { %v647_v1 = vpop.f32.mrf.mxu0 }
 0x20a   : > { %v653_v2 = vmul.f32 2.1237322e-06, %v652_v0  ;;  %v664_v4 = vmul.f32 3.8918573e-05, %v652_v0 }
 0x20c   : > { %v654_v5 = vadd.f32 0.00028619796, %v653_v2  ;;  %v665_v6 = vadd.f32 0.001143296, %v664_v4 }
 0x20e   : > { %v655_v7 = vmul.f32 %v654_v5, %v652_v0  ;;  %v666_v9 = vmul.f32 %v665_v6, %v652_v0 }
 0x210   : > { %v667_v10 = vadd.f32 0.014752088, %v666_v9  ;;  %v656_v11 = vadd.f32 0.0036580483, %v655_v7 }
 0x212   : > { %v668_v13 = vmul.f32 %v667_v10, %v652_v0  ;;  %v657_v15 = vmul.f32 %v656_v11, %v652_v0 }
 0x214   : > { %v669_v14 = vadd.f32 0.112945676, %v668_v13  ;;  %v658_v18 = vadd.f32 0.05243302, %v657_v15 }
 0x216   : > { %v670_v16 = vmul.f32 %v669_v14, %v652_v0  ;;  %v659_v21 = vmul.f32 %v658_v18, %v652_v0 }
 0x218   : > { %v671_v17 = vadd.f32 0.4994258, %v670_v16  ;;  %v660_v22 = vadd.f32 0.18741608, %v659_v21 }
 0x21a   : > { %v672_v19 = vmul.f32 %v671_v17, %v652_v0  ;;  %v661_v24 = vmul.f32 %v660_v22, %v652_v0 }
 0x21c   : > { %v673_v20 = vadd.f32 1.0, %v672_v19  ;;  %v662_v28 = vadd.f32 1.1283791, %v661_v24 }
 0x21e   : > { %1179 = vrcp.f32 %v673_v20  ;;  %v685_v27 = vand.u32 2147483648, %v673_v20  ;;  %v683_v30 = vand.u32 2147483647, %v673_v20  ;;  %vm679_vm5 = vweird.f32 %v673_v20 }
 0x21f   : > { %v663_v33 = vmul.f32 %v662_v28, %v650_v61 }
 0x220   : > { %v686_v32 = vor.u32 1.1754944e-38, %v685_v27  ;;  %vm684_vm7 = vcmp.eq.f32.partialorder %v683_v30, 8.507059e+37 }
 0x224   : > { %v1180_v23 = vpop.eup %1179 }
 0x225   : > { %v675_v25 = vmul.f32 %v1180_v23, %v673_v20  ;;  %vm680_vm4 = vweird.f32 %v1180_v23 }
 0x226   : > { %vm681_vm6 = vmor %vm679_vm5, %vm680_vm4 }
 0x227   : > { %v676_v26 = vsub.f32 1.0, %v675_v25 }
 0x229   : > { %v677_v29 = vmul.f32 %v1180_v23, %v676_v26 }
 0x22b   : > { %v678_v31 = vadd.f32 %v1180_v23, %v677_v29 }
 0x22d   : > { %v682_v34 = vsel %vm681_vm6, %v1180_v23, %v678_v31 }
 0x22e   : > { %v687_v35 = vsel %vm684_vm7, %v686_v32, %v682_v34 }
 0x22f   : > { %v688_v36 = vmul.f32 %v687_v35, %v663_v33 }
 0x231   : > { %v1011_v37 = vclamps-f32 %v688_v36, 1.0 }
 0x233   : > { %v691_v39 = vadd.f32 1.0, %v1011_v37 }
 0x235   : > { %v692_v40 = vmul.f32 %v691_v39, %v649_v38 }
 0x237   : > { %v694_v41 = vpack.c.bf16 %v692_v40, %v692_v40 }
 0x239   : > { %767 = vmatmul.bf16.vlgmr.msra.gmra.mxu1 %v694_v41 }
 0x2b6   : > { %v768_v43 = vpop.f32.mrf.mxu1 }
 0x2b7   : > { %v772_v44 = vadd.f32 %v768_v43, %v693_v42 }
 0x2b9   : > { %773 = vst [vmem:[#allocation3] sm:$0xff] %v772_v44 }
 0x2ba   : > { %777 = sbr.rel (%p1044_p10) target bundleno = 976 (0x3d0), region = 105 }
 0x2be   : > { %v770_v45 = vpop.f32.mrf.mxu1 }
 0x2bf   : > { %v778_v46 = vld [vmem:[%s1518_s12] sm:$0xff]  ;;  %v1318_v51 = vmov 128.0  }
 0x2c0   : > { %v779_v47 = vld [vmem:[#allocation3] sm:$0xff]  ;;  %v1181_v49 = vld [vmem:[%s1642_s6] ss:$0 sm:$0xff]  ;;  %1184 = vrcp.f32 %v1318_v51 }
 0x2c1   : > { %v780_v48 = vadd.f32 %v779_v47, %v778_v46  ;;  %v1182_v7 = vld [vmem:[%s1674_s9] ss:$0 sm:$0xff] }
 0x2c2   : > { %v1183_v9 = vld [vmem:[%s1675_s23] ss:$0 sm:$0xff] }
 0x2c3   : > { %v785_v50 = vadd.f32 %v1181_v49, %v780_v48 }
 0x2c5   : > { %788 = vadd.xlane.f32.xlu0 %v785_v50 }
 0x2c6   : > { %v1185_v52 = vpop.eup %1184 }
 0x2c7   : > { %v791_v53 = vmul.f32 128.0, %v1185_v52  ;;  %vm795_vm8 = vweird.f32 %v1185_v52 }
 0x2c9   : > { %v792_v54 = vsub.f32 1.0, %v791_v53 }
 0x2cb   : > { %v793_v55 = vmul.f32 %v1185_v52, %v792_v54 }
 0x2cd   : > { %v794_v56 = vadd.f32 %v1185_v52, %v793_v55 }
 0x2cf   : > { %v796_v57 = vsel %vm795_vm8, %v1185_v52, %v794_v56 }
 0x338   : > { %v789_v58 = vpop.xlane.xlu0 %788 }
 0x339   : > { %v797_v59 = vmul.f32 %v796_v57, %v789_v58 }
 0x33b   : > { %v798_v60 = vsub.f32 %v785_v50, %v797_v59 }
 0x33d   : > { %v799_v61 = vmul.f32 %v798_v60, %v798_v60 }
 0x33f   : > { %800 = vadd.xlane.f32.xlu0 %v799_v61 }
 0x3b2   : > { %v801_v62 = vpop.xlane.xlu0 %800 }
 0x3b3   : > { %v802_v63 = vmul.f32 %v801_v62, %v796_v57 }
 0x3b5   : > { %v803_v0 = vadd.f32 1e-05, %v802_v63 }
 0x3b7   : > { %1186 = vrsqrt.f32 %v803_v0  ;;  %vm810_vm10 = vweird.f32 %v803_v0 }
 0x3bd   : > { %v1187_v1 = vpop.eup %1186 }
 0x3be   : > { %v805_v2 = vmul.f32 %v1187_v1, %v803_v0  ;;  %vm811_vm9 = vweird.f32 %v1187_v1 }
 0x3bf   : > { %vm812_vm11 = vmor %vm810_vm10, %vm811_vm9 }
 0x3c0   : > { %v806_v3 = vmul.f32 %v1187_v1, %v805_v2 }
 0x3c2   : > { %v807_v4 = vmul.f32 0.5, %v806_v3 }
 0x3c4   : > { %v808_v5 = vsub.f32 1.5, %v807_v4 }
 0x3c6   : > { %v809_v6 = vmul.f32 %v1187_v1, %v808_v5 }
 0x3c8   : > { %v813_v8 = vsel %vm812_vm11, %v1187_v1, %v809_v6 }
 0x3c9   : > { %v814_v10 = vmul.f32 %v813_v8, %v798_v60 }
 0x3cb   : > { %v818_v11 = vmul.f32 %v1182_v7, %v814_v10 }
 0x3cd   : > { %v822_v12 = vadd.f32 %v1183_v9, %v818_v11 }
 0x3cf   : > { %823 = vst [vmem:[%s504_s7] sm:$0xff] %v822_v12 }
 0x3d0 PF: > { %s1046_s8 = sshll.u32 %s1298_s16, 1  ;;  %s839_s11 = sshll.u32 %s504_s7, 4  ;;  %s840_s11 = int_to_ptr.vmem [resolvable:$true] %s839_s11 }
 0x3d1   : > { %s835_s3 = sadd.s32 %s1294_s15, %s1046_s8  ;;  %s1676_s24 = sld [smem:[#allocation21_spill]] }
 0x3d2   : > { %s1047_s17 = sshll.u32 %s835_s3, 3  ;;  %s1677_s28 = sand.u32 1, %s1274_s10  }
 0x3d3   : > { %s825_s14 = scalar_lea.sflag [#allocation6], %s1677_s28 }
 0x3d7   : > { %s837_s29 = scalar_lea.hbm %s1676_s24, %s1047_s17  ;;  %s1208_s22 = scalar_lea.hbm %s1676_s24, 32 }
 0x3d8   : > { %s841_s13 = sshll.u32 %s837_s29, 4  ;;  %s842_s13 = int_to_ptr.hbm [resolvable:$true] %s841_s13 }
 0x3d9   : > { %s1202_s21 = sshra.s32 %s842_s13, 4  ;;  %s1203_s21 = int_to_ptr.hbm [resolvable:$true] %s1202_s21 }
 0x3da   : > { %s1204_s9 = scalar_lea.hbm %s1203_s21, 8  ;;  %p1209_p1 = scmp.lt.s32.totalorder %s1203_s21, %s1676_s24 }
 0x3db   : > { %p1205_p11 = scmp.ne.s32.totalorder %s1203_s21, %s1204_s9  ;;  %p1210_p2 = scmp.lt.s32.totalorder %s1208_s22, %s1204_s9 }
 0x3dd   : > { %p1206_p12 = pnand %p1205_p11, %p1459_p9  ;;  %p1211_p3 = por %p1210_p2, %p1209_p1 }
 0x3df   : > { %p1207_p0 = pneg %p1206_p12 }
 0x3e1   : > { %p1212_p4 = pnand %p1211_p3, %p1207_p0 }
 0x3e3   : > { %1215 = shalt.err (!%p1212_p4)
}
 0x3e4   : > { %1066 = dma.vmem_to_hbm [thread:$0]  (%p1459_p9), %s840_s11, 128, %s842_s13, %s825_s14  }
 0x3e5 PF: > { %p1072_p5 = scmp.ge.s32.totalorder %s1314_s20, 2  ;;  %s853_s25 = sand.u32 1, %s1270_s30  }
 0x3e6   : > { %s854_s23 = scalar_lea.sflag [#allocation6], %s853_s25 }
 0x3e7   : > { %p1069_p6 = pnand %p1072_p5, %p1468_p13 }
 0x3e9   : > { %p1070_p7 = pneg %p1069_p6 }
 0x3eb   : > { %1265 = dma.done.wait (%p1070_p7), %s854_s23, 128  }
 0x3ec   : > { %1267 = vsyncadd (%p1070_p7), %s854_s23, 4294967168  ;;  %s22_s20 = sadd.s32 1, %s1314_s20   ;;  %s1678_s8 = sld [smem:[#allocation8_spill]] }
 0x3ed   : > { %p19_p8 = scmp.ge.s32.totalorder %s22_s20, 10   ;;  %s1679_s11 = sld [smem:[#allocation17_spill]] }
 0x3ee   : > { %s1680_s12 = sld [smem:[#allocation9_spill]]  ;;  %s1688_s30 = smov %s1274_s10 }
 0x3ef   : > { %s1681_s13 = sld [smem:[#allocation15_spill]] }
 0x3f0   : > { %s1682_s14 = sld [smem:[#allocation10_spill]] }
 0x3f1   : > { %s1683_s15 = sld [smem:[#allocation11_spill]]  ;;  %21 = sbr.rel (!%p19_p8) target bundleno = 12 (0xc), region = 154 }
 0x3f2   : > { %s1684_s16 = sld [smem:[#allocation12_spill]]  ;;  %s1689_s10 = smov %s1678_s8 }
 0x3f3   : > { %s1685_s17 = sld [smem:[#allocation13_spill]] }
 0x3f4   : > { %s1686_s18 = sld [smem:[#allocation14_spill]] }
 0x3f5   : > { %s1687_s19 = sld [smem:[#allocation16_spill]] }
 0x3f6   :  { %860 = vsyncpa [#allocation6], 1 }
 0x3f7   :  { %862 = vsyncpa [#allocation6 + $0x1], 1 }

// kernel: whisper_audio_encoder.12
= control target key start
LH: loop header
LB: loop body
LE: loop exit
PB: predicated region body
PF: predicated region fallthrough
CT: control target
= control target key end

     0   :  { %s1417_s0 = inlined_call_operand.vmem [shape: f32[2,16,128], index: 0, kind: input, shape index: {}]   ;;  %s1418_s1 = inlined_call_operand.vmem [shape: f32[1,128], index: 1, kind: input, shape index: {}]   ;;  %s1419_s2 = inlined_call_operand.vmem [shape: f32[1,128], index: 2, kind: input, shape index: {}]   ;;  %s1420_s3 = inlined_call_operand.vmem [shape: bf16[128,256], index: 3, kind: input, shape index: {}]   ;;  %s1421_s4 = inlined_call_operand.vmem [shape: f32[1,256], index: 4, kind: input, shape index: {}]   ;;  %s1422_s5 = inlined_call_operand.vmem [shape: bf16[256,128], index: 5, kind: input, shape index: {}]   ;;  %s1423_s6 = inlined_call_operand.vmem [shape: f32[1,128], index: 6, kind: input, shape index: {}]   ;;  %s1424_s7 = inlined_call_operand.vmem [shape: f32[1,128], index: 7, kind: input, shape index: {}]   ;;  %s1425_s8 = inlined_call_operand.vmem [shape: f32[1,128], index: 8, kind: input, shape index: {}]   ;;  %s1426_s9 = inlined_call_operand.vmem [shape: f32[2,16,128], index: 9, kind: output, shape index: {}]  }
   0x1   :  { %1427 = sst [smem:[#allocation7_spill]] %s1420_s3 }
   0x2   :  { %s1233_s30 = smov 0   ;;  %s1235_s10 = smov 0  }
   0x3   :  { %s1237_s11 = smov 0   ;;  %s1239_s12 = smov 0  }
   0x4   :  { %s1241_s13 = smov 0   ;;  %s1243_s14 = smov 0  }
   0x5   :  { %s1245_s15 = smov 0   ;;  %s1247_s7 = smov 0  }
   0x6   :  { %s1249_s8 = smov 0  }
   0x7 LB: > { %s31_s16 = sadd.s32 1, %s1167_s14  ;;  %s34_s17 = sadd.s32 1, %s1171_s15  ;;  %s1179_s8 = sphi %s1249_s8, %s19_s8   ;;  %s1175_s7 = sphi %s1247_s7, %s1440_s7   ;;  %s1171_s15 = sphi %s1245_s15, %s1439_s15   ;;  %s1167_s14 = sphi %s1243_s14, %s1438_s14   ;;  %s1163_s13 = sphi %s1241_s13, %s1437_s13   ;;  %s1159_s12 = sphi %s1239_s12, %s1436_s12   ;;  %s1155_s11 = sphi %s1237_s11, %s1435_s11   ;;  %s1151_s10 = sphi %s1235_s10, %s1434_s10   ;;  %s1147_s30 = sphi %s1233_s30, %s1433_s30  }
   0x8   : > { %p32_p0 = scmp.ge.s32.totalorder %s31_s16, 2  ;;  %s38_s18 = sadd.s32 1, %s1175_s7 }
   0x9   : > { %p122_p1 = scmp.ne.s32.totalorder %s1151_s10, %s1147_s30  ;;  %p123_p2 = scmp.eq.s32.totalorder %s1179_s8, 0 }
   0xa   : > { %s1442_s16 = smov (%p32_p0, %s31_s16), 0  ;;  %s1444_s17 = smov (!%p32_p0, %s34_s17), %s1171_s15 }
   0xb   : > { %s112_s19 = ssub.s32 %s1167_s14, %s1442_s16  ;;  %p36_p3 = scmp.ge.s32.totalorder %s1444_s17, 2 }
   0xc   : > { %p113_p4 = scmp.eq.s32.totalorder %s112_s19, 0  ;;  %s115_s20 = sadd.s32 1, %s1151_s10 }
   0xd   : > { %p124_p5 = por %p123_p2, %p122_p1  ;;  %s1446_s17 = smov (%p36_p3, %s1444_s17), 0 }
   0xe   : > { %1428 = sst [smem:[#allocation5_spill]] %s1446_s17  ;;  %s1448_s18 = smov (!%p36_p3, %s38_s18), %s1175_s7 }
   0xf   : > { %s1294_s21 = scalar_select %p113_p4, %s1151_s10, %s115_s20  }
  0x10   : > { %p40_p6 = scmp.ge.s32.totalorder %s1448_s18, 2  ;;  %p929_p7 = scmp.ge.s32.totalorder %s1179_s8, 8 }
  0x12   : > { %s1450_s18 = smov (%p40_p6, %s1448_s18), 0  ;;  %306 = sbr.rel (%p929_p7) target bundleno = 49 (0x31), region = 36 }
  0x13   : > { %1429 = sst [smem:[#allocation6_spill]] %s1450_s18 }
  0x17   : > { %320 = sbr.rel (!%p124_p5) target bundleno = 49 (0x31), region = 44  ;;  %s322_s22 = sand.u32 (%p124_p5), 1, %s1151_s10  }
  0x18   : > { %s931_s23 = sshll.u32 (%p124_p5), %s1167_s14, 2  ;;  %s930_s24 = sshll.u32 (%p124_p5), %s322_s22, 6 }
  0x19   : > { %s1430_s3 = sld [smem:[#allocation7_spill]] (%p124_p5)  ;;  %s324_s28 = scalar_lea.vmem (%p124_p5), [#allocation4], %s930_s24 }
  0x1f   : > { %s1304_s27 = scalar_lea.vmem %s1430_s3, %s931_s23 }
  0x20   : > { %v343_v0 = vld [vmem:[%s1304_s27] sm:$0xf]  ;;  %v345_v1 = vld [vmem:[%s1304_s27 + $0x8] sm:$0xf]  ;;  %v347_v2 = vld [vmem:[%s1304_s27 + $0x10] sm:$0xf] }
  0x21   : > { %344 = vst [vmem:[%s324_s28] sm:$0xf] %v343_v0  ;;  %v349_v3 = vld [vmem:[%s1304_s27 + $0x18] sm:$0xf]  ;;  %v351_v4 = vld [vmem:[%s1304_s27 + $0x20] sm:$0xf] }
  0x22   : > { %346 = vst [vmem:[%s324_s28 + $0x4] sm:$0xf] %v345_v1  ;;  %v353_v5 = vld [vmem:[%s1304_s27 + $0x28] sm:$0xf]  ;;  %v355_v6 = vld [vmem:[%s1304_s27 + $0x30] sm:$0xf] }
  0x23   : > { %348 = vst [vmem:[%s324_s28 + $0x8] sm:$0xf] %v347_v2  ;;  %v357_v7 = vld [vmem:[%s1304_s27 + $0x38] sm:$0xf]  ;;  %v359_v8 = vld [vmem:[%s1304_s27 + $0x40] sm:$0xf] }
  0x24   : > { %350 = vst [vmem:[%s324_s28 + $0xc] sm:$0xf] %v349_v3  ;;  %v361_v9 = vld [vmem:[%s1304_s27 + $0x48] sm:$0xf]  ;;  %v363_v10 = vld [vmem:[%s1304_s27 + $0x50] sm:$0xf] }
  0x25   : > { %352 = vst [vmem:[%s324_s28 + $0x10] sm:$0xf] %v351_v4  ;;  %v365_v11 = vld [vmem:[%s1304_s27 + $0x58] sm:$0xf]  ;;  %v367_v12 = vld [vmem:[%s1304_s27 + $0x60] sm:$0xf] }
  0x26   : > { %354 = vst [vmem:[%s324_s28 + $0x14] sm:$0xf] %v353_v5  ;;  %v369_v13 = vld [vmem:[%s1304_s27 + $0x68] sm:$0xf]  ;;  %v371_v14 = vld [vmem:[%s1304_s27 + $0x70] sm:$0xf] }
  0x27   : > { %356 = vst [vmem:[%s324_s28 + $0x18] sm:$0xf] %v355_v6  ;;  %v373_v15 = vld [vmem:[%s1304_s27 + $0x78] sm:$0xf] }
  0x28   : > { %358 = vst [vmem:[%s324_s28 + $0x1c] sm:$0xf] %v357_v7 }
  0x29   : > { %360 = vst [vmem:[%s324_s28 + $0x20] sm:$0xf] %v359_v8 }
  0x2a   : > { %362 = vst [vmem:[%s324_s28 + $0x24] sm:$0xf] %v361_v9 }
  0x2b   : > { %364 = vst [vmem:[%s324_s28 + $0x28] sm:$0xf] %v363_v10 }
  0x2c   : > { %366 = vst [vmem:[%s324_s28 + $0x2c] sm:$0xf] %v365_v11 }
  0x2d   : > { %368 = vst [vmem:[%s324_s28 + $0x30] sm:$0xf] %v367_v12 }
  0x2e   : > { %370 = vst [vmem:[%s324_s28 + $0x34] sm:$0xf] %v369_v13 }
  0x2f   : > { %372 = vst [vmem:[%s324_s28 + $0x38] sm:$0xf] %v371_v14 }
  0x30   : > { %374 = vst [vmem:[%s324_s28 + $0x3c] sm:$0xf] %v373_v15 }
  0x31 PF: > { %p932_p8 = scmp.ge.s32.totalorder %s1179_s8, 1  ;;  %p444_p9 = scmp.lt.s32.totalorder %s1179_s8, 9 }
  0x33   : > { %p445_p10 = pnand %p932_p8, %p444_p9 }
  0x34   : > { %s451_s29 = sand.u32 (!%p445_p10), 1, %s1147_s30   ;;  %p505_p11 = scmp.lt.s32.totalorder (!%p445_p10), %s1163_s13, 1 }
  0x35   : > { %448 = sbr.rel (%p445_p10) target bundleno = 693 (0x2b5), region = 93  ;;  %s933_s19 = sshll.u32 (!%p445_p10), %s451_s29, 6 }
  0x36   : > { %p507_p12 = scmp.lt.s32.totalorder (!%p445_p10), %s1159_s12, 1  ;;  %p513_p13 = scmp.lt.s32.totalorder (!%p445_p10), %s1155_s11, 1 }
  0x37   : > { %s936_s22 = sshll.u32 (!%p445_p10), %s1155_s11, 4  ;;  %s1353_s26 = scalar_lea.vmem (!%p445_p10), [#allocation4], %s933_s19 }
  0x38   : > { %p517_p0 = scmp.lt.s32.totalorder (!%p445_p10), %s936_s22, 31  ;;  %p940_p1 = scmp.ne.s32.totalorder (!%p445_p10), %s1155_s11, 0 }
  0x3a   : > { %s1452_s13 = smov (!%p505_p11, %s1163_s13), 1  ;;  %s1454_s12 = smov (!%p507_p12, %s1159_s12), 1 }
  0x3b   : > { %s934_s20 = sshll.u32 %s1452_s13, 1  ;;  %s1456_s22 = smov (!%p517_p0, %s936_s22), 31 }
  0x3c   : > { %s510_s23 = sadd.s32 %s934_s20, %s1454_s12  ;;  %s937_s20 = sshll.u32 %s1456_s22, 2 }
  0x3d   : > { %s935_s24 = sshll.u32 %s510_s23, 3  ;;  %s1351_s25 = scalar_lea.vmem %s1422_s5, %s937_s20 }
  0x3e   : > { %s1334_s27 = scalar_lea.vmem %s1417_s0, %s935_s24  ;;  %s1339_s30 = scalar_lea.vmem %s1426_s9, %s935_s24 }
  0x3f   : > { %s1342_s29 = scalar_select %p513_p13, %s1155_s11, 1 }
  0x40   : > { %533 = sbr.rel (%p940_p1) target bundleno = 339 (0x153), region = 101 }
  0x41   : > { %s515_s12 = scalar_lea.vmem %s1421_s4, %s1342_s29 }
  0x45   : > { %v534_v16 = vld [vmem:[%s1334_s27] sm:$0xff]  ;;  %v1181_v17 = vmov 128.0   ;;  %v1182_v28 = vmov 0.0  }
  0x46   : > { %537 = vadd.xlane.f32.xlu0 %v534_v16  ;;  %1101 = vrcp.f32 %v1181_v17  ;;  %574 = vst [vmem:[#allocation3] sm:$0xff] %v1182_v28  ;;  %v1099_v38 = vld [vmem:[%s1418_s1] ss:$0 sm:$0xff] }
  0x47   : > { %v1100_v40 = vld [vmem:[%s1419_s2] ss:$0 sm:$0xff] }
  0x4c   : > { %v1102_v18 = vpop.eup %1101 }
  0x4d   : > { %v540_v19 = vmul.f32 128.0, %v1102_v18  ;;  %vm544_vm0 = vweird.f32 %v1102_v18 }
  0x4f   : > { %v541_v20 = vsub.f32 1.0, %v540_v19 }
  0x51   : > { %v542_v21 = vmul.f32 %v1102_v18, %v541_v20 }
  0x53   : > { %v543_v22 = vadd.f32 %v1102_v18, %v542_v21 }
  0x55   : > { %v545_v23 = vsel %vm544_vm0, %v1102_v18, %v543_v22 }
  0xb9   : > { %v538_v24 = vpop.xlane.xlu0 %537 }
  0xba   : > { %v546_v25 = vmul.f32 %v545_v23, %v538_v24 }
  0xbc   : > { %v547_v26 = vsub.f32 %v534_v16, %v546_v25 }
  0xbe   : > { %v548_v27 = vmul.f32 %v547_v26, %v547_v26 }
  0xc0   : > { %549 = vadd.xlane.f32.xlu0 %v548_v27 }
 0x133   : > { %v550_v29 = vpop.xlane.xlu0 %549 }
 0x134   : > { %v551_v30 = vmul.f32 %v550_v29, %v545_v23 }
 0x136   : > { %v552_v31 = vadd.f32 1e-05, %v551_v30 }
 0x138   : > { %1103 = vrsqrt.f32 %v552_v31  ;;  %vm559_vm2 = vweird.f32 %v552_v31 }
 0x13e   : > { %v1104_v32 = vpop.eup %1103 }
 0x13f   : > { %v554_v33 = vmul.f32 %v1104_v32, %v552_v31  ;;  %vm560_vm1 = vweird.f32 %v1104_v32 }
 0x140   : > { %vm561_vm3 = vmor %vm559_vm2, %vm560_vm1 }
 0x141   : > { %v555_v34 = vmul.f32 %v1104_v32, %v554_v33 }
 0x143   : > { %v556_v35 = vmul.f32 0.5, %v555_v34 }
 0x145   : > { %v557_v36 = vsub.f32 1.5, %v556_v35 }
 0x147   : > { %v558_v37 = vmul.f32 %v1104_v32, %v557_v36 }
 0x149   : > { %v562_v39 = vsel %vm561_vm3, %v1104_v32, %v558_v37 }
 0x14a   : > { %v563_v41 = vmul.f32 %v562_v39, %v547_v26 }
 0x14c   : > { %v567_v42 = vmul.f32 %v1099_v38, %v563_v41 }
 0x14e   : > { %v571_v43 = vadd.f32 %v1100_v40, %v567_v42 }
 0x150   : > { %v572_v44 = vpack.c.bf16 %v571_v43, %v571_v43 }
 0x152   : > { %573 = vst [vmem:[#allocation2] sm:$0xf] %v572_v44 }
 0x153 PF: > { %v1016_v45 = vld [vmem:[%s1353_s26 + $0x38] sm:$0xff]  ;;  %v1015_v46 = vld [vmem:[%s1353_s26 + $0x30] sm:$0xff]  ;;  %v1014_v47 = vld [vmem:[%s1353_s26 + $0x28] sm:$0xff]  ;;  %p1006_p2 = scmp.ne.s32.totalorder %s1155_s11, 1 }
 0x154   : > { %644 = vmatpush.bf16.msra.mxu0 %v1016_v45  ;;  %v1013_v48 = vld [vmem:[%s1353_s26 + $0x20] sm:$0xff]  ;;  %v1012_v49 = vld [vmem:[%s1353_s26 + $0x18] sm:$0xff]  ;;  %v1011_v50 = vld [vmem:[%s1353_s26 + $0x10] sm:$0xff] }
 0x155   : > { %v1010_v51 = vld [vmem:[%s1353_s26 + $0x8] sm:$0xff]  ;;  %v1009_v52 = vld [vmem:[%s1353_s26] sm:$0xff]  ;;  %v1105_v56 = vld [vmem:[%s515_s12] ss:$0 sm:$0xff] }
 0x156   : > { %v1024_v54 = vld [vmem:[%s1351_s25 + $0x38] sm:$0xff]  ;;  %v1023_v55 = vld [vmem:[%s1351_s25 + $0x30] sm:$0xff]  ;;  %v1022_v57 = vld [vmem:[%s1351_s25 + $0x28] sm:$0xff] }
 0x157   : > { %767 = vmatpush.bf16.msra.mxu1 %v1024_v54  ;;  %v1021_v60 = vld [vmem:[%s1351_s25 + $0x20] sm:$0xff]  ;;  %v1020_v63 = vld [vmem:[%s1351_s25 + $0x18] sm:$0xff]  ;;  %v1019_v3 = vld [vmem:[%s1351_s25 + $0x10] sm:$0xff] }
 0x158   : > { %645 = vmatpush.bf16.msra.mxu0 %v1015_v46  ;;  %v1018_v8 = vld [vmem:[%s1351_s25 + $0x8] sm:$0xff]  ;;  %v1017_v12 = vld [vmem:[%s1351_s25] sm:$0xff] }
 0x159   : > { %v575_v53 = vld [vmem:[#allocation2] sm:$0xf]  ;;  %v701_v42 = vld [vmem:[#allocation3] sm:$0xff] }
 0x15b   : > { %768 = vmatpush.bf16.msra.mxu1 %v1023_v55 }
 0x15c   : > { %646 = vmatpush.bf16.msra.mxu0 %v1014_v47 }
 0x15f   : > { %769 = vmatpush.bf16.msra.mxu1 %v1022_v57 }
 0x160   : > { %647 = vmatpush.bf16.msra.mxu0 %v1013_v48 }
 0x163   : > { %770 = vmatpush.bf16.msra.mxu1 %v1021_v60 }
 0x164   : > { %648 = vmatpush.bf16.msra.mxu0 %v1012_v49 }
 0x167   : > { %771 = vmatpush.bf16.msra.mxu1 %v1020_v63 }
 0x168   : > { %649 = vmatpush.bf16.msra.mxu0 %v1011_v50 }
 0x16b   : > { %772 = vmatpush.bf16.msra.mxu1 %v1019_v3 }
 0x16c   : > { %650 = vmatpush.bf16.msra.mxu0 %v1010_v51 }
 0x16f   : > { %773 = vmatpush.bf16.msra.mxu1 %v1018_v8 }
 0x170   : > { %651 = vmatpush.bf16.msra.mxu0 %v1009_v52 }
 0x173   : > { %652 = vmatmul.bf16.vlgmr.msra.gmra.mxu0 %v575_v53  ;;  %774 = vmatpush.bf16.msra.mxu1 %v1017_v12 }
 0x1f0   : > { %v653_v58 = vpop.f32.mrf.mxu0 }
 0x1f1   : > { %v654_v59 = vadd.f32 %v1105_v56, %v653_v58 }
 0x1f3   : > { %v658_v61 = vmul.f32 0.70710677, %v654_v59  ;;  %v657_v38 = vmul.f32 0.5, %v654_v59 }
 0x1f5   : > { %v659_v62 = vmul.f32 %v658_v61, %v658_v61 }
 0x1f7   : > { %v660_v0 = vmin.f32 %v659_v62, 16.0 }
 0x1f8   : > { %v655_v1 = vpop.f32.mrf.mxu0 }
 0x1f9   : > { %v661_v2 = vmul.f32 2.1237322e-06, %v660_v0  ;;  %v672_v4 = vmul.f32 3.8918573e-05, %v660_v0 }
 0x1fb   : > { %v662_v5 = vadd.f32 0.00028619796, %v661_v2  ;;  %v673_v6 = vadd.f32 0.001143296, %v672_v4 }
 0x1fd   : > { %v663_v7 = vmul.f32 %v662_v5, %v660_v0  ;;  %v674_v9 = vmul.f32 %v673_v6, %v660_v0 }
 0x1ff   : > { %v675_v10 = vadd.f32 0.014752088, %v674_v9  ;;  %v664_v11 = vadd.f32 0.0036580483, %v663_v7 }
 0x201   : > { %v676_v13 = vmul.f32 %v675_v10, %v660_v0  ;;  %v665_v15 = vmul.f32 %v664_v11, %v660_v0 }
 0x203   : > { %v677_v14 = vadd.f32 0.112945676, %v676_v13  ;;  %v666_v18 = vadd.f32 0.05243302, %v665_v15 }
 0x205   : > { %v678_v16 = vmul.f32 %v677_v14, %v660_v0  ;;  %v667_v21 = vmul.f32 %v666_v18, %v660_v0 }
 0x207   : > { %v679_v17 = vadd.f32 0.4994258, %v678_v16  ;;  %v668_v22 = vadd.f32 0.18741608, %v667_v21 }
 0x209   : > { %v680_v19 = vmul.f32 %v679_v17, %v660_v0  ;;  %v669_v24 = vmul.f32 %v668_v22, %v660_v0 }
 0x20b   : > { %v681_v20 = vadd.f32 1.0, %v680_v19  ;;  %v670_v28 = vadd.f32 1.1283791, %v669_v24 }
 0x20d   : > { %1106 = vrcp.f32 %v681_v20  ;;  %v693_v27 = vand.u32 2147483648, %v681_v20  ;;  %v691_v30 = vand.u32 2147483647, %v681_v20  ;;  %vm687_vm5 = vweird.f32 %v681_v20 }
 0x20e   : > { %v671_v33 = vmul.f32 %v670_v28, %v658_v61 }
 0x20f   : > { %v694_v32 = vor.u32 1.1754944e-38, %v693_v27  ;;  %vm692_vm7 = vcmp.eq.f32.partialorder %v691_v30, 8.507059e+37 }
 0x213   : > { %v1107_v23 = vpop.eup %1106 }
 0x214   : > { %v683_v25 = vmul.f32 %v1107_v23, %v681_v20  ;;  %vm688_vm4 = vweird.f32 %v1107_v23 }
 0x215   : > { %vm689_vm6 = vmor %vm687_vm5, %vm688_vm4 }
 0x216   : > { %v684_v26 = vsub.f32 1.0, %v683_v25 }
 0x218   : > { %v685_v29 = vmul.f32 %v1107_v23, %v684_v26 }
 0x21a   : > { %v686_v31 = vadd.f32 %v1107_v23, %v685_v29 }
 0x21c   : > { %v690_v34 = vsel %vm689_vm6, %v1107_v23, %v686_v31 }
 0x21d   : > { %v695_v35 = vsel %vm692_vm7, %v694_v32, %v690_v34 }
 0x21e   : > { %v696_v36 = vmul.f32 %v695_v35, %v671_v33 }
 0x220   : > { %v973_v37 = vclamps-f32 %v696_v36, 1.0 }
 0x222   : > { %v699_v39 = vadd.f32 1.0, %v973_v37 }
 0x224   : > { %v700_v40 = vmul.f32 %v699_v39, %v657_v38 }
 0x226   : > { %v702_v41 = vpack.c.bf16 %v700_v40, %v700_v40 }
 0x228   : > { %775 = vmatmul.bf16.vlgmr.msra.gmra.mxu1 %v702_v41 }
 0x2a5   : > { %v776_v43 = vpop.f32.mrf.mxu1 }
 0x2a6   : > { %v780_v44 = vadd.f32 %v776_v43, %v701_v42 }
 0x2a8   : > { %781 = vst [vmem:[#allocation3] sm:$0xff] %v780_v44 }
 0x2a9   : > { %785 = sbr.rel (%p1006_p2) target bundleno = 693 (0x2b5), region = 105 }
 0x2ad   : > { %v778_v45 = vpop.f32.mrf.mxu1 }
 0x2ae   : > { %v786_v46 = vld [vmem:[%s1334_s27] sm:$0xff] }
 0x2af   : > { %v787_v47 = vld [vmem:[#allocation3] sm:$0xff]  ;;  %v1108_v49 = vld [vmem:[%s1423_s6] ss:$0 sm:$0xff] }
 0x2b0   : > { %v788_v48 = vadd.f32 %v787_v47, %v786_v46 }
 0x2b2   : > { %v793_v50 = vadd.f32 %v1108_v49, %v788_v48 }
 0x2b4   : > { %794 = vst [vmem:[%s1339_s30] sm:$0xff] %v793_v50 }
 0x2b5 PF: > { %s19_s8 = sadd.s32 1, %s1179_s8   ;;  %s1431_s27 = sld [smem:[#allocation5_spill]] }
 0x2b6   : > { %p16_p3 = scmp.ge.s32.totalorder %s19_s8, 10   ;;  %s1432_s20 = sld [smem:[#allocation6_spill]] }
 0x2b7   : > { %s1433_s30 = smov %s1151_s10  ;;  %s1434_s10 = smov %s1294_s21 }
 0x2b8   : > { %s1435_s11 = smov %s1167_s14  ;;  %s1436_s12 = smov %s1171_s15 }
 0x2b9   : > { %s1437_s13 = smov %s1175_s7  ;;  %s1438_s14 = smov %s1442_s16 }
 0x2ba   :  { %18 = sbr.rel (!%p16_p3) target bundleno = 7 (0x7), region = 149 }
 0x2bb   : > { %s1439_s15 = smov %s1431_s27 }
 0x2bc   : > { %s1440_s7 = smov %s1432_s20 }

// kernel: whisper_audio_encoder.11
= control target key start
LH: loop header
LB: loop body
LE: loop exit
PB: predicated region body
PF: predicated region fallthrough
CT: control target
= control target key end

     0   :  { %s4321_s21 = smov 0   ;;  %s4323_s22 = smov 0   ;;  %s5294_s0 = inlined_call_operand.vmem [shape: f32[2,16,128], index: 0, kind: input, shape index: {}]   ;;  %s5295_s1 = inlined_call_operand.vmem [shape: bf16[2,16,128], index: 1, kind: input, shape index: {}]   ;;  %s5296_s2 = inlined_call_operand.vmem [shape: bf16[2,16,128], index: 2, kind: input, shape index: {}]   ;;  %s5297_s3 = inlined_call_operand.vmem [shape: bf16[2,16,128], index: 3, kind: input, shape index: {}]   ;;  %s5298_s4 = inlined_call_operand.vmem [shape: bf16[128,128], index: 4, kind: input, shape index: {}]   ;;  %s5299_s5 = inlined_call_operand.vmem [shape: f32[1,128], index: 5, kind: input, shape index: {}]   ;;  %s5300_s6 = inlined_call_operand.vmem [shape: f32[2,16,128], index: 6, kind: output, shape index: {}]  }
   0x1   :  { %s4325_s23 = smov 0   ;;  %s4327_s24 = smov 0  }
   0x2   :  { %s4329_s25 = smov 0  }
   0x3 LB: > { %s25_s26 = sadd.s32 1, %s4271_s23  ;;  %s28_s27 = sadd.s32 1, %s4275_s24  ;;  %s4279_s25 = sphi %s4329_s25, %s16_s25   ;;  %s4275_s24 = sphi %s4327_s24, %s5304_s24   ;;  %s4271_s23 = sphi %s4325_s23, %s5303_s23   ;;  %s4267_s22 = sphi %s4323_s22, %s5302_s22   ;;  %s4263_s21 = sphi %s4321_s21, %s5301_s21  }
   0x4   : > { %p26_p0 = scmp.ge.s32.totalorder %s25_s26, 2  ;;  %p3947_p1 = scmp.ge.s32.totalorder %s4279_s25, 1 }
   0x5   : > { %p266_p2 = scmp.lt.s32.totalorder %s4279_s25, 5 }
   0x6   : > { %s5306_s26 = smov (%p26_p0, %s25_s26), 0  ;;  %s5308_s27 = smov (!%p26_p0, %s28_s27), %s4275_s24 }
   0x7   : > { %p267_p3 = pnand %p3947_p1, %p266_p2  ;;  %p30_p4 = scmp.ge.s32.totalorder %s5308_s27, 2 }
   0x8   : > { %p320_p5 = scmp.lt.s32.totalorder (!%p267_p3), %s4267_s22, 1  ;;  %p322_p6 = scmp.lt.s32.totalorder (!%p267_p3), %s4263_s21, 1 }
   0x9   : > { %s5310_s27 = smov (%p30_p4, %s5308_s27), 0  ;;  %270 = sbr.rel (%p267_p3) target bundleno = 2021 (0x7e5), region = 44 }
   0xa   : > { %s4281_s9 = smov (!%p267_p3), 96   ;;  %s4282_s10 = smov (!%p267_p3), 32  }
   0xb   : > { %s4283_s16 = smov (!%p267_p3), 64  }
   0xe   : > { %s5312_s22 = smov (!%p320_p5, %s4267_s22), 1  ;;  %s5314_s21 = smov (!%p322_p6, %s4263_s21), 1  ;;  %v4284_v2 = vmov 1983009808   ;;  %v4285_v14 = vmov 1934713408  }
   0xf   : > { %s4008_s28 = sshll.u32 %s5312_s22, 3  ;;  %s3948_s8 = sshll.u32 %s5312_s22, 1  ;;  %v377_v3 = vunpack.c.l.s4 %v4284_v2  ;;  %v391_v15 = vunpack.c.l.s4 %v4285_v14  ;;  %vm386_vm0 = vcmask 1047556   ;;  %vm1742_vm1 = vcmask 261120  }
  0x10   : > { %s4359_s7 = scalar_lea.vmem %s5296_s2, %s4008_s28  ;;  %s4365_s11 = sadd.s32 %s3948_s8, %s5314_s21  ;;  %vm1807_vm2 = vcmask 64512   ;;  %vm1933_vm3 = vcmask 1043456  }
  0x11   : > { %v478_v0 = vld [vmem:[%s4359_s7] sm:$0xf]  ;;  %s3951_s12 = sshll.u32 %s4365_s11, 2  ;;  %v4380_v7 = vunpack.c.0.s8 %v377_v3  ;;  %v4385_v22 = vunpack.c.0.s8 %v391_v15  ;;  %s4705_s19 = scalar_lea.vmem %s5297_s3, %s4008_s28 }
  0x12   : > { %480 = vrot.lane.b32.xlu0 %v478_v0, %s4281_s9  ;;  %484 = vrot.lane.b32.xlu1 %v478_v0, %s4282_s10  ;;  %s335_s15 = scalar_lea.vmem %s5295_s1, %s3951_s12  ;;  %v489_v5 = vshrl.u32 %v478_v0, 16  ;;  %s3949_s18 = sshll.u32 %s4365_s11, 3 }
  0x13   : > { %v4371_v1 = vld [vmem:[%s335_s15] sm:$0xf]  ;;  %s327_s21 = scalar_lea.vmem %s5294_s0, %s3949_s18 }
  0x14   : > { %357 = vrot.lane.b32.xlu2 %v4371_v1, %s4281_s9 }
  0x1a   : > { %482 = vrot.lane.b32.xlu0 %v478_v0, %s4283_s16  ;;  %361 = vrot.lane.b32.xlu1 %v4371_v1, %s4282_s10 }
  0x22   : > { %359 = vrot.lane.b32.xlu0 %v4371_v1, %s4283_s16 }
  0x6e   : > { %v4400_v43 = vpop.permute.xlu2 %357 }
  0x84   : > { %v481_v4 = vpop.permute.xlu0 %480  ;;  %v485_v9 = vpop.permute.xlu1 %484 }
  0x85   : > { %v490_v6 = vshrl.u32 %v481_v4, 16  ;;  %v488_v8 = vpack.i.b16 %v481_v4, %v478_v0  ;;  %v496_v12 = vshrl.u32 %v485_v9, 16 }
  0x87   : > { %v491_v10 = vpack.i.b16 %v490_v6, %v489_v5  ;;  %v502_v11 = vperm.slane %v488_v8, %v4380_v7 }
  0x89   : > { %v528_v16 = vperm.slane %v491_v10, %v4380_v7  ;;  %v510_v19 = vrot.slane %v502_v11, 4 }
  0x8b   : > { %v536_v23 = vrot.slane %v528_v16, 4 }
  0x8c   : > { %v483_v13 = vpop.permute.xlu0 %482  ;;  %v4402_v45 = vpop.permute.xlu1 %361 }
  0x8d   : > { %v494_v17 = vpack.i.b16 %v485_v9, %v483_v13  ;;  %v495_v18 = vshrl.u32 %v483_v13, 16 }
  0x8f   : > { %v497_v20 = vpack.i.b16 %v496_v12, %v495_v18  ;;  %v507_v21 = vperm.slane %v494_v17, %v4380_v7 }
  0x91   : > { %v508_v24 = vrot.slane %v507_v21, 4  ;;  %v533_v25 = vperm.slane %v497_v20, %v4380_v7  ;;  %v511_v26 = vsel %vm386_vm0, %v507_v21, %v510_v19 }
  0x92   : > { %v519_v30 = vperm.slane %v511_v26, %v4385_v22 }
  0x93   : > { %v534_v27 = vrot.slane %v533_v25, 4  ;;  %v537_v28 = vsel %vm386_vm0, %v533_v25, %v536_v23  ;;  %v509_v29 = vsel %vm386_vm0, %v508_v24, %v502_v11 }
  0x94   : > { %v545_v31 = vperm.slane %v537_v28, %v4385_v22  ;;  %v515_v32 = vperm.slane %v509_v29, %v4385_v22  ;;  %v522_v39 = vrot.slane %v519_v30, 4  ;;  %v4404_v48 = vpop.permute.xlu0 %359 }
  0x95   : > { %v535_v33 = vsel %vm386_vm0, %v534_v27, %v528_v16 }
  0x96   : > { %4079 = vxpose.binary.xlu1.c.b16.start.end [1/2] (short) (narrow) %v545_v31, %v519_v30, 32  ;;  %v541_v34 = vperm.slane %v535_v33, %v4385_v22  ;;  %v520_v35 = vrot.slane %v515_v32, 4  ;;  %v548_v40 = vrot.slane %v545_v31, 4  ;;  %v523_v41 = vsel %vm386_vm0, 0, %v522_v39 }
  0x98   : > { %4064 = vxpose.binary.xlu2.c.b16.start.end [1/2] (short) (narrow) %v541_v34, %v515_v32, 32  ;;  %v546_v36 = vrot.slane %v541_v34, 4  ;;  %v521_v37 = vsel %vm386_vm0, 0, %v520_v35  ;;  %v549_v42 = vsel %vm386_vm0, 0, %v548_v40 }
  0x9a   : > { %v547_v38 = vsel %vm386_vm0, 0, %v546_v36 }
  0x9b   : > { %4074 = vxpose.binary.xlu0.c.b16.start.end [1/2] (short) (narrow) %v547_v38, %v521_v37, 32 }
  0xb8   : > { %4069 = vxpose.binary.xlu2.c.b16.start.end [1/2] (short) (narrow) %v549_v42, %v523_v41, 32 }
 0x139   : > { %v4065_v44 = vpop.trf.xlu2 }
 0x13a   : > { %v754_v62 = vshrl.u32 %v4065_v44, 16 }
 0x141   : > { %v4066_v46 = vpop.trf.xlu2 }
 0x142   : > { %v4080_v47 = vpop.trf.xlu1  ;;  %v755_v59 = vshrl.u32 %v4066_v46, 16  ;;  %v4412_v0 = vpack.i.b16 %v4066_v46, %v4065_v44 }
 0x143   : > { %v770_v53 = vshrl.u32 %v4080_v47, 16 }
 0x144   : > { %v4414_v2 = vpack.i.b16 %v755_v59, %v754_v62 }
 0x147   : > { %v4075_v52 = vpop.trf.xlu0 }
 0x148   : > { %v762_v5 = vshrl.u32 %v4075_v52, 16 }
 0x149   : > { %v4067_v49 = vpop.trf.xlu2 }
 0x14a   : > { %v4081_v50 = vpop.trf.xlu1  ;;  %v786_v41 = vshrl.u32 %v4067_v49, 16 }
 0x14b   : > { %v771_v54 = vshrl.u32 %v4081_v50, 16  ;;  %v4406_v55 = vpack.i.b16 %v4081_v50, %v4080_v47 }
 0x14d   : > { %v4408_v56 = vpack.i.b16 %v771_v54, %v770_v53  ;;  %v814_v61 = vrot.slane %v4406_v55, 4 }
 0x14f   : > { %v4076_v60 = vpop.trf.xlu0  ;;  %v870_v63 = vrot.slane %v4408_v56, 4  ;;  %v815_v3 = vsel %vm386_vm0, %v814_v61, %v4412_v0 }
 0x150   : > { %v763_v9 = vshrl.u32 %v4076_v60, 16  ;;  %v4423_v12 = vperm.slane %v815_v3, %v4380_v7  ;;  %v4425_v14 = vpack.i.b16 %v4076_v60, %v4075_v52 }
 0x151   : > { %v4068_v51 = vpop.trf.xlu2  ;;  %v871_v4 = vsel %vm386_vm0, %v870_v63, %v4414_v2 }
 0x152   : > { %v4082_v58 = vpop.trf.xlu1  ;;  %v4431_v17 = vperm.slane %v871_v4, %v4380_v7  ;;  %v4433_v19 = vpack.i.b16 %v763_v9, %v762_v5  ;;  %v840_v26 = vrot.slane %v4423_v12, 4  ;;  %v787_v38 = vshrl.u32 %v4068_v51, 16 }
 0x153   : > { %v802_v23 = vshrl.u32 %v4082_v58, 16  ;;  %v784_v42 = vpack.i.b16 %v4068_v51, %v4067_v49 }
 0x154   : > { %v896_v32 = vrot.slane %v4431_v17, 4  ;;  %v788_v52 = vpack.i.b16 %v787_v38, %v786_v41 }
 0x157   : > { %v4077_v18 = vpop.trf.xlu0 }
 0x158   : > { %v794_v54 = vshrl.u32 %v4077_v18, 16 }
 0x159   : > { %v4070_v57 = vpop.trf.xlu2 }
 0x15a   : > { %v778_v8 = vshrl.u32 %v4070_v57, 16  ;;  %v4083_v13 = vpop.trf.xlu1 }
 0x15b   : > { %v803_v24 = vshrl.u32 %v4083_v13, 16  ;;  %v4444_v28 = vpack.i.b16 %v4083_v13, %v4082_v58 }
 0x15d   : > { %v804_v34 = vpack.i.b16 %v803_v24, %v802_v23  ;;  %v926_v39 = vrot.slane %v4444_v28, 4 }
 0x15f   : > { %v982_v44 = vrot.slane %v804_v34, 4  ;;  %v4078_v46 = vpop.trf.xlu0  ;;  %v927_v53 = vsel %vm386_vm0, %v926_v39, %v784_v42 }
 0x160   : > { %v795_v59 = vshrl.u32 %v4078_v46, 16  ;;  %v792_v63 = vpack.i.b16 %v4078_v46, %v4077_v18  ;;  %v933_v3 = vperm.slane %v927_v53, %v4380_v7 }
 0x161   : > { %v4071_v6 = vpop.trf.xlu2  ;;  %v983_v62 = vsel %vm386_vm0, %v982_v44, %v788_v52 }
 0x162   : > { %v4420_v10 = vpack.i.b16 %v4071_v6, %v4070_v57  ;;  %v779_v11 = vshrl.u32 %v4071_v6, 16  ;;  %v796_v4 = vpack.i.b16 %v795_v59, %v794_v54  ;;  %v940_v13 = vrot.slane %v792_v63, 4 }
 0x163   : > { %v952_v18 = vrot.slane %v933_v3, 4 }
 0x164   : > { %v4427_v15 = vpack.i.b16 %v779_v11, %v778_v8  ;;  %v826_v16 = vrot.slane %v4420_v10, 4  ;;  %v989_v8 = vperm.slane %v983_v62, %v4380_v7 }
 0x166   : > { %v827_v20 = vsel %vm386_vm0, %v826_v16, %v4425_v14  ;;  %v882_v21 = vrot.slane %v4427_v15, 4  ;;  %v1008_v23 = vrot.slane %v989_v8, 4 }
 0x167   : > { %v4439_v25 = vperm.slane %v827_v20, %v4380_v7 }
 0x168   : > { %v883_v27 = vsel %vm386_vm0, %v882_v21, %v4433_v19  ;;  %v996_v21 = vrot.slane %v796_v4, 4 }
 0x169   : > { %v4072_v29 = vpop.trf.xlu2  ;;  %v841_v30 = vsel %vm386_vm0, %v4439_v25, %v840_v26  ;;  %v4449_v31 = vperm.slane %v883_v27, %v4380_v7 }
 0x16a   : > { %v4453_v33 = vperm.slane %v841_v30, %v4385_v22  ;;  %v810_v58 = vshrl.u32 %v4072_v29, 16 }
 0x16b   : > { %v897_v35 = vsel %vm386_vm0, %v4449_v31, %v896_v32 }
 0x16c   : > { %v864_v36 = vrot.slane %v4453_v33, 4  ;;  %v4459_v37 = vperm.slane %v897_v35, %v4385_v22 }
 0x16e   : > { %v920_v40 = vrot.slane %v4459_v37, 4  ;;  %v865_v47 = vsel %vm386_vm0, 0, %v864_v36 }
 0x170   : > { %v921_v50 = vsel %vm386_vm0, 0, %v920_v40 }
 0x171   : > { %4084 = vxpose.binary.xlu0.c.b16.start.end [1/2] (short) (narrow) %v921_v50, %v865_v47, 16  ;;  %v4073_v57 = vpop.trf.xlu2  ;;  %v928_v47 = vrot.slane %v784_v42, 4  ;;  %v984_v50 = vrot.slane %v788_v52, 4  ;;  %v816_v52 = vrot.slane %v4412_v0, 4 }
 0x172   : > { %v808_v60 = vpack.i.b16 %v4073_v57, %v4072_v29  ;;  %v811_v61 = vshrl.u32 %v4073_v57, 16 }
 0x173   : > { %v929_v54 = vsel %vm386_vm0, %v4444_v28, %v928_v47  ;;  %v985_v57 = vsel %vm386_vm0, %v804_v34, %v984_v50  ;;  %v817_v34 = vsel %vm386_vm0, %v4406_v55, %v816_v52 }
 0x174   : > { %v812_v49 = vpack.i.b16 %v811_v61, %v810_v58  ;;  %v938_v51 = vrot.slane %v808_v60, 4  ;;  %v941_v24 = vsel %vm386_vm0, %v808_v60, %v940_v13  ;;  %v937_v62 = vperm.slane %v929_v54, %v4380_v7 }
 0x175   : > { %v949_v40 = vperm.slane %v941_v24, %v4380_v7  ;;  %v993_v42 = vperm.slane %v985_v57, %v4380_v7  ;;  %v838_v54 = vrot.slane %v4439_v25, 4  ;;  %v894_v57 = vrot.slane %v4449_v31, 4 }
 0x176   : > { %v939_v5 = vsel %vm386_vm0, %v938_v51, %v792_v63  ;;  %v994_v6 = vrot.slane %v812_v49, 4  ;;  %v997_v29 = vsel %vm386_vm0, %v812_v49, %v996_v21  ;;  %v872_v63 = vrot.slane %v4414_v2, 4 }
 0x177   : > { %v945_v9 = vperm.slane %v939_v5, %v4380_v7  ;;  %v1005_v41 = vperm.slane %v997_v29, %v4380_v7  ;;  %v962_v60 = vrot.slane %v949_v40, 4 }
 0x178   : > { %v995_v11 = vsel %vm386_vm0, %v994_v6, %v796_v4  ;;  %v873_v51 = vsel %vm386_vm0, %v4408_v56, %v872_v63  ;;  %v1020_v4 = vrot.slane %v993_v42, 4  ;;  %v825_v56 = vperm.slane %v817_v34, %v4380_v7 }
 0x179   : > { %v1001_v16 = vperm.slane %v995_v11, %v4380_v7  ;;  %v950_v20 = vrot.slane %v945_v9, 4  ;;  %v953_v32 = vsel %vm386_vm0, %v945_v9, %v952_v18  ;;  %v1018_v61 = vrot.slane %v1005_v41, 4 }
 0x17a   : > { %v961_v44 = vperm.slane %v953_v32, %v4385_v22  ;;  %v963_v49 = vsel %vm386_vm0, %v962_v60, %v937_v62  ;;  %v884_v9 = vrot.slane %v4433_v19, 4  ;;  %v1021_v55 = vsel %vm386_vm0, %v1005_v41, %v1020_v4 }
 0x17b   : > { %v951_v26 = vsel %vm386_vm0, %v950_v20, %v933_v3  ;;  %v1006_v27 = vrot.slane %v1001_v16, 4  ;;  %v1009_v35 = vsel %vm386_vm0, %v1001_v16, %v1008_v23  ;;  %v1019_v28 = vsel %vm386_vm0, %v1018_v61, %v993_v42 }
 0x17c   : > { %v957_v30 = vperm.slane %v951_v26, %v4385_v22  ;;  %v1017_v46 = vperm.slane %v1009_v35, %v4385_v22  ;;  %v964_v3 = vrot.slane %v937_v62, 4  ;;  %v4501_v5 = vperm.slane %v963_v49, %v4385_v22 }
 0x17d   : > { %v1007_v36 = vsel %vm386_vm0, %v1006_v27, %v989_v8  ;;  %v4504_v6 = vperm.slane %v1019_v28, %v4385_v22  ;;  %v976_v0 = vrot.slane %v961_v44, 4  ;;  %v828_v8 = vrot.slane %v4425_v14, 4 }
 0x17e   : > { %v1013_v38 = vperm.slane %v1007_v36, %v4385_v22  ;;  %v974_v39 = vrot.slane %v957_v30, 4  ;;  %v1032_v2 = vrot.slane %v1017_v46, 4  ;;  %v965_v11 = vsel %vm386_vm0, %v949_v40, %v964_v3 }
 0x17f   : > { %v881_v13 = vperm.slane %v873_v51, %v4380_v7  ;;  %v829_v16 = vsel %vm386_vm0, %v4420_v10, %v828_v8  ;;  %v885_v20 = vsel %vm386_vm0, %v4427_v15, %v884_v9  ;;  %v978_v21 = vrot.slane %v4501_v5, 4 }
 0x180   : > { %4093 = vxpose.binary.xlu2.c.b16.start.end [1/2] (short) (narrow) %v1013_v38, %v957_v30, 16  ;;  %v1030_v53 = vrot.slane %v1013_v38, 4  ;;  %v975_v58 = vsel %vm386_vm0, 0, %v974_v39  ;;  %v1034_v14 = vrot.slane %v4504_v6, 4  ;;  %v977_v19 = vsel %vm386_vm0, 0, %v976_v0 }
 0x181   : > { %4087 = vxpose.binary.xlu0.c.b16.start.end [1/2] (short) (narrow) %v1017_v46, %v961_v44, 16  ;;  %v1033_v18 = vsel %vm386_vm0, 0, %v1032_v2  ;;  %v973_v23 = vperm.slane %v965_v11, %v4385_v22  ;;  %v1029_v24 = vperm.slane %v1021_v55, %v4385_v22  ;;  %v837_v26 = vperm.slane %v829_v16, %v4380_v7 }
 0x182   : > { %v1031_v59 = vsel %vm386_vm0, 0, %v1030_v53  ;;  %v893_v10 = vperm.slane %v885_v20, %v4380_v7  ;;  %v979_v15 = vsel %vm386_vm0, 0, %v978_v21  ;;  %v1035_v27 = vsel %vm386_vm0, 0, %v1034_v14 }
 0x183   : > { %4105 = vxpose.binary.xlu1.c.b16.start.end [1/2] (short) (narrow) %v1031_v59, %v975_v58, 16  ;;  %v852_v29 = vrot.slane %v825_v56, 4  ;;  %v908_v30 = vrot.slane %v881_v13, 4  ;;  %v980_v39 = vrot.slane %v973_v23, 4  ;;  %v1036_v40 = vrot.slane %v1029_v24, 4 }
 0x184   : > { %v850_v58 = vrot.slane %v837_v26, 4  ;;  %v906_v59 = vrot.slane %v893_v10, 4  ;;  %v839_v60 = vsel %vm386_vm0, %v838_v54, %v4423_v12  ;;  %v895_v61 = vsel %vm386_vm0, %v894_v57, %v4431_v17 }
 0x185   : > { %v853_v32 = vsel %vm386_vm0, %v837_v26, %v852_v29  ;;  %v909_v35 = vsel %vm386_vm0, %v893_v10, %v908_v30  ;;  %v981_v46 = vsel %vm386_vm0, 0, %v980_v39  ;;  %v1037_v47 = vsel %vm386_vm0, 0, %v1036_v40 }
 0x186   : > { %v861_v36 = vperm.slane %v853_v32, %v4385_v22  ;;  %v917_v38 = vperm.slane %v909_v35, %v4385_v22  ;;  %v851_v62 = vsel %vm386_vm0, %v850_v58, %v825_v56  ;;  %v907_v42 = vsel %vm386_vm0, %v906_v59, %v881_v13 }
 0x187   : > { %v845_v25 = vperm.slane %v839_v60, %v4385_v22  ;;  %v901_v31 = vperm.slane %v895_v61, %v4385_v22  ;;  %v857_v52 = vperm.slane %v851_v62, %v4385_v22  ;;  %v913_v63 = vperm.slane %v907_v42, %v4385_v22 }
 0x188   : > { %v868_v41 = vrot.slane %v861_v36, 4  ;;  %v924_v44 = vrot.slane %v917_v38, 4  ;;  %v366_v21 = vshrl.u32 %v4371_v1, 16  ;;  %v367_v14 = vshrl.u32 %v4400_v43, 16 }
 0x189   : > { %v862_v49 = vrot.slane %v845_v25, 4  ;;  %v922_v28 = vrot.slane %v913_v63, 4 }
 0x18a   : > { %v869_v50 = vsel %vm386_vm0, 0, %v868_v41  ;;  %v925_v53 = vsel %vm386_vm0, 0, %v924_v44  ;;  %v368_v10 = vpack.i.b16 %v367_v14, %v366_v21 }
 0x18b   : > { %v863_v12 = vsel %vm386_vm0, 0, %v862_v49  ;;  %v923_v51 = vsel %vm386_vm0, 0, %v922_v28 }
 0x190   : > { %4096 = vxpose.binary.xlu2.c.b16.start.end [1/2] (short) (narrow) %v1033_v18, %v977_v19, 16  ;;  %v373_v18 = vshrl.u32 %v4402_v45, 16 }
 0x191   : > { %4090 = vxpose.binary.xlu0.c.b16.start.end [1/2] (short) (narrow) %v1029_v24, %v973_v23, 16  ;;  %v371_v23 = vpack.i.b16 %v4402_v45, %v4404_v48  ;;  %v372_v24 = vshrl.u32 %v4404_v48, 16 }
 0x193   : > { %4108 = vxpose.binary.xlu1.c.b16.start.end [1/2] (short) (narrow) %v1035_v27, %v979_v15, 16  ;;  %v374_v29 = vpack.i.b16 %v373_v18, %v372_v24 }
 0x1a0   : > { %4099 = vxpose.binary.xlu2.c.b16.start.end [1/2] (short) (narrow) %v1037_v47, %v981_v46, 16 }
 0x1a1   : > { %4114 = vxpose.binary.xlu0.c.b16.start.end [1/2] (short) (narrow) %v925_v53, %v869_v50, 16 }
 0x1a3   : > { %4111 = vxpose.binary.xlu1.c.b16.start.end [1/2] (short) (narrow) %v4459_v37, %v4453_v33, 16  ;;  %v918_v33 = vrot.slane %v901_v31, 4  ;;  %v866_v37 = vrot.slane %v857_v52, 4 }
 0x1a5   : > { %v919_v17 = vsel %vm386_vm0, 0, %v918_v33  ;;  %v867_v34 = vsel %vm386_vm0, 0, %v866_v37 }
 0x1b0   : > { %4102 = vxpose.binary.xlu2.c.b16.start.end [1/2] (short) (narrow) %v919_v17, %v863_v12, 16 }
 0x1b1   : > { %4123 = vxpose.binary.xlu0.c.b16.start.end [1/2] (short) (narrow) %v923_v51, %v867_v34, 16 }
 0x1b3   : > { %4120 = vxpose.binary.xlu1.c.b16.start.end [1/2] (short) (narrow) %v901_v31, %v845_v25, 16 }
 0x1c0   : > { %4117 = vxpose.binary.xlu2.c.b16.start.end [1/2] (short) (narrow) %v4504_v6, %v4501_v5, 16  ;;  %v365_v6 = vpack.i.b16 %v4400_v43, %v4371_v1  ;;  %v384_v1 = vperm.slane %v371_v23, %v4380_v7  ;;  %v406_v43 = vperm.slane %v368_v10, %v4380_v7 }
 0x1c2   : > { %v379_v15 = vperm.slane %v365_v6, %v4380_v7  ;;  %v385_v35 = vrot.slane %v384_v1, 4  ;;  %v414_v48 = vrot.slane %v406_v43, 4 }
 0x1c3   : > { %4129 = vxpose.binary.xlu1.c.b16.start.end [1/2] (short) (narrow) %v913_v63, %v857_v52, 16 }
 0x1c4   : > { %v388_v30 = vrot.slane %v379_v15, 4  ;;  %v387_v39 = vsel %vm386_vm0, %v385_v35, %v379_v15 }
 0x1c5   : > { %v393_v50 = vperm.slane %v387_v39, %v4385_v22 }
 0x1c7   : > { %v398_v42 = vrot.slane %v393_v50, 4 }
 0x1c9   : > { %v399_v17 = vsel %vm386_vm0, 0, %v398_v42 }
 0x1d0   : > { %4126 = vxpose.binary.xlu2.c.b16.start.end [1/2] (short) (narrow) %v917_v38, %v861_v36, 16  ;;  %v411_v36 = vperm.slane %v374_v29, %v4380_v7  ;;  %v389_v38 = vsel %vm386_vm0, %v384_v1, %v388_v30 }
 0x1d1   : > { %v397_v41 = vperm.slane %v389_v38, %v4385_v22 }
 0x1d2   : > { %v412_v40 = vrot.slane %v411_v36, 4  ;;  %v415_v46 = vsel %vm386_vm0, %v411_v36, %v414_v48 }
 0x1d3   : > { %v400_v58 = vrot.slane %v397_v41, 4  ;;  %v423_v59 = vperm.slane %v415_v46, %v4385_v22 }
 0x1d4   : > { %v413_v57 = vsel %vm386_vm0, %v412_v40, %v406_v43 }
 0x1d5   : > { %v419_v25 = vperm.slane %v413_v57, %v4385_v22  ;;  %v401_v63 = vsel %vm386_vm0, 0, %v400_v58  ;;  %v426_v49 = vrot.slane %v423_v59, 4  ;;  %v428_v1 = vsel %vm386_vm0, %v400_v58, %v393_v50 }
 0x1d6   : > { %v432_v40 = vperm.slane %v428_v1, %v4380_v7 }
 0x1d7   : > { %v424_v34 = vrot.slane %v419_v25, 4  ;;  %v447_v50 = vsel %vm386_vm0, %v426_v49, %v419_v25 }
 0x21d   : > { %v4554_v3 = vpop.trf.xlu0 }
 0x221   : > { %v4556_v4 = vpop.trf.xlu2 }
 0x225   : > { %v4558_v0 = vpop.trf.xlu0 }
 0x226   : > { %v1596_v42 = vrot.slane %v4558_v0, 4 }
 0x229   : > { %v4560_v2 = vpop.trf.xlu2 }
 0x22d   : > { %v4088_v8 = vpop.trf.xlu0 }
 0x22e   : > { %v1630_v52 = vrot.slane %v4088_v8, 4 }
 0x22f   : > { %v4106_v9 = vpop.trf.xlu1 }
 0x230   : > { %v1631_v8 = vsel %vm386_vm0, %v1630_v52, %v4556_v4 }
 0x231   : > { %v4097_v11 = vpop.trf.xlu2  ;;  %v1635_v23 = vperm.slane %v1631_v8, %v4380_v7 }
 0x232   : > { %v1636_v47 = vrot.slane %v4097_v11, 4  ;;  %v433_v11 = vrot.slane %v401_v63, 4 }
 0x234   : > { %v1637_v61 = vsel %vm386_vm0, %v1636_v47, %v4106_v9  ;;  %v434_v4 = vsel %vm386_vm0, %v433_v11, %v399_v17 }
 0x235   : > { %v4562_v56 = vpop.trf.xlu0  ;;  %v1641_v33 = vperm.slane %v1637_v61, %v4380_v7  ;;  %v438_v48 = vperm.slane %v434_v4, %v4380_v7 }
 0x236   : > { %v1670_v37 = vrot.slane %v4562_v56, 4 }
 0x237   : > { %v4107_v55 = vpop.trf.xlu1  ;;  %v1654_v56 = vrot.slane %v1641_v33, 4  ;;  %v439_v61 = vrot.slane %v438_v48, 4  ;;  %v451_v33 = vperm.slane %v447_v50, %v4380_v7  ;;  %v4687_v50 = vld [vmem:[%s4359_s7 + $0x4] sm:$0xf]  ;;  %s353_s7 = scalar_lea.vmem %s5300_s6, %s3949_s18 }
 0x238   : > { %v1671_v6 = vsel %vm386_vm0, %v1670_v37, %v4560_v2  ;;  %v425_v2 = vsel %vm386_vm0, 0, %v424_v34  ;;  %2013 = vrot.lane.b32.xlu0 %v4687_v50, %s4281_s9  ;;  %2017 = vrot.lane.b32.xlu1 %v4687_v50, %s4282_s10 }
 0x239   : > { %v4098_v13 = vpop.trf.xlu2  ;;  %v1655_v29 = vsel %vm386_vm0, %v1654_v56, %v1635_v23  ;;  %2015 = vrot.lane.b32.xlu2 %v4687_v50, %s4283_s16 }
 0x23a   : > { %v1676_v53 = vrot.slane %v4098_v13, 4 }
 0x23c   : > { %v1677_v31 = vsel %vm386_vm0, %v1676_v53, %v4107_v55  ;;  %v1556_v53 = vrot.slane %v4554_v3, 4 }
 0x23d   : > { %v4564_v5 = vpop.trf.xlu0  ;;  %v1681_v28 = vperm.slane %v1677_v31, %v4380_v7 }
 0x23e   : > { %v1642_v55 = vrot.slane %v4564_v5, 4 }
 0x23f   : > { %v4109_v16 = vpop.trf.xlu1  ;;  %v1694_v14 = vrot.slane %v1681_v28, 4 }
 0x241   : > { %v4100_v20 = vpop.trf.xlu2 }
 0x242   : > { %v1648_v62 = vrot.slane %v4100_v20, 4  ;;  %v427_v20 = vsel %vm386_vm0, 0, %v426_v49 }
 0x243   : > { %v452_v5 = vrot.slane %v427_v20, 4 }
 0x244   : > { %v1649_v12 = vsel %vm386_vm0, %v1648_v62, %v4109_v16 }
 0x245   : > { %v4577_v27 = vpop.trf.xlu0  ;;  %v1653_v16 = vperm.slane %v1649_v12, %v4380_v7  ;;  %v453_v39 = vsel %vm386_vm0, %v452_v5, %v425_v2 }
 0x246   : > { %v1682_v38 = vrot.slane %v4577_v27, 4  ;;  %v457_v62 = vperm.slane %v453_v39, %v4380_v7 }
 0x247   : > { %v4570_v19 = vpop.trf.xlu1  ;;  %v1660_v15 = vrot.slane %v1653_v16, 4 }
 0x248   : > { %v458_v34 = vrot.slane %v457_v62, 4 }
 0x249   : > { %v4101_v26 = vpop.trf.xlu2 }
 0x24a   : > { %v1688_v13 = vrot.slane %v4101_v26, 4  ;;  %v1675_v26 = vperm.slane %v1671_v6, %v4380_v7  ;;  %v459_v1 = vsel %vm386_vm0, %v458_v34, %v451_v33  ;;  %v4712_v33 = vld [vmem:[%s4705_s19] sm:$0xf] }
 0x24b   : > { %552 = vrot.lane.b32.xlu1 %v4712_v33, %s4281_s9  ;;  %554 = vrot.lane.b32.xlu0 %v4712_v33, %s4283_s16 }
 0x24c   : > { %v1689_v10 = vsel %vm386_vm0, %v1688_v13, %v4570_v19  ;;  %v1695_v30 = vsel %vm386_vm0, %v1694_v14, %v1675_v26  ;;  %v1659_v19 = vperm.slane %v1655_v29, %v4385_v22  ;;  %v440_v26 = vsel %vm386_vm0, %v439_v61, %v432_v40  ;;  %556 = vrot.lane.b32.xlu2 %v4712_v33, %s4282_s10 }
 0x24d   : > { %v4589_v44 = vpop.trf.xlu0  ;;  %v1693_v43 = vperm.slane %v1689_v10, %v4380_v7  ;;  %v1699_v47 = vperm.slane %v1695_v30, %v4385_v22 }
 0x24e   : > { %v1568_v52 = vrot.slane %v4589_v44, 4  ;;  %v1668_v25 = vrot.slane %v1659_v19, 4 }
 0x24f   : > { %v4581_v32 = vpop.trf.xlu1  ;;  %v1700_v59 = vrot.slane %v1693_v43, 4  ;;  %v1708_v49 = vrot.slane %v1699_v47, 4 }
 0x250   : > { %v1550_v3 = vrot.slane %v4581_v32, 4 }
 0x251   : > { %v4584_v45 = vpop.trf.xlu2 }
 0x252   : > { %v1557_v31 = vsel %vm386_vm0, %v1556_v53, %v4584_v45 }
 0x253   : > { %v1561_v45 = vperm.slane %v1557_v31, %v4380_v7 }
 0x255   : > { %v4608_v51 = vpop.trf.xlu0  ;;  %v1574_v10 = vrot.slane %v1561_v45, 4 }
 0x256   : > { %v1608_v17 = vrot.slane %v4608_v51, 4 }
 0x257   : > { %v4593_v54 = vpop.trf.xlu1 }
 0x258   : > { %v1590_v44 = vrot.slane %v4593_v54, 4 }
 0x259   : > { %v4597_v60 = vpop.trf.xlu2 }
 0x25a   : > { %v1597_v37 = vsel %vm386_vm0, %v1596_v42, %v4597_v60 }
 0x25b   : > { %v1601_v13 = vperm.slane %v1597_v37, %v4380_v7 }
 0x25d   : > { %v4124_v41 = vpop.trf.xlu0  ;;  %v1614_v30 = vrot.slane %v1601_v13, 4 }
 0x25e   : > { %v1569_v8 = vsel %vm386_vm0, %v1568_v52, %v4124_v41  ;;  %v463_v41 = vperm.slane %v459_v1, %v4385_v22 }
 0x25f   : > { %v4121_v9 = vpop.trf.xlu1 }
 0x260   : > { %v1551_v11 = vsel %vm386_vm0, %v1550_v3, %v4121_v9  ;;  %v464_v62 = vrot.slane %v463_v41, 4 }
 0x261   : > { %v4118_v21 = vpop.trf.xlu2  ;;  %v1555_v9 = vperm.slane %v1551_v11, %v4380_v7 }
 0x262   : > { %v1643_v18 = vsel %vm386_vm0, %v1642_v55, %v4118_v21  ;;  %v465_v37 = vsel %vm386_vm0, 0, %v464_v62 }
 0x263   : > { %v1647_v24 = vperm.slane %v1643_v18, %v4380_v7  ;;  %v1573_v18 = vperm.slane %v1569_v8, %v4380_v7  ;;  %v1575_v43 = vsel %vm386_vm0, %v1574_v10, %v1555_v9  ;;  %v470_v9 = vshrl.u32 %v463_v41, 16 }
 0x265   : > { %v1661_v36 = vsel %vm386_vm0, %v1660_v15, %v1647_v24  ;;  %v4125_v23 = vpop.trf.xlu0 }
 0x266   : > { %v1665_v58 = vperm.slane %v1661_v36, %v4385_v22  ;;  %v1609_v29 = vsel %vm386_vm0, %v1608_v17, %v4125_v23  ;;  %v4679_v36 = vperm.slane %v440_v26, %v4385_v22 }
 0x267   : > { %v4122_v35 = vpop.trf.xlu1 }
 0x268   : > { %v1669_v28 = vsel %vm386_vm0, %v1665_v58, %v1668_v25  ;;  %v1666_v12 = vrot.slane %v1665_v58, 4  ;;  %v1591_v21 = vsel %vm386_vm0, %v1590_v44, %v4122_v35  ;;  %v1580_v35 = vrot.slane %v1573_v18, 4 }
 0x269   : > { %v4119_v46 = vpop.trf.xlu2  ;;  %v1738_v6 = vshrl.u32 %v1669_v28, 16  ;;  %v1595_v2 = vperm.slane %v1591_v21, %v4380_v7  ;;  %v445_v53 = vrot.slane %v4679_v36, 4 }
 0x26a   : > { %v1683_v57 = vsel %vm386_vm0, %v1682_v38, %v4119_v46  ;;  %v4662_v51 = vsel %vm386_vm0, %v1666_v12, %v1659_v19  ;;  %v1613_v38 = vperm.slane %v1609_v29, %v4380_v7  ;;  %v1579_v46 = vperm.slane %v1575_v43, %v4385_v22 }
 0x26b   : > { %v1687_v27 = vperm.slane %v1683_v57, %v4380_v7  ;;  %v1615_v48 = vsel %vm386_vm0, %v1614_v30, %v1595_v2  ;;  %v446_v52 = vsel %vm386_vm0, 0, %v445_v53  ;;  %v1730_v34 = vshrl.u32 %v4662_v51, 16 }
 0x26c   : > { %v1619_v57 = vperm.slane %v1615_v48, %v4385_v22  ;;  %v1588_v42 = vrot.slane %v1579_v46, 4 }
 0x26d   : > { %v1701_v63 = vsel %vm386_vm0, %v1700_v59, %v1687_v27  ;;  %v1620_v27 = vrot.slane %v1613_v38, 4 }
 0x26e   : > { %v1705_v0 = vperm.slane %v1701_v63, %v4385_v22  ;;  %v1628_v63 = vrot.slane %v1619_v57, 4 }
 0x26f   : > { %v4130_v32 = vpop.trf.xlu1 }
 0x270   : > { %v1709_v55 = vsel %vm386_vm0, %v1705_v0, %v1708_v49  ;;  %v1706_v60 = vrot.slane %v1705_v0, 4 }
 0x271   : > { %v4127_v20 = vpop.trf.xlu2  ;;  %v1736_v56 = vpack.i.b16 %v1709_v55, %v1669_v28  ;;  %v1739_v16 = vshrl.u32 %v1709_v55, 16  ;;  %v476_v55 = vshrl.u32 %v465_v37, 16 }
 0x272   : > { %v1562_v54 = vrot.slane %v4127_v20, 4  ;;  %v4665_v14 = vsel %vm386_vm0, %v1706_v60, %v1699_v47 }
 0x273   : > { %1784 = vmatpush.bf16.msra.mxu2 %v1736_v56  ;;  %v1728_v24 = vpack.i.b16 %v4665_v14, %v4662_v51  ;;  %v1740_v4 = vpack.i.b16 %v1739_v16, %v1738_v6  ;;  %v1731_v28 = vshrl.u32 %v4665_v14, 16  ;;  %v4726_v56 = vpack.i.b16 %v465_v37, %v446_v52 }
 0x274   : > { %v1563_v5 = vsel %vm386_vm0, %v1562_v54, %v4130_v32  ;;  %v475_v32 = vshrl.u32 %v446_v52, 16  ;;  %v4731_v16 = vpack.i.b16 %v463_v41, %v4679_v36  ;;  %v469_v14 = vshrl.u32 %v4679_v36, 16 }
 0x275   : > { %v1567_v15 = vperm.slane %v1563_v5, %v4380_v7  ;;  %1752 = vmatpush.bf16.msra.mxu1 %v1728_v24  ;;  %1800 = vmatpush.bf16.msra.mxu3 %v1740_v4  ;;  %v1732_v20 = vpack.i.b16 %v1731_v28, %v1730_v34 }
 0x276   : > { %v4733_v21 = vpack.i.b16 %v476_v55, %v475_v32  ;;  %v4740_v18 = vpack.i.b16 %v470_v9, %v469_v14 }
 0x277   : > { %v1581_v19 = vsel %vm386_vm0, %v1580_v35, %v1567_v15  ;;  %v4131_v40 = vpop.trf.xlu1  ;;  %v561_v35 = vshrl.u32 %v4712_v33, 16 }
 0x278   : > { %v1585_v59 = vperm.slane %v1581_v19, %v4385_v22 }
 0x279   : > { %v4128_v39 = vpop.trf.xlu2 }
 0x27a   : > { %v1602_v47 = vrot.slane %v4128_v39, 4  ;;  %v1589_v25 = vsel %vm386_vm0, %v1585_v59, %v1588_v42  ;;  %v1586_v49 = vrot.slane %v1585_v59, 4  ;;  %v2022_v59 = vshrl.u32 %v4687_v50, 16 }
 0x27b   : > { %v1722_v44 = vshrl.u32 %v1589_v25, 16 }
 0x27c   : > { %v1603_v58 = vsel %vm386_vm0, %v1602_v47, %v4131_v40  ;;  %v1587_v11 = vsel %vm386_vm0, %v1586_v49, %v1579_v46 }
 0x27d   : > { %v1607_v61 = vperm.slane %v1603_v58, %v4380_v7  ;;  %v1714_v54 = vshrl.u32 %v1587_v11, 16 }
 0x27f   : > { %v1621_v31 = vsel %vm386_vm0, %v1620_v27, %v1607_v61 }
 0x280   : > { %v1625_v3 = vperm.slane %v1621_v31, %v4385_v22 }
 0x282   : > { %v1629_v0 = vsel %vm386_vm0, %v1625_v3, %v1628_v63  ;;  %v1626_v12 = vrot.slane %v1625_v3, 4 }
 0x283   : > { %v1720_v45 = vpack.i.b16 %v1629_v0, %v1589_v25  ;;  %v1723_v17 = vshrl.u32 %v1629_v0, 16 }
 0x284   : > { %v1627_v8 = vsel %vm386_vm0, %v1626_v12, %v1619_v57 }
 0x285   : > { %1785 = vmatpush.bf16.msra.mxu2 %v1720_v45  ;;  %v1712_v60 = vpack.i.b16 %v1627_v8, %v1587_v11  ;;  %v1724_v13 = vpack.i.b16 %v1723_v17, %v1722_v44  ;;  %v1715_v6 = vshrl.u32 %v1627_v8, 16 }
 0x287   : > { %1753 = vmatpush.bf16.msra.mxu1 %v1712_v60  ;;  %1801 = vmatpush.bf16.msra.mxu3 %v1724_v13  ;;  %v1716_v51 = vpack.i.b16 %v1715_v6, %v1714_v54 }
 0x288   : > { %3960 = vmatmul.msk.bf16.vlgmr.msra.gmra.mxu2 %vm1742_vm1, %v4726_v56 }
 0x28a   : > { %3958 = vmatmul.msk.bf16.vlgmr.msra.gmra.mxu1 %vm1742_vm1, %v4731_v16  ;;  %3961 = vmatmul.msk.bf16.vlgmr.msra.gmra.mxu3 %vm1742_vm1, %v4733_v21 }
 0x28b   : > { %1768 = vmatpush.bf16.msrb.mxu1 %v1732_v20 }
 0x28f   : > { %1769 = vmatpush.bf16.msrb.mxu1 %v1716_v51 }
 0x293   : > { %v2016_v1 = vpop.permute.xlu2 %2015 }
 0x294   : > { %v2028_v62 = vshrl.u32 %v2016_v1, 16 }
 0x29a   : > { %3959 = vmatmul.msk.bf16.vlgmr.msrb.gmra.mxu1 %vm1742_vm1, %v4740_v18 }
 0x2a6   : > { %v557_v41 = vpop.permute.xlu2 %556 }
 0x2a7   : > { %v568_v47 = vshrl.u32 %v557_v41, 16 }
 0x2aa   : > { %v2014_v2 = vpop.permute.xlu0 %2013  ;;  %v2018_v15 = vpop.permute.xlu1 %2017 }
 0x2ab   : > { %v2023_v27 = vshrl.u32 %v2014_v2, 16  ;;  %v2029_v42 = vshrl.u32 %v2018_v15, 16  ;;  %v2021_v3 = vpack.i.b16 %v2014_v2, %v4687_v50  ;;  %v2027_v28 = vpack.i.b16 %v2018_v15, %v2016_v1 }
 0x2ad   : > { %v2024_v63 = vpack.i.b16 %v2023_v27, %v2022_v59  ;;  %v2030_v0 = vpack.i.b16 %v2029_v42, %v2028_v62  ;;  %v2035_v44 = vperm.slane %v2021_v3, %v4380_v7  ;;  %v2040_v34 = vperm.slane %v2027_v28, %v4380_v7 }
 0x2af   : > { %v2061_v17 = vperm.slane %v2024_v63, %v4380_v7  ;;  %v2066_v50 = vperm.slane %v2030_v0, %v4380_v7  ;;  %v2043_v13 = vrot.slane %v2035_v44, 4  ;;  %v2041_v6 = vrot.slane %v2040_v34, 4 }
 0x2b1   : > { %v2069_v20 = vrot.slane %v2061_v17, 4  ;;  %v2067_v54 = vrot.slane %v2066_v50, 4  ;;  %v2042_v2 = vsel %vm386_vm0, %v2041_v6, %v2035_v44 }
 0x2b3   : > { %v2068_v15 = vsel %vm386_vm0, %v2067_v54, %v2061_v17 }
 0x2bd   : > { %v553_v36 = vpop.permute.xlu1 %552  ;;  %v555_v48 = vpop.permute.xlu0 %554 }
 0x2be   : > { %v560_v19 = vpack.i.b16 %v553_v36, %v4712_v33  ;;  %v562_v39 = vshrl.u32 %v553_v36, 16  ;;  %v567_v40 = vshrl.u32 %v555_v48, 16  ;;  %v566_v58 = vpack.i.b16 %v557_v41, %v555_v48 }
 0x2bf   : > { %v2048_v48 = vperm.slane %v2042_v2, %v4385_v22 }
 0x2c0   : > { %v563_v53 = vpack.i.b16 %v562_v39, %v561_v35  ;;  %v574_v57 = vperm.slane %v560_v19, %v4380_v7  ;;  %v569_v61 = vpack.i.b16 %v568_v47, %v567_v40  ;;  %v579_v25 = vperm.slane %v566_v58, %v4380_v7 }
 0x2c1   : > { %v2074_v19 = vperm.slane %v2068_v15, %v4385_v22 }
 0x2c2   : > { %v600_v31 = vperm.slane %v563_v53, %v4380_v7  ;;  %v582_v52 = vrot.slane %v574_v57, 4  ;;  %v605_v33 = vperm.slane %v569_v61, %v4380_v7  ;;  %v580_v12 = vrot.slane %v579_v25, 4 }
 0x2c4   : > { %v608_v49 = vrot.slane %v600_v31, 4  ;;  %v583_v45 = vsel %vm386_vm0, %v579_v25, %v582_v52  ;;  %v606_v8 = vrot.slane %v605_v33, 4  ;;  %v581_v55 = vsel %vm386_vm0, %v580_v12, %v574_v57 }
 0x2c5   : > { %v591_v11 = vperm.slane %v583_v45, %v4385_v22  ;;  %v587_v51 = vperm.slane %v581_v55, %v4385_v22 }
 0x2c6   : > { %v609_v32 = vsel %vm386_vm0, %v605_v33, %v608_v49  ;;  %v607_v9 = vsel %vm386_vm0, %v606_v8, %v600_v31 }
 0x2c7   : > { %v617_v60 = vperm.slane %v609_v32, %v4385_v22  ;;  %v594_v14 = vrot.slane %v591_v11, 4  ;;  %v592_v1 = vrot.slane %v587_v51, 4 }
 0x2c9   : > { %v593_v41 = vsel %vm386_vm0, 0, %v592_v1  ;;  %v1880_v58 = vsel %vm386_vm0, %v594_v14, %v587_v51 }
 0x2ca   : > { %v1884_v61 = vperm.slane %v1880_v58, %v4380_v7 }
 0x307   : > { %v4744_v23 = vpop.f32.mrf.mxu1 }
 0x308   : > { %v1808_v24 = vsel %vm1807_vm2, %v4744_v23, -inf }
 0x309   : > { %1809 = vmax.xlane.f32.xlu0 %v1808_v24  ;;  %v620_v24 = vrot.slane %v617_v60, 4 }
 0x30b   : > { %v4748_v4 = vpop.f32.mrf.mxu2  ;;  %v621_v36 = vsel %vm386_vm0, 0, %v620_v24 }
 0x30c   : > { %v1814_v5 = vsel %vm1807_vm2, %v4748_v4, -inf }
 0x30d   : > { %v4752_v26 = vpop.f32.mrf.mxu3  ;;  %1815 = vmax.xlane.f32.xlu2 %v1814_v5  ;;  %v2044_v5 = vsel %vm386_vm0, %v2040_v34, %v2043_v13 }
 0x30e   : > { %v1817_v10 = vsel %vm1807_vm2, %v4752_v26, -inf }
 0x30f   : > { %v1757_v29 = vpop.f32.mrf.mxu1  ;;  %1818 = vmax.xlane.f32.xlu1 %v1817_v10  ;;  %v2070_v10 = vsel %vm386_vm0, %v2066_v50, %v2069_v20 }
 0x310   : > { %v613_v29 = vperm.slane %v607_v9, %v4385_v22  ;;  %v2078_v35 = vperm.slane %v2070_v10, %v4385_v22  ;;  %v2079_v9 = vrot.slane %v2074_v19, 4 }
 0x312   : > { %v618_v39 = vrot.slane %v613_v29, 4  ;;  %v2081_v53 = vrot.slane %v2078_v35, 4  ;;  %v1899_v27 = vsel %vm386_vm0, %v620_v24, %v613_v29 }
 0x313   : > { %v1789_v30 = vpop.f32.mrf.mxu2  ;;  %v1903_v25 = vperm.slane %v1899_v27, %v4380_v7 }
 0x314   : > { %v595_v30 = vsel %vm386_vm0, 0, %v594_v14  ;;  %v619_v57 = vsel %vm386_vm0, 0, %v618_v39  ;;  %v2082_v52 = vsel %vm386_vm0, 0, %v2081_v53  ;;  %v2053_v14 = vrot.slane %v2048_v48, 4 }
 0x315   : > { %v1805_v43 = vpop.f32.mrf.mxu3  ;;  %v1885_v40 = vrot.slane %v595_v30, 4 }
 0x316   : > { %v2052_v43 = vperm.slane %v2044_v5, %v4385_v22  ;;  %v2054_v24 = vsel %vm386_vm0, 0, %v2053_v14  ;;  %v2080_v5 = vsel %vm386_vm0, 0, %v2079_v9 }
 0x317   : > { %v4757_v38 = vpop.f32.mrf.mxu1  ;;  %v1886_v59 = vsel %vm386_vm0, %v1885_v40, %v593_v41 }
 0x318   : > { %v1811_v46 = vsel %vm1807_vm2, %v4757_v38, -inf  ;;  %v2055_v47 = vrot.slane %v2052_v43, 4  ;;  %v1890_v62 = vperm.slane %v1886_v59, %v4380_v7 }
 0x319   : > { %1812 = vmax.xlane.f32.xlu1 %v1811_v46  ;;  %v1904_v46 = vrot.slane %v621_v36, 4 }
 0x31a   : > { %v2056_v31 = vsel %vm386_vm0, 0, %v2055_v47  ;;  %v1891_v63 = vrot.slane %v1890_v62, 4 }
 0x31b   : > { %v1905_v42 = vsel %vm386_vm0, %v1904_v46, %v619_v57 }
 0x31c   : > { %v1909_v3 = vperm.slane %v1905_v42, %v4380_v7  ;;  %v1892_v33 = vsel %vm386_vm0, %v1891_v63, %v1884_v61 }
 0x31e   : > { %v1910_v49 = vrot.slane %v1909_v3, 4 }
 0x31f   : > { %v1773_v37 = vpop.f32.mrf.mxu1 }
 0x320   : > { %v1896_v37 = vperm.slane %v1892_v33, %v4385_v22  ;;  %v1911_v28 = vsel %vm386_vm0, %v1910_v49, %v1903_v25 }
 0x321   : > { %v1915_v0 = vperm.slane %v1911_v28, %v4385_v22 }
 0x322   : > { %v1921_v12 = vshrl.u32 %v1896_v37, 16  ;;  %v1897_v45 = vrot.slane %v1896_v37, 4 }
 0x323   : > { %v1920_v44 = vpack.i.b16 %v1915_v0, %v1896_v37  ;;  %v1922_v17 = vshrl.u32 %v1915_v0, 16  ;;  %v1916_v32 = vrot.slane %v1915_v0, 4 }
 0x324   : > { %v1898_v34 = vsel %vm386_vm0, 0, %v1897_v45 }
 0x325   : > { %v1935_v50 = vsel %vm1933_vm3, %v1920_v44, 0  ;;  %v1923_v11 = vpack.i.b16 %v1922_v17, %v1921_v12  ;;  %v1917_v8 = vsel %vm386_vm0, 0, %v1916_v32  ;;  %v1927_v55 = vshrl.u32 %v1898_v34, 16 }
 0x326   : > { %1944 = vmatpush.bf16.msra.mxu0 %v1935_v50  ;;  %v1926_v60 = vpack.i.b16 %v1917_v8, %v1898_v34  ;;  %v1928_v13 = vshrl.u32 %v1917_v8, 16 }
 0x327   : > { %v1954_v20 = vsel %vm1933_vm3, %v1923_v11, 0 }
 0x328   : > { %1963 = vmatpush.bf16.msra.mxu1 %v1954_v20  ;;  %v1973_v6 = vsel %vm1933_vm3, %v1926_v60, 0  ;;  %v1929_v54 = vpack.i.b16 %v1928_v13, %v1927_v55 }
 0x329   : > { %1982 = vmatpush.bf16.msrb.mxu2 %v1973_v6 }
 0x32a   : > { %v1992_v51 = vsel %vm1933_vm3, %v1929_v54, 0 }
 0x32b   : > { %2001 = vmatpush.bf16.msrb.mxu3 %v1992_v51 }
 0x332   : > { %4137 = vxpose.binary.xlu0.c.b16.start.end [1/2] (short) (narrow) %v2074_v19, %v2048_v48, 32 }
 0x336   : > { %4132 = vxpose.binary.xlu2.c.b16.start.end [1/2] (short) (narrow) %v2082_v52, %v2056_v31, 32 }
 0x352   : > { %4142 = vxpose.binary.xlu0.c.b16.start.end [1/2] (short) (narrow) %v2080_v5, %v2054_v24, 32 }
 0x353   : > { %4147 = vxpose.binary.xlu1.c.b16.start.end [1/2] (short) (narrow) %v2078_v35, %v2052_v43, 32 }
 0x37c   : > { %v4814_v10 = vpop.xlane.xlu0 %1809 }
 0x37d   : > { %v1832_v2 = vsub.f32 %v4744_v23, %v4814_v10 }
 0x37f   : > { %v1836_v15 = vpack.c.bf16 %v1832_v2, %v1832_v2 }
 0x380   : > { %v4818_v29 = vpop.xlane.xlu2 %1815 }
 0x381   : > { %v1834_v1 = vsub.f32 %v4748_v4, %v4818_v29  ;;  %v1840_v30 = vunpack.c.l.bf16 %v1836_v15 }
 0x382   : > { %v4822_v36 = vpop.xlane.xlu1 %1818 }
 0x383   : > { %v1838_v48 = vpack.c.bf16 %v1834_v1, %v1834_v1  ;;  %v1835_v19 = vsub.f32 %v4752_v26, %v4822_v36  ;;  %v1844_v39 = vmul.f32 1.442695, %v1840_v30 }
 0x385   : > { %v1842_v43 = vunpack.c.l.bf16 %v1838_v48  ;;  %v1839_v35 = vpack.c.bf16 %v1835_v19, %v1835_v19  ;;  %4201 = vpow2.f32 %v1844_v39 }
 0x387   : > { %v1848_v40 = vmul.f32 1.442695, %v1842_v43  ;;  %v1843_v41 = vunpack.c.l.bf16 %v1839_v35 }
 0x389   : > { %4203 = vpow2.f32 %v1848_v40  ;;  %v1850_v23 = vmul.f32 1.442695, %v1843_v41 }
 0x38b   : > { %v4202_v46 = vpop.eup %4201  ;;  %4205 = vpow2.f32 %v1850_v23 }
 0x38c   : > { %v4826_v47 = vpop.xlane.xlu1 %1812  ;;  %v4828_v4 = vpack.c.bf16 %v4202_v46, %v4202_v46 }
 0x38d   : > { %v1833_v53 = vsub.f32 %v4757_v38, %v4826_v47 }
 0x38e   : > { %3962 = vmatmul.msk.bf16.vlgmr.msra.gmra.mxu0 %vm1807_vm2, %v4828_v4 }
 0x38f   : > { %v4204_v26 = vpop.eup %4203  ;;  %v1837_v57 = vpack.c.bf16 %v1833_v53, %v1833_v53 }
 0x390   : > { %v4834_v58 = vpack.c.bf16 %v4204_v26, %v4204_v26 }
 0x391   : > { %v4206_v59 = vpop.eup %4205  ;;  %v1841_v27 = vunpack.c.l.bf16 %v1837_v57 }
 0x392   : > { %3964 = vmatmul.msk.bf16.vlgmr.msrb.gmra.mxu2 %vm1807_vm2, %v4834_v58  ;;  %v4838_v61 = vpack.c.bf16 %v4206_v59, %v4206_v59 }
 0x393   : > { %v1846_v62 = vmul.f32 1.442695, %v1841_v27 }
 0x394   : > { %3965 = vmatmul.msk.bf16.vlgmr.msrb.gmra.mxu3 %vm1807_vm2, %v4838_v61 }
 0x395   : > { %4207 = vpow2.f32 %v1846_v62 }
 0x39b   : > { %v4208_v38 = vpop.eup %4207 }
 0x39c   : > { %v4842_v42 = vpack.c.bf16 %v4208_v38, %v4208_v38 }
 0x39e   : > { %3963 = vmatmul.msk.bf16.vlgmr.msra.gmra.mxu1 %vm1807_vm2, %v4842_v42 }
 0x3d7   : > { %v4133_v33 = vpop.trf.xlu2 }
 0x3d8   : > { %v2311_v54 = vshrl.u32 %v4133_v33, 16 }
 0x3de   : > { %v4138_v31 = vpop.trf.xlu0 }
 0x3df   : > { %v2287_v25 = vshrl.u32 %v4138_v31, 16  ;;  %v4134_v0 = vpop.trf.xlu2 }
 0x3e0   : > { %v4856_v14 = vpack.i.b16 %v4134_v0, %v4133_v33  ;;  %v2312_v9 = vshrl.u32 %v4134_v0, 16 }
 0x3e6   : > { %v4139_v52 = vpop.trf.xlu0 }
 0x3e7   : > { %v4846_v3 = vpack.i.b16 %v4139_v52, %v4138_v31  ;;  %v2288_v63 = vshrl.u32 %v4139_v52, 16  ;;  %v4135_v44 = vpop.trf.xlu2 }
 0x3e8   : > { %v2343_v11 = vshrl.u32 %v4135_v44, 16 }
 0x3e9   : > { %v4848_v49 = vpack.i.b16 %v2288_v63, %v2287_v25  ;;  %v4868_v25 = vpack.i.b16 %v2312_v9, %v2311_v54  ;;  %v2359_v63 = vrot.slane %v4856_v14, 4 }
 0x3ee   : > { %v4140_v37 = vpop.trf.xlu0 }
 0x3ef   : > { %v4136_v50 = vpop.trf.xlu2  ;;  %v2319_v5 = vshrl.u32 %v4140_v37, 16 }
 0x3f0   : > { %v2344_v8 = vshrl.u32 %v4136_v50, 16  ;;  %v2341_v13 = vpack.i.b16 %v4136_v50, %v4135_v44 }
 0x3f2   : > { %v2345_v20 = vpack.i.b16 %v2344_v8, %v2343_v11  ;;  %v2471_v15 = vrot.slane %v2341_v13, 4 }
 0x3f4   : > { %v2527_v1 = vrot.slane %v2345_v20, 4 }
 0x3f6   : > { %v4141_v28 = vpop.trf.xlu0 }
 0x3f7   : > { %v2320_v51 = vshrl.u32 %v4141_v28, 16  ;;  %v2317_v48 = vpack.i.b16 %v4141_v28, %v4140_v37 }
 0x3f9   : > { %v2321_v26 = vpack.i.b16 %v2320_v51, %v2319_v5  ;;  %v2461_v50 = vrot.slane %v2317_v48, 4 }
 0x3fe   : > { %v4850_v12 = vpop.trf.xlu0 }
 0x3ff   : > { %v4148_v45 = vpop.trf.xlu1  ;;  %v2295_v54 = vshrl.u32 %v4850_v12, 16 }
 0x400   : > { %v2303_v41 = vshrl.u32 %v4148_v45, 16 }
 0x406   : > { %v4852_v17 = vpop.trf.xlu0 }
 0x407   : > { %v4149_v32 = vpop.trf.xlu1 }
 0x408   : > { %v2304_v2 = vshrl.u32 %v4149_v32, 16  ;;  %v4862_v57 = vpack.i.b16 %v4149_v32, %v4148_v45 }
 0x40a   : > { %v4865_v62 = vpack.i.b16 %v2304_v2, %v2303_v41  ;;  %v2347_v11 = vrot.slane %v4862_v57, 4 }
 0x40b   : > { %v4854_v34 = vpop.f32.mrf.mxu0 }
 0x40c   : > { %v2403_v51 = vrot.slane %v4865_v62, 4 }
 0x40e   : > { %v4145_v55 = vpop.trf.xlu0 }
 0x40f   : > { %v4150_v60 = vpop.trf.xlu1  ;;  %v2327_v19 = vshrl.u32 %v4145_v55, 16 }
 0x410   : > { %v2335_v23 = vshrl.u32 %v4150_v60, 16 }
 0x413   : > { %v1948_v6 = vpop.f32.mrf.mxu0 }
 0x414   : > { %v2517_v6 = vrot.slane %v2321_v26, 4 }
 0x415   : > { %v4858_v24 = vpop.f32.mrf.mxu2 }
 0x416   : > { %v4146_v30 = vpop.trf.xlu0 }
 0x417   : > { %v2325_v39 = vpack.i.b16 %v4146_v30, %v4145_v55  ;;  %v2328_v43 = vshrl.u32 %v4146_v30, 16  ;;  %v4151_v35 = vpop.trf.xlu1  ;;  %v4860_v40 = vpop.f32.mrf.mxu3 }
 0x418   : > { %v2333_v46 = vpack.i.b16 %v4151_v35, %v4150_v60  ;;  %v2336_v53 = vshrl.u32 %v4151_v35, 16  ;;  %v2348_v35 = vsel %vm386_vm0, %v2347_v11, %v4846_v3 }
 0x419   : > { %v2329_v59 = vpack.i.b16 %v2328_v43, %v2327_v19  ;;  %v2472_v27 = vsel %vm386_vm0, %v2471_v15, %v2325_v39  ;;  %v2473_v33 = vrot.slane %v2325_v39, 4 }
 0x41a   : > { %v2478_v38 = vperm.slane %v2472_v27, %v4380_v7  ;;  %v2337_v31 = vpack.i.b16 %v2336_v53, %v2335_v23  ;;  %v2459_v52 = vrot.slane %v2333_v46, 4  ;;  %v2404_v27 = vsel %vm386_vm0, %v2403_v51, %v4848_v49 }
 0x41b   : > { %v2528_v37 = vsel %vm386_vm0, %v2527_v1, %v2329_v59  ;;  %v4872_v28 = vpop.f32.mrf.mxu1  ;;  %v2529_v45 = vrot.slane %v2329_v59, 4  ;;  %v2474_v5 = vsel %vm386_vm0, %v2341_v13, %v2473_v33  ;;  %v2462_v13 = vsel %vm386_vm0, %v2333_v46, %v2461_v50 }
 0x41c   : > { %v2483_v0 = vrot.slane %v2478_v38, 4  ;;  %v2534_v44 = vperm.slane %v2528_v37, %v4380_v7  ;;  %v2460_v32 = vsel %vm386_vm0, %v2459_v52, %v2317_v48  ;;  %v2515_v55 = vrot.slane %v2337_v31, 4 }
 0x41d   : > { %v2466_v8 = vperm.slane %v2460_v32, %v4380_v7  ;;  %v1986_v60 = vpop.f32.mrf.mxu2  ;;  %v2296_v48 = vshrl.u32 %v4852_v17, 16  ;;  %v2530_v19 = vsel %vm386_vm0, %v2345_v20, %v2529_v45  ;;  %v2518_v41 = vsel %vm386_vm0, %v2337_v31, %v2517_v6 }
 0x41e   : > { %v2539_v9 = vrot.slane %v2534_v44, 4  ;;  %v2516_v2 = vsel %vm386_vm0, %v2515_v55, %v2321_v26  ;;  %v2482_v53 = vperm.slane %v2474_v5, %v4380_v7  ;;  %v2538_v52 = vperm.slane %v2530_v19, %v4380_v7 }
 0x41f   : > { %v2005_v15 = vpop.f32.mrf.mxu3  ;;  %v2485_v1 = vrot.slane %v2466_v8, 4  ;;  %v2484_v30 = vsel %vm386_vm0, %v2483_v0, %v2466_v8  ;;  %v2522_v39 = vperm.slane %v2516_v2, %v4380_v7  ;;  %v2470_v31 = vperm.slane %v2462_v13, %v4380_v7 }
 0x420   : > { %v4887_v43 = vperm.slane %v2484_v30, %v4385_v22  ;;  %v2526_v0 = vperm.slane %v2518_v41, %v4380_v7  ;;  %v4911_v32 = vpack.i.b16 %v2296_v48, %v2295_v54  ;;  %v2415_v55 = vrot.slane %v4868_v25, 4 }
 0x421   : > { %v2486_v23 = vsel %vm386_vm0, %v2478_v38, %v2485_v1  ;;  %v2541_v59 = vrot.slane %v2522_v39, 4  ;;  %v2540_v20 = vsel %vm386_vm0, %v2539_v9, %v2522_v39  ;;  %v4906_v38 = vpack.i.b16 %v4852_v17, %v4850_v12 }
 0x422   : > { %v2494_v26 = vperm.slane %v2486_v23, %v4385_v22  ;;  %v2507_v37 = vrot.slane %v4887_v43, 4  ;;  %v4902_v46 = vperm.slane %v2540_v20, %v4385_v22  ;;  %v4917_v60 = vperm.slane %v2348_v35, %v4380_v7 }
 0x423   : > { %v1967_v33 = vpop.f32.mrf.mxu1  ;;  %v2542_v45 = vsel %vm386_vm0, %v2534_v44, %v2541_v59  ;;  %v4920_v12 = vperm.slane %v2404_v27, %v4380_v7  ;;  %v2495_v17 = vrot.slane %v2482_v53, 4  ;;  %v2551_v51 = vrot.slane %v2538_v52, 4 }
 0x424   : > { %v2550_v50 = vperm.slane %v2542_v45, %v4385_v22  ;;  %v2563_v11 = vrot.slane %v4902_v46, 4  ;;  %v2509_v8 = vrot.slane %v2494_v26, 4  ;;  %v2508_v6 = vsel %vm386_vm0, 0, %v2507_v37 }
 0x425   : > { %v2497_v9 = vrot.slane %v2470_v31, 4  ;;  %v2553_v5 = vrot.slane %v2526_v0, 4  ;;  %v2360_v2 = vsel %vm386_vm0, %v2359_v63, %v4906_v38  ;;  %v2416_v15 = vsel %vm386_vm0, %v2415_v55, %v4911_v32 }
 0x426   : > { %4158 = vxpose.binary.xlu0.c.b16.start.end [1/2] (short) (narrow) %v2550_v50, %v2494_v26, 16  ;;  %v2564_v44 = vsel %vm386_vm0, 0, %v2563_v11  ;;  %v2565_v54 = vrot.slane %v2550_v50, 4  ;;  %v2510_v1 = vsel %vm386_vm0, 0, %v2509_v8  ;;  %v2373_v48 = vrot.slane %v4917_v60, 4 }
 0x427   : > { %4155 = vxpose.binary.xlu2.c.b16.start.end [1/2] (short) (narrow) %v2564_v44, %v2508_v6, 16  ;;  %v2429_v19 = vrot.slane %v4920_v12, 4  ;;  %v2496_v39 = vsel %vm386_vm0, %v2495_v17, %v2470_v31  ;;  %v2552_v35 = vsel %vm386_vm0, %v2551_v51, %v2526_v0  ;;  %v2366_v13 = vperm.slane %v2360_v2, %v4380_v7 }
 0x428   : > { %v2566_v30 = vsel %vm386_vm0, 0, %v2565_v54  ;;  %v2422_v63 = vperm.slane %v2416_v15, %v4380_v7  ;;  %v2498_v41 = vsel %vm386_vm0, %v2482_v53, %v2497_v9  ;;  %v2554_v23 = vsel %vm386_vm0, %v2538_v52, %v2553_v5 }
 0x429   : > { %4152 = vxpose.binary.xlu1.c.b16.start.end [1/2] (short) (narrow) %v2566_v30, %v2510_v1, 16  ;;  %v4939_v26 = vperm.slane %v2496_v39, %v4385_v22  ;;  %v4942_v59 = vperm.slane %v2552_v35, %v4385_v22  ;;  %v2374_v20 = vsel %vm386_vm0, %v2366_v13, %v2373_v48  ;;  %v2349_v9 = vrot.slane %v4846_v3, 4 }
 0x42a   : > { %v2430_v27 = vsel %vm386_vm0, %v2422_v63, %v2429_v19  ;;  %v2506_v33 = vperm.slane %v2498_v41, %v4385_v22  ;;  %v2562_v37 = vperm.slane %v2554_v23, %v4385_v22  ;;  %v2382_v31 = vperm.slane %v2374_v20, %v4385_v22 }
 0x42b   : > { %v2438_v53 = vperm.slane %v2430_v27, %v4385_v22  ;;  %v2511_v52 = vrot.slane %v4939_v26, 4  ;;  %v2567_v0 = vrot.slane %v4942_v59, 4  ;;  %v2405_v5 = vrot.slane %v4848_v49, 4 }
 0x42c   : > { %v2513_v45 = vrot.slane %v2506_v33, 4  ;;  %v2569_v50 = vrot.slane %v2562_v37, 4  ;;  %v2397_v11 = vrot.slane %v2382_v31, 4  ;;  %v2361_v2 = vrot.slane %v4906_v38, 4 }
 0x42d   : > { %v2453_v8 = vrot.slane %v2438_v53, 4  ;;  %v2512_v55 = vsel %vm386_vm0, 0, %v2511_v52  ;;  %v2568_v17 = vsel %vm386_vm0, 0, %v2567_v0  ;;  %v2417_v15 = vrot.slane %v4911_v32, 4 }
 0x42e   : > { %v2514_v6 = vsel %vm386_vm0, 0, %v2513_v45  ;;  %v2570_v44 = vsel %vm386_vm0, 0, %v2569_v50  ;;  %v2398_v54 = vsel %vm386_vm0, 0, %v2397_v11  ;;  %v2350_v1 = vsel %vm386_vm0, %v4862_v57, %v2349_v9 }
 0x42f   : > { %v2454_v51 = vsel %vm386_vm0, 0, %v2453_v8  ;;  %v2406_v30 = vsel %vm386_vm0, %v4865_v62, %v2405_v5  ;;  %v2358_v48 = vperm.slane %v2350_v1, %v4380_v7  ;;  %v2362_v39 = vsel %vm386_vm0, %v4856_v14, %v2361_v2 }
 0x430   : > { %v2414_v19 = vperm.slane %v2406_v30, %v4380_v7  ;;  %v2418_v3 = vsel %vm386_vm0, %v4868_v25, %v2417_v15  ;;  %v2371_v49 = vrot.slane %v2366_v13, 4  ;;  %v2427_v38 = vrot.slane %v2422_v63, 4 }
 0x431   : > { %v2370_v57 = vperm.slane %v2362_v39, %v4380_v7  ;;  %v2385_v32 = vrot.slane %v2358_v48, 4  ;;  %v2426_v62 = vperm.slane %v2418_v3, %v4380_v7 }
 0x432   : > { %v2441_v35 = vrot.slane %v2414_v19, 4  ;;  %v2372_v41 = vsel %vm386_vm0, %v2371_v49, %v4917_v60  ;;  %v2428_v14 = vsel %vm386_vm0, %v2427_v38, %v4920_v12 }
 0x433   : > { %v2386_v25 = vsel %vm386_vm0, %v2370_v57, %v2385_v32  ;;  %v2383_v52 = vrot.slane %v2370_v57, 4  ;;  %v2439_v0 = vrot.slane %v2426_v62, 4 }
 0x434   : > { %v2442_v13 = vsel %vm386_vm0, %v2426_v62, %v2441_v35  ;;  %v2394_v63 = vperm.slane %v2386_v25, %v4385_v22 }
 0x435   : > { %v2450_v23 = vperm.slane %v2442_v13, %v4385_v22  ;;  %v2384_v45 = vsel %vm386_vm0, %v2383_v52, %v2358_v48  ;;  %v2440_v50 = vsel %vm386_vm0, %v2439_v0, %v2414_v19 }
 0x436   : > { %4170 = vxpose.binary.xlu0.c.b16.start.end [1/2] (short) (narrow) %v2568_v17, %v2512_v55, 16  ;;  %v2390_v11 = vperm.slane %v2384_v45, %v4385_v22  ;;  %v2446_v8 = vperm.slane %v2440_v50, %v4385_v22 }
 0x437   : > { %4161 = vxpose.binary.xlu2.c.b16.start.end [1/2] (short) (narrow) %v2570_v44, %v2514_v6, 16 }
 0x438   : > { %v2399_v55 = vrot.slane %v2390_v11, 4  ;;  %v2455_v17 = vrot.slane %v2446_v8, 4 }
 0x439   : > { %4164 = vxpose.binary.xlu1.c.b16.start.end [1/2] (short) (narrow) %v2454_v51, %v2398_v54, 16 }
 0x43a   : > { %v2400_v6 = vsel %vm386_vm0, 0, %v2399_v55  ;;  %v2456_v44 = vsel %vm386_vm0, 0, %v2455_v17 }
 0x446   : > { %4179 = vxpose.binary.xlu0.c.b16.start.end [1/2] (short) (narrow) %v2438_v53, %v2382_v31, 16 }
 0x447   : > { %4167 = vxpose.binary.xlu2.c.b16.start.end [1/2] (short) (narrow) %v4902_v46, %v4887_v43, 16  ;;  %v2378_v43 = vperm.slane %v2372_v41, %v4385_v22  ;;  %v2434_v46 = vperm.slane %v2428_v14, %v4385_v22 }
 0x449   : > { %4173 = vxpose.binary.xlu1.c.b16.start.end [1/2] (short) (narrow) %v2562_v37, %v2506_v33, 16  ;;  %v2395_v20 = vrot.slane %v2378_v43, 4  ;;  %v2451_v27 = vrot.slane %v2434_v46, 4  ;;  %v2401_v33 = vrot.slane %v2394_v63, 4  ;;  %v2457_v37 = vrot.slane %v2450_v23, 4 }
 0x44b   : > { %v2396_v60 = vsel %vm386_vm0, 0, %v2395_v20  ;;  %v2452_v12 = vsel %vm386_vm0, 0, %v2451_v27  ;;  %v2402_v31 = vsel %vm386_vm0, 0, %v2401_v33  ;;  %v2458_v53 = vsel %vm386_vm0, 0, %v2457_v37 }
 0x456   : > { %4188 = vxpose.binary.xlu0.c.b16.start.end [1/2] (short) (narrow) %v2434_v46, %v2378_v43, 16 }
 0x457   : > { %4176 = vxpose.binary.xlu2.c.b16.start.end [1/2] (short) (narrow) %v2452_v12, %v2396_v60, 16 }
 0x459   : > { %4182 = vxpose.binary.xlu1.c.b16.start.end [1/2] (short) (narrow) %v2458_v53, %v2402_v31, 16 }
 0x466   : > { %4197 = vxpose.binary.xlu0.c.b16.start.end [1/2] (short) (narrow) %v2446_v8, %v2390_v11, 16 }
 0x467   : > { %4185 = vxpose.binary.xlu2.c.b16.start.end [1/2] (short) (narrow) %v4942_v59, %v4939_v26, 16 }
 0x469   : > { %4191 = vxpose.binary.xlu1.c.b16.start.end [1/2] (short) (narrow) %v2456_v44, %v2400_v6, 16 }
 0x477   : > { %4194 = vxpose.binary.xlu2.c.b16.start.end [1/2] (short) (narrow) %v2450_v23, %v2394_v63, 16 }
 0x4c8   : > { %v4156_v54 = vpop.trf.xlu2 }
 0x4d0   : > { %v4157_v51 = vpop.trf.xlu2 }
 0x4d2   : > { %v4159_v9 = vpop.trf.xlu0 }
 0x4d3   : > { %v3163_v13 = vrot.slane %v4159_v9, 4 }
 0x4d5   : > { %v4153_v5 = vpop.trf.xlu1 }
 0x4d6   : > { %v3169_v35 = vrot.slane %v4153_v5, 4 }
 0x4d8   : > { %v4162_v2 = vpop.trf.xlu2  ;;  %v3170_v43 = vsel %vm386_vm0, %v3169_v35, %v4156_v54 }
 0x4d9   : > { %v3181_v14 = vrot.slane %v4162_v2, 4  ;;  %v3174_v37 = vperm.slane %v3170_v43, %v4380_v7 }
 0x4da   : > { %v4160_v15 = vpop.trf.xlu0 }
 0x4db   : > { %v3203_v23 = vrot.slane %v4160_v15, 4  ;;  %v3187_v11 = vrot.slane %v3174_v37, 4 }
 0x4dd   : > { %v4154_v1 = vpop.trf.xlu1 }
 0x4de   : > { %v3209_v25 = vrot.slane %v4154_v1, 4 }
 0x4e0   : > { %v4163_v30 = vpop.trf.xlu2  ;;  %v3210_v20 = vsel %vm386_vm0, %v3209_v25, %v4157_v51 }
 0x4e1   : > { %v3214_v53 = vperm.slane %v3210_v20, %v4380_v7  ;;  %v3221_v45 = vrot.slane %v4163_v30, 4 }
 0x4e2   : > { %v4171_v48 = vpop.trf.xlu0 }
 0x4e3   : > { %v3182_v46 = vsel %vm386_vm0, %v3181_v14, %v4171_v48  ;;  %v3227_v44 = vrot.slane %v3214_v53, 4 }
 0x4e4   : > { %v3186_v60 = vperm.slane %v3182_v46, %v4380_v7  ;;  %v5030_v46 = vld [vmem:[%s4705_s19 + $0x4] sm:$0xf] }
 0x4e5   : > { %v4165_v19 = vpop.trf.xlu1  ;;  %2085 = vrot.lane.b32.xlu1 %v5030_v46, %s4281_s9  ;;  %2089 = vrot.lane.b32.xlu0 %v5030_v46, %s4282_s10 }
 0x4e6   : > { %v3193_v8 = vrot.slane %v3186_v60, 4  ;;  %2087 = vrot.lane.b32.xlu2 %v5030_v46, %s4283_s16 }
 0x4e8   : > { %v4168_v39 = vpop.trf.xlu2 }
 0x4e9   : > { %v3164_v27 = vsel %vm386_vm0, %v3163_v13, %v4168_v39 }
 0x4ea   : > { %v4172_v3 = vpop.trf.xlu0  ;;  %v3168_v52 = vperm.slane %v3164_v27, %v4380_v7 }
 0x4eb   : > { %v3222_v6 = vsel %vm386_vm0, %v3221_v45, %v4172_v3  ;;  %v3089_v3 = vrot.slane %v4165_v19, 4 }
 0x4ec   : > { %v3188_v54 = vsel %vm386_vm0, %v3187_v11, %v3168_v52  ;;  %v3226_v5 = vperm.slane %v3222_v6, %v4380_v7 }
 0x4ed   : > { %v4998_v49 = vpop.trf.xlu1  ;;  %v3192_v1 = vperm.slane %v3188_v54, %v4385_v22 }
 0x4ee   : > { %v3233_v35 = vrot.slane %v3226_v5, 4 }
 0x4ef   : > { %v3201_v25 = vrot.slane %v3192_v1, 4 }
 0x4f0   : > { %v4169_v26 = vpop.trf.xlu2 }
 0x4f1   : > { %v3204_v12 = vsel %vm386_vm0, %v3203_v23, %v4169_v26  ;;  %v3129_v23 = vrot.slane %v4998_v49, 4 }
 0x4f2   : > { %v5000_v59 = vpop.trf.xlu0  ;;  %v3208_v55 = vperm.slane %v3204_v12, %v4380_v7 }
 0x4f4   : > { %v3228_v2 = vsel %vm386_vm0, %v3227_v44, %v3208_v55 }
 0x4f5   : > { %v4174_v38 = vpop.trf.xlu1  ;;  %v3232_v26 = vperm.slane %v3228_v2, %v4385_v22 }
 0x4f6   : > { %v3175_v31 = vrot.slane %v4174_v38, 4 }
 0x4f7   : > { %v3241_v27 = vrot.slane %v3232_v26, 4 }
 0x4f8   : > { %v4177_v57 = vpop.trf.xlu2 }
 0x4f9   : > { %v3090_v13 = vsel %vm386_vm0, %v3089_v3, %v4177_v57 }
 0x4fa   : > { %v5002_v32 = vpop.trf.xlu0  ;;  %v3094_v49 = vperm.slane %v3090_v13, %v4380_v7 }
 0x4fb   : > { %v3123_v37 = vrot.slane %v5002_v32, 4 }
 0x4fd   : > { %v4175_v62 = vpop.trf.xlu1 }
 0x4fe   : > { %v3215_v30 = vrot.slane %v4175_v62, 4  ;;  %v3083_v62 = vrot.slane %v5000_v59, 4 }
 0x500   : > { %v4178_v41 = vpop.trf.xlu2 }
 0x501   : > { %v3130_v59 = vsel %vm386_vm0, %v3129_v23, %v4178_v41 }
 0x502   : > { %v4189_v63 = vpop.trf.xlu0  ;;  %v3134_v41 = vperm.slane %v3130_v59, %v4380_v7 }
 0x505   : > { %v4183_v33 = vpop.trf.xlu1 }
 0x506   : > { %v3101_v20 = vrot.slane %v4183_v33, 4  ;;  %v3084_v33 = vsel %vm386_vm0, %v3083_v62, %v4189_v63 }
 0x507   : > { %v3088_v63 = vperm.slane %v3084_v33, %v4380_v7 }
 0x508   : > { %v4186_v0 = vpop.trf.xlu2 }
 0x509   : > { %v3176_v50 = vsel %vm386_vm0, %v3175_v31, %v4186_v0 }
 0x50a   : > { %v3180_v17 = vperm.slane %v3176_v50, %v4380_v7  ;;  %v4190_v15 = vpop.trf.xlu0 }
 0x50b   : > { %v3124_v52 = vsel %vm386_vm0, %v3123_v37, %v4190_v15  ;;  %v3107_v15 = vrot.slane %v3094_v49, 4 }
 0x50c   : > { %v3194_v51 = vsel %vm386_vm0, %v3193_v8, %v3180_v17 }
 0x50d   : > { %v5019_v9 = vpop.trf.xlu1  ;;  %v3198_v48 = vperm.slane %v3194_v51, %v4385_v22 }
 0x50f   : > { %v3199_v43 = vrot.slane %v3198_v48, 4  ;;  %v3202_v12 = vsel %vm386_vm0, %v3198_v48, %v3201_v25  ;;  %v3141_v48 = vrot.slane %v5019_v9, 4 }
 0x510   : > { %v4187_v39 = vpop.trf.xlu2  ;;  %v3271_v55 = vshrl.u32 %v3202_v12, 16 }
 0x511   : > { %v3216_v38 = vsel %vm386_vm0, %v3215_v30, %v4187_v39  ;;  %v3200_v0 = vsel %vm386_vm0, %v3199_v43, %v3192_v1  ;;  %v3128_v1 = vperm.slane %v3124_v52, %v4380_v7 }
 0x512   : > { %v3220_v14 = vperm.slane %v3216_v38, %v4380_v7  ;;  %v4198_v53 = vpop.trf.xlu0  ;;  %v3263_v51 = vshrl.u32 %v3200_v0, 16 }
 0x514   : > { %v3234_v19 = vsel %vm386_vm0, %v3233_v35, %v3220_v14  ;;  %v3108_v14 = vsel %vm386_vm0, %v3107_v15, %v3088_v63 }
 0x515   : > { %v3238_v57 = vperm.slane %v3234_v19, %v4385_v22  ;;  %v4192_v60 = vpop.trf.xlu1 }
 0x516   : > { %v3102_v31 = vsel %vm386_vm0, %v3101_v20, %v4192_v60  ;;  %v3112_v20 = vperm.slane %v3108_v14, %v4385_v22 }
 0x517   : > { %v3242_v32 = vsel %vm386_vm0, %v3238_v57, %v3241_v27  ;;  %v3239_v45 = vrot.slane %v3238_v57, 4  ;;  %v3106_v50 = vperm.slane %v3102_v31, %v4380_v7 }
 0x518   : > { %v4195_v11 = vpop.trf.xlu2  ;;  %v3269_v8 = vpack.i.b16 %v3242_v32, %v3202_v12  ;;  %v3272_v17 = vshrl.u32 %v3242_v32, 16  ;;  %v3121_v49 = vrot.slane %v3112_v20, 4 }
 0x519   : > { %v3095_v6 = vrot.slane %v4195_v11, 4  ;;  %v3240_v44 = vsel %vm386_vm0, %v3239_v45, %v3232_v26  ;;  %v3113_v39 = vrot.slane %v3106_v50, 4  ;;  %v3147_v26 = vrot.slane %v3134_v41, 4 }
 0x51a   : > { %3307 = vmatpush.bf16.msra.mxu2 %v3269_v8  ;;  %v3261_v54 = vpack.i.b16 %v3240_v44, %v3200_v0  ;;  %v3264_v5 = vshrl.u32 %v3240_v44, 16  ;;  %v3273_v2 = vpack.i.b16 %v3272_v17, %v3271_v55  ;;  %v4199_v62 = vpop.trf.xlu0 }
 0x51b   : > { %v3096_v30 = vsel %vm386_vm0, %v3095_v6, %v4198_v53  ;;  %v3148_v43 = vsel %vm386_vm0, %v3147_v26, %v3128_v1 }
 0x51c   : > { %v3100_v3 = vperm.slane %v3096_v30, %v4380_v7  ;;  %v3265_v38 = vpack.i.b16 %v3264_v5, %v3263_v51  ;;  %3281 = vmatpush.bf16.msrb.mxu0 %v3261_v54  ;;  %3320 = vmatpush.bf16.msra.mxu3 %v3273_v2  ;;  %v3152_v37 = vperm.slane %v3148_v43, %v4385_v22 }
 0x51d   : > { %v4193_v35 = vpop.trf.xlu1 }
 0x51e   : > { %v3114_v25 = vsel %vm386_vm0, %v3113_v39, %v3100_v3  ;;  %v3142_v13 = vsel %vm386_vm0, %v3141_v48, %v4193_v35  ;;  %3294 = vmatpush.bf16.msrb.mxu1 %v3265_v38  ;;  %v3161_v52 = vrot.slane %v3152_v37, 4 }
 0x51f   : > { %v3146_v23 = vperm.slane %v3142_v13, %v4380_v7  ;;  %v3118_v19 = vperm.slane %v3114_v25, %v4385_v22 }
 0x520   : > { %v4196_v9 = vpop.trf.xlu2 }
 0x521   : > { %v3135_v27 = vrot.slane %v4196_v9, 4  ;;  %v3153_v60 = vrot.slane %v3146_v23, 4  ;;  %v3119_v59 = vrot.slane %v3118_v19, 4  ;;  %v3122_v53 = vsel %vm386_vm0, %v3118_v19, %v3121_v49 }
 0x522   : > { %v3255_v11 = vshrl.u32 %v3122_v53, 16  ;;  %v1863_v9 = vunpack.c.l.bf16 %v4838_v61 }
 0x523   : > { %v3136_v57 = vsel %vm386_vm0, %v3135_v27, %v4199_v62  ;;  %v3120_v0 = vsel %vm386_vm0, %v3119_v59, %v3112_v20 }
 0x524   : > { %v3140_v12 = vperm.slane %v3136_v57, %v4380_v7  ;;  %v3247_v41 = vshrl.u32 %v3120_v0, 16 }
 0x526   : > { %v3154_v33 = vsel %vm386_vm0, %v3153_v60, %v3140_v12 }
 0x527   : > { %v3158_v31 = vperm.slane %v3154_v33, %v4385_v22  ;;  %v1873_v33 = vsel %vm1807_vm2, %v1863_v9, 0.0 }
 0x529   : > { %v3162_v32 = vsel %vm386_vm0, %v3158_v31, %v3161_v52  ;;  %v3159_v45 = vrot.slane %v3158_v31, 4  ;;  %v1862_v52 = vunpack.c.l.bf16 %v4834_v58 }
 0x52a   : > { %v3253_v50 = vpack.i.b16 %v3162_v32, %v3122_v53  ;;  %v3256_v8 = vshrl.u32 %v3162_v32, 16 }
 0x52b   : > { %v3160_v55 = vsel %vm386_vm0, %v3159_v45, %v3152_v37 }
 0x52c   : > { %3308 = vmatpush.bf16.msra.mxu2 %v3253_v50  ;;  %v3245_v17 = vpack.i.b16 %v3160_v55, %v3120_v0  ;;  %v3248_v63 = vshrl.u32 %v3160_v55, 16  ;;  %v3257_v6 = vpack.i.b16 %v3256_v8, %v3255_v11 }
 0x52e   : > { %3282 = vmatpush.bf16.msrb.mxu0 %v3245_v17  ;;  %3321 = vmatpush.bf16.msra.mxu3 %v3257_v6  ;;  %v3249_v44 = vpack.i.b16 %v3248_v63, %v3247_v41 }
 0x52f   : > { %3968 = vmatmul.msk.bf16.vlgmr.msra.gmra.mxu2 %vm1742_vm1, %v4726_v56 }
 0x530   : > { %3295 = vmatpush.bf16.msrb.mxu1 %v3249_v44  ;;  %v1870_v44 = vsel %vm1807_vm2, %v1862_v52, 0.0 }
 0x531   : > { %3966 = vmatmul.msk.bf16.vlgmr.msrb.gmra.mxu0 %vm1742_vm1, %v4731_v16  ;;  %3969 = vmatmul.msk.bf16.vlgmr.msra.gmra.mxu3 %vm1742_vm1, %v4733_v21  ;;  %v2094_v21 = vshrl.u32 %v5030_v46, 16 }
 0x533   : > { %3967 = vmatmul.msk.bf16.vlgmr.msrb.gmra.mxu1 %vm1742_vm1, %v4740_v18 }
 0x540   : > { %v2088_v39 = vpop.permute.xlu2 %2087 }
 0x541   : > { %v2100_v26 = vshrl.u32 %v2088_v39, 16 }
 0x557   : > { %v2086_v15 = vpop.permute.xlu1 %2085  ;;  %v2090_v48 = vpop.permute.xlu0 %2089 }
 0x558   : > { %v2093_v1 = vpack.i.b16 %v2086_v15, %v5030_v46  ;;  %v2095_v30 = vshrl.u32 %v2086_v15, 16  ;;  %v2101_v38 = vshrl.u32 %v2090_v48, 16  ;;  %v2099_v35 = vpack.i.b16 %v2090_v48, %v2088_v39 }
 0x55a   : > { %v2096_v14 = vpack.i.b16 %v2095_v30, %v2094_v21  ;;  %v2107_v25 = vperm.slane %v2093_v1, %v4380_v7  ;;  %v2102_v43 = vpack.i.b16 %v2101_v38, %v2100_v26  ;;  %v2112_v23 = vperm.slane %v2099_v35, %v4380_v7 }
 0x55b   : > { %v1860_v38 = vunpack.c.l.bf16 %v4828_v4 }
 0x55c   : > { %v2115_v62 = vrot.slane %v2107_v25, 4  ;;  %v2133_v46 = vperm.slane %v2096_v14, %v4380_v7  ;;  %v2113_v19 = vrot.slane %v2112_v23, 4  ;;  %v2138_v27 = vperm.slane %v2102_v43, %v4380_v7 }
 0x55e   : > { %v2141_v57 = vrot.slane %v2133_v46, 4  ;;  %v2116_v60 = vsel %vm386_vm0, %v2112_v23, %v2115_v62  ;;  %v2114_v49 = vsel %vm386_vm0, %v2113_v19, %v2107_v25  ;;  %v2139_v61 = vrot.slane %v2138_v27, 4 }
 0x55f   : > { %v2124_v59 = vperm.slane %v2116_v60, %v4385_v22  ;;  %v2120_v31 = vperm.slane %v2114_v49, %v4385_v22 }
 0x560   : > { %v2142_v53 = vsel %vm386_vm0, %v2138_v27, %v2141_v57  ;;  %v2140_v0 = vsel %vm386_vm0, %v2139_v61, %v2133_v46  ;;  %v1861_v27 = vunpack.c.l.bf16 %v4842_v42 }
 0x561   : > { %v2127_v32 = vrot.slane %v2124_v59, 4  ;;  %v2150_v45 = vperm.slane %v2142_v53, %v4385_v22  ;;  %v2125_v50 = vrot.slane %v2120_v31, 4  ;;  %v2146_v11 = vperm.slane %v2140_v0, %v4385_v22 }
 0x562   : > { %v1820_v53 = vsub.f32 -inf, %v4814_v10  ;;  %v1823_v0 = vsub.f32 -inf, %v4822_v36 }
 0x563   : > { %v2128_v8 = vsel %vm386_vm0, 0, %v2127_v32  ;;  %v2153_v55 = vrot.slane %v2150_v45, 4  ;;  %v2126_v17 = vsel %vm386_vm0, 0, %v2125_v50  ;;  %v2151_v41 = vrot.slane %v2146_v11, 4 }
 0x564   : > { %v3403_v63 = vsel %vm386_vm0, %v2127_v32, %v2120_v31  ;;  %v3408_v6 = vrot.slane %v2128_v8, 4  ;;  %v1867_v31 = vsel %vm1807_vm2, %v1861_v27, 0.0  ;;  %v1824_v52 = vmul.f32 1.442695, %v1820_v53 }
 0x565   : > { %v2154_v58 = vsel %vm386_vm0, 0, %v2153_v55  ;;  %v3422_v21 = vsel %vm386_vm0, %v2153_v55, %v2146_v11  ;;  %v1822_v32 = vsub.f32 -inf, %v4818_v29 }
 0x566   : > { %v3427_v15 = vrot.slane %v2154_v58, 4  ;;  %v3426_v39 = vperm.slane %v3422_v21, %v4380_v7  ;;  %4209 = vpow2.f32 %v1824_v52 }
 0x567   : > { %v1828_v11 = vmul.f32 1.442695, %v1822_v32 }
 0x569   : > { %4211 = vpow2.f32 %v1828_v11 }
 0x5ae   : > { %v5083_v54 = vpop.f32.mrf.mxu0 }
 0x5af   : > { %v3327_v51 = vsel %vm1807_vm2, %v5083_v54, -inf }
 0x5b0   : > { %v5087_v5 = vpop.f32.mrf.mxu1  ;;  %3328 = vmax.xlane.f32.xlu0 %v3327_v51  ;;  %v2152_v51 = vsel %vm386_vm0, 0, %v2151_v41 }
 0x5b1   : > { %v3330_v37 = vsel %vm1807_vm2, %v5087_v5, -inf  ;;  %v3428_v30 = vsel %vm386_vm0, %v3427_v15, %v2152_v51 }
 0x5b2   : > { %v5089_v2 = vpop.f32.mrf.mxu2 }
 0x5b3   : > { %v3333_v56 = vsel %vm1807_vm2, %v5089_v2, -inf }
 0x5b4   : > { %v5093_v16 = vpop.f32.mrf.mxu3  ;;  %3334 = vmax.xlane.f32.xlu1 %v3333_v56  ;;  %v3409_v56 = vsel %vm386_vm0, %v3408_v6, %v2126_v17  ;;  %v1830_v17 = vmul.f32 1.442695, %v1823_v0 }
 0x5b5   : > { %v3336_v18 = vsel %vm1807_vm2, %v5093_v16, -inf  ;;  %v3413_v1 = vperm.slane %v3409_v56, %v4380_v7  ;;  %v4210_v56 = vpop.eup %4209 }
 0x5b6   : > { %3337 = vmax.xlane.f32.xlu2 %v3336_v18  ;;  %v3286_v3 = vpop.f32.mrf.mxu0  ;;  %v3407_v18 = vperm.slane %v3403_v63, %v4380_v7  ;;  %v1821_v63 = vsub.f32 -inf, %v4826_v47 }
 0x5b7   : > { %v3414_v48 = vrot.slane %v3413_v1, 4  ;;  %v3432_v3 = vperm.slane %v3428_v30, %v4380_v7 }
 0x5b8   : > { %v3299_v13 = vpop.f32.mrf.mxu1 }
 0x5b9   : > { %v3415_v35 = vsel %vm386_vm0, %v3414_v48, %v3407_v18  ;;  %v3433_v26 = vrot.slane %v3432_v3, 4  ;;  %v1864_v13 = vsel %vm1807_vm2, %v1860_v38, 0.0 }
 0x5ba   : > { %v3312_v20 = vpop.f32.mrf.mxu2  ;;  %v3419_v14 = vperm.slane %v3415_v35, %v4385_v22 }
 0x5bb   : > { %v3434_v25 = vsel %vm386_vm0, %v3433_v26, %v3426_v39  ;;  %v5154_v39 = vmul.f32 0.0, %v4210_v56  ;;  %v4212_v26 = vpop.eup %4211 }
 0x5bc   : > { %v3325_v12 = vpop.f32.mrf.mxu3  ;;  %3331 = vmax.xlane.f32.xlu1 %v3330_v37  ;;  %v3438_v43 = vperm.slane %v3434_v25, %v4385_v22  ;;  %v3444_v23 = vshrl.u32 %v3419_v14, 16  ;;  %v3420_v9 = vrot.slane %v3419_v14, 4 }
 0x5be   : > { %1874 = vadd.xlane.f32.xlu2 %v1873_v33  ;;  %v3443_v62 = vpack.i.b16 %v3438_v43, %v3419_v14  ;;  %v3445_v46 = vshrl.u32 %v3438_v43, 16  ;;  %v3421_v20 = vsel %vm386_vm0, 0, %v3420_v9  ;;  %v3439_v19 = vrot.slane %v3438_v43, 4 }
 0x5bf   : > { %v3450_v4 = vshrl.u32 %v3421_v20, 16 }
 0x5c0   : > { %v3457_v37 = vsel %vm1933_vm3, %v3443_v62, 0  ;;  %v3446_v57 = vpack.i.b16 %v3445_v46, %v3444_v23  ;;  %v3440_v60 = vsel %vm386_vm0, 0, %v3439_v19 }
 0x5c1   : > { %3466 = vmatpush.bf16.msra.mxu0 %v3457_v37  ;;  %v3449_v12 = vpack.i.b16 %v3440_v60, %v3421_v20  ;;  %v3451_v49 = vshrl.u32 %v3440_v60, 16 }
 0x5c2   : > { %v3476_v59 = vsel %vm1933_vm3, %v3446_v57, 0 }
 0x5c3   : > { %3485 = vmatpush.bf16.msra.mxu1 %v3476_v59  ;;  %v3495_v61 = vsel %vm1933_vm3, %v3449_v12, 0  ;;  %v3452_v33 = vpack.i.b16 %v3451_v49, %v3450_v4 }
 0x5c4   : > { %1871 = vadd.xlane.f32.xlu1 %v1870_v44  ;;  %3504 = vmatpush.bf16.msrb.mxu2 %v3495_v61 }
 0x5c5   : > { %v3514_v42 = vsel %vm1933_vm3, %v3452_v33, 0 }
 0x5c6   : > { %3523 = vmatpush.bf16.msrb.mxu3 %v3514_v42 }
 0x5cc   : > { %1865 = vadd.xlane.f32.xlu1 %v1864_v13 }
 0x5d4   : > { %1868 = vadd.xlane.f32.xlu1 %v1867_v31 }
 0x623   : > { %v3329_v45 = vpop.xlane.xlu0 %3328 }
 0x624   : > { %v3339_v50 = vmax.f32 %v4814_v10, %v3329_v45 }
 0x626   : > { %v3343_v8 = vsub.f32 %v4814_v10, %v3339_v50  ;;  %v3355_v55 = vsub.f32 %v5083_v54, %v3339_v50  ;;  %v1826_v54 = vmul.f32 1.442695, %v1821_v63 }
 0x627   : > { %v3335_v41 = vpop.xlane.xlu1 %3334 }
 0x628   : > { %v3347_v6 = vmul.f32 1.442695, %v3343_v8  ;;  %v3359_v44 = vpack.c.bf16 %v3355_v55, %v3355_v55  ;;  %v3341_v58 = vmax.f32 %v4818_v29, %v3335_v41 }
 0x629   : > { %v3338_v51 = vpop.xlane.xlu2 %3337 }
 0x62a   : > { %4213 = vpow2.f32 %v3347_v6  ;;  %v3363_v21 = vunpack.c.l.bf16 %v3359_v44  ;;  %v3345_v15 = vsub.f32 %v4818_v29, %v3341_v58  ;;  %v3357_v18 = vsub.f32 %v5089_v2, %v3341_v58 }
 0x62b   : > { %4215 = vpow2.f32 %v1830_v17  ;;  %v3342_v10 = vmax.f32 %v4822_v36, %v3338_v51  ;;  %v2007_v29 = vadd.f32 %v4854_v34, %v5154_v39 }
 0x62c   : > { %v3367_v1 = vmul.f32 1.442695, %v3363_v21  ;;  %v3351_v30 = vmul.f32 1.442695, %v3345_v15  ;;  %v3361_v48 = vpack.c.bf16 %v3357_v18, %v3357_v18 }
 0x62d   : > { %v3346_v3 = vsub.f32 %v4822_v36, %v3342_v10  ;;  %v3358_v38 = vsub.f32 %v5093_v16, %v3342_v10  ;;  %v1858_v16 = vmul.f32 0.0, %v4212_v26 }
 0x62e   : > { %4217 = vpow2.f32 %v3367_v1  ;;  %v3365_v35 = vunpack.c.l.bf16 %v3361_v48 }
 0x62f   : > { %4219 = vpow2.f32 %v3351_v30  ;;  %v3353_v2 = vmul.f32 1.442695, %v3346_v3  ;;  %v3362_v14 = vpack.c.bf16 %v3358_v38, %v3358_v38  ;;  %v3332_v25 = vpop.xlane.xlu1 %3331  ;;  %v2009_v4 = vadd.f32 %v4858_v24, %v1858_v16 }
 0x630   : > { %v4214_v13 = vpop.eup %4213  ;;  %4221 = vpow2.f32 %v1826_v54  ;;  %v3371_v43 = vmul.f32 1.442695, %v3365_v35  ;;  %v3340_v23 = vmax.f32 %v4826_v47, %v3332_v25 }
 0x631   : > { %v4216_v9 = vpop.eup %4215  ;;  %4223 = vpow2.f32 %v3353_v2  ;;  %v3366_v36 = vunpack.c.l.bf16 %v3362_v14  ;;  %v5161_v62 = vmul.f32 %v4214_v13, %v2007_v29  ;;  %v1875_v15 = vpop.xlane.xlu2 %1874 }
 0x632   : > { %4225 = vpow2.f32 %v3371_v43  ;;  %v3344_v46 = vsub.f32 %v4826_v47, %v3340_v23  ;;  %v3356_v34 = vsub.f32 %v5087_v5, %v3340_v23  ;;  %v1859_v27 = vmul.f32 0.0, %v4216_v9 }
 0x633   : > { %v3373_v20 = vmul.f32 1.442695, %v3366_v36 }
 0x634   : > { %v4218_v19 = vpop.eup %4217  ;;  %v3349_v37 = vmul.f32 1.442695, %v3344_v46  ;;  %v3360_v57 = vpack.c.bf16 %v3356_v34, %v3356_v34  ;;  %v2010_v59 = vadd.f32 %v4860_v40, %v1859_v27  ;;  %v1879_v29 = vadd.f32 %v1875_v15, %v1859_v27 }
 0x635   : > { %v4220_v60 = vpop.eup %4219  ;;  %v3375_v12 = vpack.c.bf16 %v4218_v19, %v4218_v19  ;;  %4227 = vpow2.f32 %v3373_v20 }
 0x636   : > { %v4222_v49 = vpop.eup %4221  ;;  %4229 = vpow2.f32 %v3349_v37  ;;  %v3364_v61 = vunpack.c.l.bf16 %v3360_v57  ;;  %v5167_v33 = vmul.f32 %v4220_v60, %v2009_v4 }
 0x637   : > { %v4224_v47 = vpop.eup %4223  ;;  %3970 = vmatmul.msk.bf16.vlgmr.msra.gmra.mxu0 %vm1807_vm2, %v3375_v12  ;;  %v3383_v5 = vunpack.c.l.bf16 %v3375_v12  ;;  %v1857_v53 = vmul.f32 0.0, %v4222_v49  ;;  %v1872_v58 = vpop.xlane.xlu1 %1871 }
 0x638   : > { %v4226_v31 = vpop.eup %4225  ;;  %v3369_v42 = vmul.f32 1.442695, %v3364_v61  ;;  %v5170_v24 = vmul.f32 %v4224_v47, %v2010_v59  ;;  %v1878_v18 = vadd.f32 %v1872_v58, %v1858_v16  ;;  %v3382_v14 = vmul.f32 %v4224_v47, %v1879_v29 }
 0x639   : > { %v3377_v52 = vpack.c.bf16 %v4226_v31, %v4226_v31  ;;  %v3387_v32 = vsel %vm1807_vm2, %v3383_v5, 0.0  ;;  %v2008_v40 = vadd.f32 %v4872_v28, %v1857_v53 }
 0x63a   : > { %4231 = vpow2.f32 %v3369_v42  ;;  %3388 = vadd.xlane.f32.xlu1 %v3387_v32  ;;  %v3381_v30 = vmul.f32 %v4220_v60, %v1878_v18 }
 0x63b   : > { %v4228_v0 = vpop.eup %4227  ;;  %3972 = vmatmul.msk.bf16.vlgmr.msrb.gmra.mxu2 %vm1807_vm2, %v3377_v52  ;;  %v3385_v45 = vunpack.c.l.bf16 %v3377_v52 }
 0x63c   : > { %v4230_v50 = vpop.eup %4229  ;;  %v3378_v11 = vpack.c.bf16 %v4228_v0, %v4228_v0 }
 0x63d   : > { %v3393_v8 = vsel %vm1807_vm2, %v3385_v45, 0.0  ;;  %v5176_v55 = vmul.f32 %v4230_v50, %v2008_v40 }
 0x63e   : > { %3973 = vmatmul.msk.bf16.vlgmr.msrb.gmra.mxu3 %vm1807_vm2, %v3378_v11  ;;  %3394 = vadd.xlane.f32.xlu2 %v3393_v8  ;;  %v3386_v63 = vunpack.c.l.bf16 %v3378_v11 }
 0x63f   : > { %v1866_v51 = vpop.xlane.xlu1 %1865 }
 0x640   : > { %v4232_v17 = vpop.eup %4231  ;;  %v3396_v28 = vsel %vm1807_vm2, %v3386_v63, 0.0  ;;  %v1876_v21 = vadd.f32 %v1866_v51, %v5154_v39 }
 0x641   : > { %v3376_v41 = vpack.c.bf16 %v4232_v17, %v4232_v17 }
 0x642   : > { %v3379_v10 = vmul.f32 %v4214_v13, %v1876_v21 }
 0x643   : > { %3971 = vmatmul.msk.bf16.vlgmr.msra.gmra.mxu1 %vm1807_vm2, %v3376_v41  ;;  %v3384_v6 = vunpack.c.l.bf16 %v3376_v41 }
 0x645   : > { %v3390_v44 = vsel %vm1807_vm2, %v3384_v6, 0.0 }
 0x646   : > { %3397 = vadd.xlane.f32.xlu2 %v3396_v28  ;;  %3391 = vadd.xlane.f32.xlu0 %v3390_v44 }
 0x647   : > { %v1869_v56 = vpop.xlane.xlu1 %1868 }
 0x648   : > { %v1877_v38 = vadd.f32 %v1869_v56, %v1857_v53 }
 0x64a   : > { %v3380_v25 = vmul.f32 %v4230_v50, %v1877_v38 }
 0x6ad   : > { %v3389_v54 = vpop.xlane.xlu1 %3388 }
 0x6ae   : > { %v3399_v1 = vadd.f32 %v3389_v54, %v3379_v10 }
 0x6b0   : > { %4233 = vrcp.f32 %v3399_v1  ;;  %v3546_v36 = vand.u32 2147483647, %v3399_v1  ;;  %v3548_v13 = vand.u32 2147483648, %v3399_v1  ;;  %vm3542_vm5 = vweird.f32 %v3399_v1 }
 0x6b1   : > { %v3395_v48 = vpop.xlane.xlu2 %3394 }
 0x6b2   : > { %v3401_v3 = vadd.f32 %v3395_v48, %v3381_v30  ;;  %vm3547_vm7 = vcmp.eq.f32.partialorder %v3546_v36, 8.507059e+37  ;;  %v3549_v37 = vor.u32 1.1754944e-38, %v3548_v13 }
 0x6b4   : > { %4235 = vrcp.f32 %v3401_v3  ;;  %v3468_v35 = vpop.f32.mrf.mxu0  ;;  %v3576_v60 = vand.u32 2147483647, %v3401_v3  ;;  %v3578_v12 = vand.u32 2147483648, %v3401_v3  ;;  %vm3572_vm9 = vweird.f32 %v3401_v3 }
 0x6b5   : > { %v3533_v49 = vadd.f32 %v5161_v62, %v3468_v35 }
 0x6b6   : > { %v4234_v26 = vpop.eup %4233  ;;  %v3579_v32 = vor.u32 1.1754944e-38, %v3578_v12  ;;  %vm3577_vm11 = vcmp.eq.f32.partialorder %v3576_v60, 8.507059e+37 }
 0x6b7   : > { %v3538_v2 = vmul.f32 %v4234_v26, %v3399_v1  ;;  %vm3543_vm4 = vweird.f32 %v4234_v26 }
 0x6b8   : > { %vm3544_vm6 = vmor %vm3542_vm5, %vm3543_vm4 }
 0x6b9   : > { %v3539_v43 = vsub.f32 1.0, %v3538_v2  ;;  %v3398_v23 = vpop.xlane.xlu2 %3397  ;;  %v3392_v39 = vpop.xlane.xlu0 %3391 }
 0x6ba   : > { %v4236_v9 = vpop.eup %4235  ;;  %v5183_v16 = vadd.f32 %v3398_v23, %v3382_v14  ;;  %v5185_v46 = vadd.f32 %v3392_v39, %v3380_v25 }
 0x6bb   : > { %v3568_v34 = vmul.f32 %v4236_v9, %v3401_v3  ;;  %v3540_v20 = vmul.f32 %v4234_v26, %v3539_v43  ;;  %vm3573_vm8 = vweird.f32 %v4236_v9 }
 0x6bc   : > { %4237 = vrcp.f32 %v5183_v16  ;;  %v3470_v19 = vpop.f32.mrf.mxu0  ;;  %vm3574_vm10 = vmor %vm3572_vm9, %vm3573_vm8  ;;  %v3563_v6 = vand.u32 2147483648, %v5185_v46  ;;  %v3591_v28 = vand.u32 2147483647, %v5183_v16  ;;  %v3593_v44 = vand.u32 2147483648, %v5183_v16 }
 0x6bd   : > { %v3569_v4 = vsub.f32 1.0, %v3568_v34  ;;  %v3541_v27 = vadd.f32 %v4234_v26, %v3540_v20  ;;  %4239 = vrcp.f32 %v5185_v46  ;;  %v3561_v15 = vand.u32 2147483647, %v5185_v46 }
 0x6be   : > { %v3506_v57 = vpop.f32.mrf.mxu2  ;;  %vm3587_vm14 = vweird.f32 %v5183_v16  ;;  %vm3557_vm15 = vweird.f32 %v5185_v46  ;;  %v3594_v48 = vor.u32 1.1754944e-38, %v3593_v44  ;;  %v3564_v3 = vor.u32 1.1754944e-38, %v3563_v6 }
 0x6bf   : > { %v3545_v59 = vsel %vm3544_vm6, %v4234_v26, %v3541_v27  ;;  %v3570_v61 = vmul.f32 %v4236_v9, %v3569_v4  ;;  %v3535_v45 = vadd.f32 %v5167_v33, %v3506_v57  ;;  %vm3592_vm4 = vcmp.eq.f32.partialorder %v3591_v28, 8.507059e+37 }
 0x6c0   : > { %v3550_v47 = vsel %vm3547_vm7, %v3549_v37, %v3545_v59  ;;  %v3487_v5 = vpop.f32.mrf.mxu1  ;;  %vm3562_vm5 = vcmp.eq.f32.partialorder %v3561_v15, 8.507059e+37  ;;  %vm3727_vm6 = vcmask 785408  }
 0x6c1   : > { %v3597_v31 = vmul.f32 %v3550_v47, %v3533_v49  ;;  %v3571_v42 = vadd.f32 %v4236_v9, %v3570_v61  ;;  %v3525_v53 = vpop.f32.mrf.mxu3  ;;  %v3534_v26 = vadd.f32 %v5176_v55, %v3487_v5 }
 0x6c2   : > { %v4238_v52 = vpop.eup %4237  ;;  %v3536_v38 = vadd.f32 %v5170_v24, %v3525_v53 }
 0x6c3   : > { %v4240_v0 = vpop.eup %4239  ;;  %v3583_v40 = vmul.f32 %v4238_v52, %v5183_v16  ;;  %v3575_v50 = vsel %vm3574_vm10, %v4236_v9, %v3571_v42  ;;  %v3604_v8 = vrot.slane %v3597_v31, 4  ;;  %vm3588_vm12 = vweird.f32 %v4238_v52 }
 0x6c4   : > { %v3553_v62 = vmul.f32 %v4240_v0, %v5185_v46  ;;  %v3580_v11 = vsel %vm3577_vm11, %v3579_v32, %v3575_v50  ;;  %vm3558_vm13 = vweird.f32 %v4240_v0  ;;  %vm3589_vm2 = vmor %vm3587_vm14, %vm3588_vm12 }
 0x6c5   : > { %v3584_v17 = vsub.f32 1.0, %v3583_v40  ;;  %v3599_v41 = vmul.f32 %v3580_v11, %v3535_v45  ;;  %vm3559_vm3 = vmor %vm3557_vm15, %vm3558_vm13 }
 0x6c6   : > { %v3554_v63 = vsub.f32 1.0, %v3553_v62  ;;  %v3508_v58 = vpop.f32.mrf.mxu2 }
 0x6c7   : > { %v3601_v51 = vrot.slane %v3599_v41, 4  ;;  %v3605_v56 = vsel %vm386_vm0, %v3599_v41, %v3604_v8  ;;  %v3585_v33 = vmul.f32 %v4238_v52, %v3584_v17 }
 0x6c8   : > { %v3555_v21 = vmul.f32 %v4240_v0, %v3554_v63  ;;  %v3489_v18 = vpop.f32.mrf.mxu1  ;;  %v3613_v39 = vperm.slane %v3605_v56, %v4380_v7 }
 0x6c9   : > { %v3603_v10 = vsel %vm386_vm0, %v3601_v51, %v3597_v31  ;;  %v3586_v54 = vadd.f32 %v4238_v52, %v3585_v33  ;;  %v3527_v1 = vpop.f32.mrf.mxu3 }
 0x6ca   : > { %v3556_v30 = vadd.f32 %v4240_v0, %v3555_v21  ;;  %v3609_v43 = vperm.slane %v3603_v10, %v4380_v7  ;;  %v3640_v55 = vrot.slane %v3613_v39, 4 }
 0x6cb   : > { %v3590_v35 = vsel %vm3589_vm2, %v4238_v52, %v3586_v54 }
 0x6cc   : > { %v3560_v29 = vsel %vm3559_vm3, %v4240_v0, %v3556_v30  ;;  %v3595_v2 = vsel %vm3592_vm4, %v3594_v48, %v3590_v35  ;;  %v3628_v16 = vrot.slane %v3609_v43, 4 }
 0x6cd   : > { %v3565_v14 = vsel %vm3562_vm5, %v3564_v3, %v3560_v29  ;;  %v3600_v25 = vmul.f32 %v3595_v2, %v3536_v38  ;;  %v4016_v29 = vld [vmem:[%s5298_s4 + $0x30] sm:$0xff]  ;;  %v4015_v2 = vld [vmem:[%s5298_s4 + $0x28] sm:$0xff] }
 0x6ce   : > { %v3598_v23 = vmul.f32 %v3565_v14, %v3534_v26  ;;  %v4014_v14 = vld [vmem:[%s5298_s4 + $0x20] sm:$0xff] }
 0x6cf   : > { %v3614_v9 = vrot.slane %v3600_v25, 4 }
 0x6d0   : > { %v3616_v36 = vrot.slane %v3598_v23, 4 }
 0x6d1   : > { %v3615_v13 = vsel %vm386_vm0, %v3614_v9, %v3598_v23  ;;  %v4011_v23 = vld [vmem:[%s5298_s4 + $0x8] sm:$0xff] }
 0x6d2   : > { %v3617_v24 = vsel %vm386_vm0, %v3600_v25, %v3616_v36  ;;  %v3621_v46 = vperm.slane %v3615_v13, %v4380_v7  ;;  %v4013_v25 = vld [vmem:[%s5298_s4 + $0x18] sm:$0xff] }
 0x6d3   : > { %v3625_v34 = vperm.slane %v3617_v24, %v4380_v7 }
 0x6d4   : > { %v3626_v20 = vrot.slane %v3621_v46, 4  ;;  %v3629_v19 = vsel %vm386_vm0, %v3621_v46, %v3628_v16 }
 0x6d5   : > { %v3637_v4 = vperm.slane %v3629_v19, %v4385_v22  ;;  %v3638_v27 = vrot.slane %v3625_v34, 4  ;;  %v3641_v37 = vsel %vm386_vm0, %v3625_v34, %v3640_v55  ;;  %v3730_v34 = vld [vmem:[%s327_s21] sm:$0xff] }
 0x6d6   : > { %v3627_v57 = vsel %vm386_vm0, %v3626_v20, %v3609_v43  ;;  %v3649_v60 = vperm.slane %v3641_v37, %v4385_v22  ;;  %v4012_v43 = vld [vmem:[%s5298_s4 + $0x10] sm:$0xff]  ;;  %v4200_v20 = vld [vmem:[%s5299_s5] ss:$0 sm:$0xff] }
 0x6d7   : > { %v3633_v12 = vperm.slane %v3627_v57, %v4385_v22  ;;  %v3639_v49 = vsel %vm386_vm0, %v3638_v27, %v3613_v39  ;;  %v3652_v59 = vrot.slane %v3637_v4, 4  ;;  %v4010_v39 = vld [vmem:[%s5298_s4] sm:$0xff] }
 0x6d8   : > { %v3645_v61 = vperm.slane %v3639_v49, %v4385_v22  ;;  %v3656_v47 = vrot.slane %v3649_v60, 4 }
 0x6d9   : > { %v3653_v5 = vsel %vm386_vm0, 0.0, %v3652_v59  ;;  %v3650_v31 = vrot.slane %v3633_v12, 4  ;;  %v3658_v42 = vsel %vm386_vm0, %v3652_v59, %v3633_v12 }
 0x6da   : > { %v3657_v53 = vsel %vm386_vm0, 0.0, %v3656_v47  ;;  %v3663_v52 = vrot.slane %v3653_v5, 4  ;;  %v3654_v32 = vrot.slane %v3645_v61, 4  ;;  %v3662_v0 = vperm.slane %v3658_v42, %v4380_v7 }
 0x6db   : > { %v3674_v40 = vrot.slane %v3657_v53, 4  ;;  %v3651_v45 = vsel %vm386_vm0, 0.0, %v3650_v31  ;;  %v3669_v50 = vsel %vm386_vm0, %v3656_v47, %v3645_v61 }
 0x6dc   : > { %v3655_v62 = vsel %vm386_vm0, 0.0, %v3654_v32  ;;  %v3664_v11 = vsel %vm386_vm0, %v3663_v52, %v3651_v45  ;;  %v3673_v8 = vperm.slane %v3669_v50, %v4380_v7  ;;  %v3682_v17 = vrot.slane %v3662_v0, 4 }
 0x6dd   : > { %v3668_v41 = vperm.slane %v3664_v11, %v4380_v7  ;;  %v3675_v63 = vsel %vm386_vm0, %v3674_v40, %v3655_v62 }
 0x6de   : > { %v3679_v6 = vperm.slane %v3675_v63, %v4380_v7  ;;  %v3694_v28 = vrot.slane %v3673_v8, 4 }
 0x6df   : > { %v3683_v44 = vsel %vm386_vm0, %v3668_v41, %v3682_v17  ;;  %v3680_v58 = vrot.slane %v3668_v41, 4 }
 0x6e0   : > { %v3691_v51 = vperm.slane %v3683_v44, %v4385_v22  ;;  %v3695_v56 = vsel %vm386_vm0, %v3679_v6, %v3694_v28  ;;  %v3692_v33 = vrot.slane %v3679_v6, 4 }
 0x6e1   : > { %v3703_v21 = vperm.slane %v3695_v56, %v4385_v22  ;;  %v3681_v15 = vsel %vm386_vm0, %v3680_v58, %v3662_v0 }
 0x6e2   : > { %v3710_v18 = vrot.slane %v3691_v51, 4  ;;  %v3687_v10 = vperm.slane %v3681_v15, %v4385_v22  ;;  %v3693_v54 = vsel %vm386_vm0, %v3692_v33, %v3673_v8 }
 0x6e3   : > { %v3708_v1 = vrot.slane %v3703_v21, 4  ;;  %v3699_v7 = vperm.slane %v3693_v54, %v4385_v22  ;;  %v4017_v22 = vld [vmem:[%s5298_s4 + $0x38] sm:$0xff] }
 0x6e4   : > { %v3711_v30 = vsel %vm386_vm0, %v3703_v21, %v3710_v18  ;;  %v3706_v48 = vrot.slane %v3687_v10, 4  ;;  %3795 = vmatpush.bf16.msrb.mxu0 %v4017_v22 }
 0x6e5   : > { %3721 = vrot.lane.b32.xlu0 %v3711_v30, %s4281_s9  ;;  %v3709_v3 = vsel %vm386_vm0, %v3708_v1, %v3691_v51  ;;  %v3704_v38 = vrot.slane %v3699_v7, 4 }
 0x6e6   : > { %3717 = vrot.lane.b32.xlu2 %v3709_v3, %s4283_s16  ;;  %v3707_v35 = vsel %vm386_vm0, %v3699_v7, %v3706_v48 }
 0x6e7   : > { %3713 = vrot.lane.b32.xlu1 %v3707_v35, %s4282_s10  ;;  %v3705_v26 = vsel %vm386_vm0, %v3704_v38, %v3687_v10  ;;  %vm3725_vm0 = vcmask 523264  }
 0x6e8   : > { %3796 = vmatpush.bf16.msrb.mxu0 %v4016_v29 }
 0x6ec   : > { %3797 = vmatpush.bf16.msrb.mxu0 %v4015_v2 }
 0x6f0   : > { %3798 = vmatpush.bf16.msrb.mxu0 %v4014_v14 }
 0x6f4   : > { %3799 = vmatpush.bf16.msrb.mxu0 %v4013_v25 }
 0x6f8   : > { %3800 = vmatpush.bf16.msrb.mxu0 %v4012_v43 }
 0x6fc   : > { %3801 = vmatpush.bf16.msrb.mxu0 %v4011_v23 }
 0x700   : > { %3802 = vmatpush.bf16.msrb.mxu0 %v4010_v39 }
 0x740   : > { %v3718_v36 = vpop.permute.xlu2 %3717 }
 0x757   : > { %v3722_v16 = vpop.permute.xlu0 %3721 }
 0x759   : > { %v3714_v9 = vpop.permute.xlu1 %3713 }
 0x75a   : > { %v3724_v13 = vsel %vm1742_vm1, %v3705_v26, %v3714_v9 }
 0x75b   : > { %v3726_v24 = vsel %vm3725_vm0, %v3724_v13, %v3718_v36 }
 0x75c   : > { %v3728_v46 = vsel %vm3727_vm6, %v3726_v24, %v3722_v16 }
 0x75d   : > { %v3729_v55 = vpack.c.bf16 %v3728_v46, %v3728_v46 }
 0x75f   : > { %3803 = vmatmul.bf16.vlgmr.msrb.gmra.mxu0 %v3729_v55 }
 0x7dc   : > { %v3804_v19 = vpop.f32.mrf.mxu0 }
 0x7dd   : > { %v3808_v4 = vadd.f32 %v3804_v19, %v3730_v34 }
 0x7df   : > { %v3813_v27 = vadd.f32 %v4200_v20, %v3808_v4 }
 0x7e1   : > { %3814 = vst [vmem:[%s353_s7] sm:$0xff] %v3813_v27 }
 0x7e4   : > { %v3806_v37 = vpop.f32.mrf.mxu0 }
 0x7e5 PF: > { %s16_s25 = sadd.s32 1, %s4279_s25   ;;  %s5301_s21 = smov %s4271_s23 }
 0x7e6   : > { %p13_p7 = scmp.ge.s32.totalorder %s16_s25, 6   ;;  %s5302_s22 = smov %s4275_s24 }
 0x7e7   : > { %s5303_s23 = smov %s5306_s26  ;;  %s5304_s24 = smov %s5310_s27 }
 0x7e8   :  { %15 = sbr.rel (!%p13_p7) target bundleno = 3 (0x3), region = 83 }

</bundles_post_ra>
